<compile_context>
chip_gen: v6e
topology: v6e:2x2x1
jax: 0.10.0
libtpu: 0.0.40
codegen_flags: <defaults>
</compile_context>

<pallas_src>
import functools

import jax
import jax.numpy as jnp
from jax import lax
from jax.experimental import pallas as pl
from jax.experimental.pallas import tpu as pltpu


# --------------------------------------------------------------------------
# Soft-skeletonization (clDice style) of one or more (..., H, W) maps in [0,1].
# Shared by the kernel (use_roll=True/False, 2D maps) and the pure-JAX
# reference (use_roll=False, batched 3D maps).  Padding with 1.0 for min
# pooling / 0.0 for max pooling matches PyTorch's implicit +/-inf padding.
# --------------------------------------------------------------------------
def _soft_skeletonize(imgs, n_iter, *, use_roll):
    imgs = list(imgs)
    dt = imgs[0].dtype
    shape = imgs[0].shape
    ndim = imgs[0].ndim
    h, w = shape[-2], shape[-1]
    ax_h, ax_w = ndim - 2, ndim - 1

    if use_roll:
        # Hoisted (loop-invariant) edge masks in broadcast-ready shapes.
        mh_shape = (1,) * (ndim - 2) + (h, 1)
        mw_shape = (1,) * (ndim - 1) + (w,)
        h_idx = lax.broadcasted_iota(jnp.int32, mh_shape, ndim - 2)
        w_idx = lax.broadcasted_iota(jnp.int32, mw_shape, ndim - 1)
        edge = {ax_h: (h_idx == h - 1, h_idx == 0),
                ax_w: (w_idx == w - 1, w_idx == 0)}

        def pool(x, axis, pad, op):
            n = x.shape[axis]
            last_m, first_m = edge[axis]
            # roll by n-1 == roll by -1 (positive shifts only): x[i+1] / x[i-1]
            nxt = jnp.where(last_m, pad, pltpu.roll(x, n - 1, axis))
            prv = jnp.where(first_m, pad, pltpu.roll(x, 1, axis))
            return op(op(nxt, x), prv)
    else:
        # Boundary fills hoisted once (loop-invariant; JAX does not CSE them).
        pads = {(ax_h, 1.0): jnp.ones(shape[:-2] + (1, w), dt),
                (ax_h, 0.0): jnp.zeros(shape[:-2] + (1, w), dt),
                (ax_w, 1.0): jnp.ones(shape[:-1] + (1,), dt),
                (ax_w, 0.0): jnp.zeros(shape[:-1] + (1,), dt)}

        def pool(x, axis, pad, op):
            n = x.shape[axis]
            p = pads[(axis, pad)]
            nxt = jnp.concatenate([lax.slice_in_dim(x, 1, n, axis=axis), p], axis=axis)
            prv = jnp.concatenate([p, lax.slice_in_dim(x, 0, n - 1, axis=axis)], axis=axis)
            return op(op(nxt, x), prv)

    def erode(x):   # min(-maxpool(-x,(3,1)), -maxpool(-x,(1,3)))
        return jnp.minimum(pool(x, ax_h, 1.0, jnp.minimum),
                           pool(x, ax_w, 1.0, jnp.minimum))

    def dilate(x):  # 3x3 max pool (separable)
        return pool(pool(x, ax_h, 0.0, jnp.maximum), ax_w, 0.0, jnp.maximum)

    zero = jnp.zeros((), dt)

    # skel = relu(img - open(img)); carry the erode forward so each iteration
    # costs 1 erode + 1 dilate per map; both maps share one (unrolled) loop so
    # their independent chains interleave.
    e0 = tuple(erode(x) for x in imgs)
    skel0 = tuple(jnp.maximum(x - dilate(e), zero) for x, e in zip(imgs, e0))

    def body(_, carry):
        cur, skel = carry
        e = tuple(erode(c) for c in cur)
        delta = tuple(jnp.maximum(c - dilate(ei), zero) for c, ei in zip(cur, e))
        # skel + relu(delta - skel*delta) == skel + delta*(1-skel) in [0,1]
        new_skel = tuple(s + d - s * d for s, d in zip(skel, delta))
        return e, new_skel

    _, skel = lax.fori_loop(0, n_iter, body, (e0, skel0), unroll=True)
    return list(skel)


# --------------------------------------------------------------------------
# Pallas kernel: one batch element per grid step.  Writes three per-batch
# partial sums (CE, CE*skel_true[1], CE*skel_pred[1]) into its own output block.
# --------------------------------------------------------------------------
def _ce_clce_kernel(logits_ref, target_ref, out_ref, *, n_iter, num_classes,
                    use_roll, skel_dtype):
    tgt = target_ref[...].astype(jnp.int32)                     # (H, W)

    # ---- Channel-looped, numerically stable softmax / per-pixel CE ----
    # Pass 1: running channel max + gather of logits[target]; (H,W) live only.
    m = logits_ref[0].astype(jnp.float32)
    x_tgt = jnp.where(tgt == 0, m, 0.0)
    for c in range(1, num_classes):
        xc = logits_ref[c].astype(jnp.float32)
        m = jnp.maximum(m, xc)
        x_tgt = x_tgt + jnp.where(tgt == c, xc, 0.0)

    # Pass 2: sum of exp (one EUP exp per channel); capture channel-1 exp.
    sez = jnp.exp(logits_ref[0].astype(jnp.float32) - m)
    e1 = None
    for c in range(1, num_classes):
        ec = jnp.exp(logits_ref[c].astype(jnp.float32) - m)
        if c == 1:
            e1 = ec
        sez = sez + ec

    # Per-pixel CE with the one-hot target: logsumexp - logits[target].
    ce_map = (jnp.log(sez) + m) - x_tgt                         # (H, W)

    # ---- Channel-1 soft skeletons of softmax probs and one-hot target ----
    p1 = e1 * pl.reciprocal(sez, approx=True)    # EUP vrcp; ~2^-12 rel. error
    t1 = (tgt == 1).astype(jnp.float32)
    skel_t1, skel_p1 = _soft_skeletonize(
        [t1.astype(skel_dtype), p1.astype(skel_dtype)], n_iter, use_roll=use_roll)
    skel_t1 = skel_t1.astype(jnp.float32)
    skel_p1 = skel_p1.astype(jnp.float32)

    s_ce = jnp.sum(ce_map)                 # -> ce_loss (mean in wrapper)
    s_prec = jnp.sum(ce_map * skel_t1)     # -> tprec numerator
    s_sens = jnp.sum(ce_map * skel_p1)     # -> tsens numerator

    # Lane-dense (1, 8, 128) partial-sum block: row 0 = CE, row 1 = tprec,
    # row 2 = tsens (value broadcast across the 128 lanes).
    row = lax.broadcasted_iota(jnp.int32, (1, 8, 128), 1)
    out_ref[...] = jnp.where(row == 0, s_ce,
                   jnp.where(row == 1, s_prec,
                   jnp.where(row == 2, s_sens, 0.0)))


def ce_clce_loss(net_output, target, *, iter_=10, weight_clce=1.0,
                 skel_dtype=jnp.float32):
    """net_output: (B, C, H, W) logits; target: (B, 1, H, W) integer labels."""
    B, C, H, W = net_output.shape
    assert target.shape == (B, 1, H, W), target.shape
    assert C >= 2, "clCE uses channel 1 of the soft skeletons"
    # NOTE: production patches should have W % 128 == 0 and H % 8 == 0 (pad
    # outside the kernel if needed) for full lane occupancy and the roll path.

    use_roll = (H % 8 == 0) and (W % 128 == 0)

    kernel = functools.partial(_ce_clce_kernel, n_iter=int(iter_),
                               num_classes=C, use_roll=use_roll,
                               skel_dtype=skel_dtype)

    # VMEM budget from the actual block sizes: double-buffered inputs + output
    # blocks + ~24 (H,W) f32-equivalent live temporaries, floored at 32 MiB and
    # capped at 56 MiB so it fits every generation (v7x physical: 64 MiB).
    in_bytes = C * H * W * net_output.dtype.itemsize + H * W * target.dtype.itemsize
    want = 2 * in_bytes + 2 * 8 * 128 * 4 + 24 * H * W * 4 + (4 << 20)
    vmem_limit = int(min(max(want, 32 << 20), 56 << 20))

    partials = pl.pallas_call(
        kernel,
        out_shape=jax.ShapeDtypeStruct((B, 8, 128), jnp.float32),
        grid=(B,),
        in_specs=[
            pl.BlockSpec((pl.Squeezed(), C, H, W), lambda b: (b, 0, 0, 0)),
            pl.BlockSpec((pl.Squeezed(), pl.Squeezed(), H, W),
                         lambda b: (b, 0, 0, 0)),
        ],
        out_specs=pl.BlockSpec((1, 8, 128), lambda b: (b, 0, 0)),
        compiler_params=pltpu.CompilerParams(
            dimension_semantics=("parallel",),   # per-batch blocks -> 2 TCs on v7x
            vmem_limit_bytes=vmem_limit,
        ),
    )(net_output, target)   # native dtypes DMA'd; casts happen inside the kernel

    # Tiny final combine in plain JAX (keeps the batch grid axis truly parallel).
    sums = jnp.sum(partials[:, :, 0], axis=0)        # (8,)
    n_pix = float(B * H * W)
    ce_loss = sums[0] / n_pix
    cl_ce = (sums[1] + sums[2]) / n_pix              # tprec + tsens
    return (1.0 - weight_clce) * ce_loss + weight_clce * cl_ce


# --------------------------------------------------------------------------
# Pure-JAX reference (same math, whole batch at once) for validation.
# --------------------------------------------------------------------------
def ce_clce_loss_ref(net_output, target, *, iter_=10, weight_clce=1.0):
    B, C, H, W = net_output.shape
    tgt = target[:, 0].astype(jnp.int32)                         # (B, H, W)
    logp = jax.nn.log_softmax(net_output.astype(jnp.float32), axis=1)
    probs = jnp.exp(logp)
    oh = jax.nn.one_hot(tgt, C, axis=1, dtype=jnp.float32)
    cross_ent = -jnp.sum(oh * logp, axis=1)                      # (B, H, W)
    ce_loss = jnp.mean(cross_ent)
    skel_t1, skel_p1 = _soft_skeletonize([oh[:, 1], probs[:, 1]], iter_,
                                         use_roll=False)
    tprec = jnp.mean(cross_ent * skel_t1)
    tsens = jnp.mean(cross_ent * skel_p1)
    cl_ce = tprec + tsens
    return (1.0 - weight_clce) * ce_loss + weight_clce * cl_ce


if __name__ == "__main__":
    key = jax.random.PRNGKey(0)
    # (16, 128) exercises the aligned pltpu.roll fast path; (16, 16) exercises
    # the slice+concat fallback.  weight_clce < 1 also exercises the CE term.
    cases = [((2, 4, 16, 128), 1.0), ((2, 4, 16, 16), 0.7)]
    for (B, C, H, W), w_cl in cases:
        k1, k2 = jax.random.split(jax.random.fold_in(key, H * 1000 + W))
        net_output = jax.random.normal(k1, (B, C, H, W), dtype=jnp.float32)
        target = jax.random.randint(k2, (B, 1, H, W), 0, C, dtype=jnp.int32)

        loss = ce_clce_loss(net_output, target, iter_=10, weight_clce=w_cl)
        loss = jax.block_until_ready(loss)
        ref = ce_clce_loss_ref(net_output, target, iter_=10, weight_clce=w_cl)

        assert bool(jnp.isfinite(loss)), float(loss)
        tol = 3e-3 * max(1.0, abs(float(ref)))   # headroom for approx reciprocal
        assert abs(float(loss) - float(ref)) < tol, (float(loss), float(ref))
    print("KERNEL_OK")
</pallas_src>

<mosaic_0001>
module attributes {stable_mosaic.version = 11 : i64} {
  func.func @_ce_clce_kernel(%arg0: i32, %arg1: memref<1x4x16x128xf32, #tpu.memory_space<vmem>>, %arg2: memref<1x1x16x128xi32, #tpu.memory_space<vmem>>, %arg3: memref<1x8x128xf32, #tpu.memory_space<vmem>>) attributes {dimension_semantics = [#tpu.dimension_semantics<parallel>], iteration_bounds = array<i64: 2>, scalar_prefetch = 0 : i64, scratch_operands = 0 : i64, tpu.core_type = #tpu.core_type<tc>, window_params = [{transform_indices = @transform_0, window_bounds = array<i64: 1, 4, 16, 128>}, {transform_indices = @transform_1, window_bounds = array<i64: 1, 1, 16, 128>}, {transform_indices = @transform_2, window_bounds = array<i64: 1, 8, 128>}]} {
    %c0 = arith.constant 0 : index
    %c0_0 = arith.constant 0 : index
    %c0_1 = arith.constant 0 : index
    %c0_2 = arith.constant 0 : index
    %0 = vector.load %arg2[%c0, %c0_0, %c0_1, %c0_2] : memref<1x1x16x128xi32, #tpu.memory_space<vmem>>, vector<1x1x16x128xi32>
    %1 = vector.shape_cast %0 : vector<1x1x16x128xi32> to vector<16x128xi32>
    %c0_3 = arith.constant 0 : index
    %c0_4 = arith.constant 0 : index
    %c0_5 = arith.constant 0 : index
    %c0_6 = arith.constant 0 : index
    %2 = vector.load %arg1[%c0_3, %c0_4, %c0_5, %c0_6] : memref<1x4x16x128xf32, #tpu.memory_space<vmem>>, vector<1x1x16x128xf32>
    %3 = vector.shape_cast %2 : vector<1x1x16x128xf32> to vector<16x128xf32>
    %c0_i32 = arith.constant 0 : i32
    %4 = vector.broadcast %c0_i32 : i32 to vector<16x128xi32>
    %5 = arith.cmpi eq, %1, %4 : vector<16x128xi32>
    %cst = arith.constant 0.000000e+00 : f32
    %6 = vector.broadcast %cst : f32 to vector<16x128xf32>
    %7 = arith.select %5, %3, %6 : vector<16x128xi1>, vector<16x128xf32>
    %c0_7 = arith.constant 0 : index
    %c1 = arith.constant 1 : index
    %c0_8 = arith.constant 0 : index
    %c0_9 = arith.constant 0 : index
    %8 = vector.load %arg1[%c0_7, %c1, %c0_8, %c0_9] : memref<1x4x16x128xf32, #tpu.memory_space<vmem>>, vector<1x1x16x128xf32>
    %9 = vector.shape_cast %8 : vector<1x1x16x128xf32> to vector<16x128xf32>
    %10 = arith.maximumf %3, %9 : vector<16x128xf32>
    %c1_i32 = arith.constant 1 : i32
    %11 = vector.broadcast %c1_i32 : i32 to vector<16x128xi32>
    %12 = arith.cmpi eq, %1, %11 : vector<16x128xi32>
    %cst_10 = arith.constant 0.000000e+00 : f32
    %13 = vector.broadcast %cst_10 : f32 to vector<16x128xf32>
    %14 = arith.select %12, %9, %13 : vector<16x128xi1>, vector<16x128xf32>
    %15 = arith.addf %7, %14 : vector<16x128xf32>
    %c0_11 = arith.constant 0 : index
    %c2 = arith.constant 2 : index
    %c0_12 = arith.constant 0 : index
    %c0_13 = arith.constant 0 : index
    %16 = vector.load %arg1[%c0_11, %c2, %c0_12, %c0_13] : memref<1x4x16x128xf32, #tpu.memory_space<vmem>>, vector<1x1x16x128xf32>
    %17 = vector.shape_cast %16 : vector<1x1x16x128xf32> to vector<16x128xf32>
    %18 = arith.maximumf %10, %17 : vector<16x128xf32>
    %c2_i32 = arith.constant 2 : i32
    %19 = vector.broadcast %c2_i32 : i32 to vector<16x128xi32>
    %20 = arith.cmpi eq, %1, %19 : vector<16x128xi32>
    %cst_14 = arith.constant 0.000000e+00 : f32
    %21 = vector.broadcast %cst_14 : f32 to vector<16x128xf32>
    %22 = arith.select %20, %17, %21 : vector<16x128xi1>, vector<16x128xf32>
    %23 = arith.addf %15, %22 : vector<16x128xf32>
    %c0_15 = arith.constant 0 : index
    %c3 = arith.constant 3 : index
    %c0_16 = arith.constant 0 : index
    %c0_17 = arith.constant 0 : index
    %24 = vector.load %arg1[%c0_15, %c3, %c0_16, %c0_17] : memref<1x4x16x128xf32, #tpu.memory_space<vmem>>, vector<1x1x16x128xf32>
    %25 = vector.shape_cast %24 : vector<1x1x16x128xf32> to vector<16x128xf32>
    %26 = arith.maximumf %18, %25 : vector<16x128xf32>
    %c3_i32 = arith.constant 3 : i32
    %27 = vector.broadcast %c3_i32 : i32 to vector<16x128xi32>
    %28 = arith.cmpi eq, %1, %27 : vector<16x128xi32>
    %cst_18 = arith.constant 0.000000e+00 : f32
    %29 = vector.broadcast %cst_18 : f32 to vector<16x128xf32>
    %30 = arith.select %28, %25, %29 : vector<16x128xi1>, vector<16x128xf32>
    %31 = arith.addf %23, %30 : vector<16x128xf32>
    %c0_19 = arith.constant 0 : index
    %c0_20 = arith.constant 0 : index
    %c0_21 = arith.constant 0 : index
    %c0_22 = arith.constant 0 : index
    %32 = vector.load %arg1[%c0_19, %c0_20, %c0_21, %c0_22] : memref<1x4x16x128xf32, #tpu.memory_space<vmem>>, vector<1x1x16x128xf32>
    %33 = vector.shape_cast %32 : vector<1x1x16x128xf32> to vector<16x128xf32>
    %34 = arith.subf %33, %26 : vector<16x128xf32>
    %35 = math.exp %34 : vector<16x128xf32>
    %c0_23 = arith.constant 0 : index
    %c1_24 = arith.constant 1 : index
    %c0_25 = arith.constant 0 : index
    %c0_26 = arith.constant 0 : index
    %36 = vector.load %arg1[%c0_23, %c1_24, %c0_25, %c0_26] : memref<1x4x16x128xf32, #tpu.memory_space<vmem>>, vector<1x1x16x128xf32>
    %37 = vector.shape_cast %36 : vector<1x1x16x128xf32> to vector<16x128xf32>
    %38 = arith.subf %37, %26 : vector<16x128xf32>
    %39 = math.exp %38 : vector<16x128xf32>
    %40 = arith.addf %35, %39 : vector<16x128xf32>
    %c0_27 = arith.constant 0 : index
    %c2_28 = arith.constant 2 : index
    %c0_29 = arith.constant 0 : index
    %c0_30 = arith.constant 0 : index
    %41 = vector.load %arg1[%c0_27, %c2_28, %c0_29, %c0_30] : memref<1x4x16x128xf32, #tpu.memory_space<vmem>>, vector<1x1x16x128xf32>
    %42 = vector.shape_cast %41 : vector<1x1x16x128xf32> to vector<16x128xf32>
    %43 = arith.subf %42, %26 : vector<16x128xf32>
    %44 = math.exp %43 : vector<16x128xf32>
    %45 = arith.addf %40, %44 : vector<16x128xf32>
    %c0_31 = arith.constant 0 : index
    %c3_32 = arith.constant 3 : index
    %c0_33 = arith.constant 0 : index
    %c0_34 = arith.constant 0 : index
    %46 = vector.load %arg1[%c0_31, %c3_32, %c0_33, %c0_34] : memref<1x4x16x128xf32, #tpu.memory_space<vmem>>, vector<1x1x16x128xf32>
    %47 = vector.shape_cast %46 : vector<1x1x16x128xf32> to vector<16x128xf32>
    %48 = arith.subf %47, %26 : vector<16x128xf32>
    %49 = math.exp %48 : vector<16x128xf32>
    %50 = arith.addf %45, %49 : vector<16x128xf32>
    %51 = math.log %50 : vector<16x128xf32>
    %52 = arith.addf %51, %26 : vector<16x128xf32>
    %53 = arith.subf %52, %31 : vector<16x128xf32>
    %54 = tpu.reciprocal %50 {approx = true} : vector<16x128xf32> -> vector<16x128xf32>
    %55 = arith.mulf %39, %54 : vector<16x128xf32>
    %c1_i32_35 = arith.constant 1 : i32
    %56 = vector.broadcast %c1_i32_35 : i32 to vector<16x128xi32>
    %57 = arith.cmpi eq, %1, %56 : vector<16x128xi32>
    %58 = arith.extui %57 : vector<16x128xi1> to vector<16x128xi32>
    %59 = arith.sitofp %58 : vector<16x128xi32> to vector<16x128xf32>
    %60 = tpu.iota {dimensions = array<i32: 0>} : vector<16x1xi32>
    %61 = tpu.iota {dimensions = array<i32: 1>} : vector<1x128xi32>
    %c15_i32 = arith.constant 15 : i32
    %62 = vector.broadcast %c15_i32 : i32 to vector<16x1xi32>
    %63 = arith.cmpi eq, %60, %62 : vector<16x1xi32>
    %c0_i32_36 = arith.constant 0 : i32
    %64 = vector.broadcast %c0_i32_36 : i32 to vector<16x1xi32>
    %65 = arith.cmpi eq, %60, %64 : vector<16x1xi32>
    %c127_i32 = arith.constant 127 : i32
    %66 = vector.broadcast %c127_i32 : i32 to vector<1x128xi32>
    %67 = arith.cmpi eq, %61, %66 : vector<1x128xi32>
    %c0_i32_37 = arith.constant 0 : i32
    %68 = vector.broadcast %c0_i32_37 : i32 to vector<1x128xi32>
    %69 = arith.cmpi eq, %61, %68 : vector<1x128xi32>
    %c15_i32_38 = arith.constant 15 : i32
    %70 = tpu.dynamic_rotate %59 by %c15_i32_38 dim 0 : vector<16x128xf32>, i32 -> vector<16x128xf32>
    %cst_39 = arith.constant 1.000000e+00 : f32
    %71 = vector.shape_cast %63 : vector<16x1xi1> to vector<16x1xi1>
    %72 = vector.broadcast %71 : vector<16x1xi1> to vector<16x128xi1>
    %73 = vector.broadcast %cst_39 : f32 to vector<16x128xf32>
    %74 = arith.select %72, %73, %70 : vector<16x128xi1>, vector<16x128xf32>
    %c1_i32_40 = arith.constant 1 : i32
    %75 = tpu.dynamic_rotate %59 by %c1_i32_40 dim 0 : vector<16x128xf32>, i32 -> vector<16x128xf32>
    %cst_41 = arith.constant 1.000000e+00 : f32
    %76 = vector.shape_cast %65 : vector<16x1xi1> to vector<16x1xi1>
    %77 = vector.broadcast %76 : vector<16x1xi1> to vector<16x128xi1>
    %78 = vector.broadcast %cst_41 : f32 to vector<16x128xf32>
    %79 = arith.select %77, %78, %75 : vector<16x128xi1>, vector<16x128xf32>
    %80 = arith.minimumf %74, %59 : vector<16x128xf32>
    %81 = arith.minimumf %80, %79 : vector<16x128xf32>
    %c127_i32_42 = arith.constant 127 : i32
    %82 = tpu.dynamic_rotate %59 by %c127_i32_42 dim 1 : vector<16x128xf32>, i32 -> vector<16x128xf32>
    %cst_43 = arith.constant 1.000000e+00 : f32
    %83 = vector.shape_cast %67 : vector<1x128xi1> to vector<1x128xi1>
    %84 = vector.broadcast %83 : vector<1x128xi1> to vector<16x128xi1>
    %85 = vector.broadcast %cst_43 : f32 to vector<16x128xf32>
    %86 = arith.select %84, %85, %82 : vector<16x128xi1>, vector<16x128xf32>
    %c1_i32_44 = arith.constant 1 : i32
    %87 = tpu.dynamic_rotate %59 by %c1_i32_44 dim 1 : vector<16x128xf32>, i32 -> vector<16x128xf32>
    %cst_45 = arith.constant 1.000000e+00 : f32
    %88 = vector.shape_cast %69 : vector<1x128xi1> to vector<1x128xi1>
    %89 = vector.broadcast %88 : vector<1x128xi1> to vector<16x128xi1>
    %90 = vector.broadcast %cst_45 : f32 to vector<16x128xf32>
    %91 = arith.select %89, %90, %87 : vector<16x128xi1>, vector<16x128xf32>
    %92 = arith.minimumf %86, %59 : vector<16x128xf32>
    %93 = arith.minimumf %92, %91 : vector<16x128xf32>
    %94 = arith.minimumf %81, %93 : vector<16x128xf32>
    %c15_i32_46 = arith.constant 15 : i32
    %95 = tpu.dynamic_rotate %55 by %c15_i32_46 dim 0 : vector<16x128xf32>, i32 -> vector<16x128xf32>
    %cst_47 = arith.constant 1.000000e+00 : f32
    %96 = vector.shape_cast %63 : vector<16x1xi1> to vector<16x1xi1>
    %97 = vector.broadcast %96 : vector<16x1xi1> to vector<16x128xi1>
    %98 = vector.broadcast %cst_47 : f32 to vector<16x128xf32>
    %99 = arith.select %97, %98, %95 : vector<16x128xi1>, vector<16x128xf32>
    %c1_i32_48 = arith.constant 1 : i32
    %100 = tpu.dynamic_rotate %55 by %c1_i32_48 dim 0 : vector<16x128xf32>, i32 -> vector<16x128xf32>
    %cst_49 = arith.constant 1.000000e+00 : f32
    %101 = vector.shape_cast %65 : vector<16x1xi1> to vector<16x1xi1>
    %102 = vector.broadcast %101 : vector<16x1xi1> to vector<16x128xi1>
    %103 = vector.broadcast %cst_49 : f32 to vector<16x128xf32>
    %104 = arith.select %102, %103, %100 : vector<16x128xi1>, vector<16x128xf32>
    %105 = arith.minimumf %99, %55 : vector<16x128xf32>
    %106 = arith.minimumf %105, %104 : vector<16x128xf32>
    %c127_i32_50 = arith.constant 127 : i32
    %107 = tpu.dynamic_rotate %55 by %c127_i32_50 dim 1 : vector<16x128xf32>, i32 -> vector<16x128xf32>
    %cst_51 = arith.constant 1.000000e+00 : f32
    %108 = vector.shape_cast %67 : vector<1x128xi1> to vector<1x128xi1>
    %109 = vector.broadcast %108 : vector<1x128xi1> to vector<16x128xi1>
    %110 = vector.broadcast %cst_51 : f32 to vector<16x128xf32>
    %111 = arith.select %109, %110, %107 : vector<16x128xi1>, vector<16x128xf32>
    %c1_i32_52 = arith.constant 1 : i32
    %112 = tpu.dynamic_rotate %55 by %c1_i32_52 dim 1 : vector<16x128xf32>, i32 -> vector<16x128xf32>
    %cst_53 = arith.constant 1.000000e+00 : f32
    %113 = vector.shape_cast %69 : vector<1x128xi1> to vector<1x128xi1>
    %114 = vector.broadcast %113 : vector<1x128xi1> to vector<16x128xi1>
    %115 = vector.broadcast %cst_53 : f32 to vector<16x128xf32>
    %116 = arith.select %114, %115, %112 : vector<16x128xi1>, vector<16x128xf32>
    %117 = arith.minimumf %111, %55 : vector<16x128xf32>
    %118 = arith.minimumf %117, %116 : vector<16x128xf32>
    %119 = arith.minimumf %106, %118 : vector<16x128xf32>
    %c15_i32_54 = arith.constant 15 : i32
    %120 = tpu.dynamic_rotate %94 by %c15_i32_54 dim 0 : vector<16x128xf32>, i32 -> vector<16x128xf32>
    %cst_55 = arith.constant 0.000000e+00 : f32
    %121 = vector.shape_cast %63 : vector<16x1xi1> to vector<16x1xi1>
    %122 = vector.broadcast %121 : vector<16x1xi1> to vector<16x128xi1>
    %123 = vector.broadcast %cst_55 : f32 to vector<16x128xf32>
    %124 = arith.select %122, %123, %120 : vector<16x128xi1>, vector<16x128xf32>
    %c1_i32_56 = arith.constant 1 : i32
    %125 = tpu.dynamic_rotate %94 by %c1_i32_56 dim 0 : vector<16x128xf32>, i32 -> vector<16x128xf32>
    %cst_57 = arith.constant 0.000000e+00 : f32
    %126 = vector.shape_cast %65 : vector<16x1xi1> to vector<16x1xi1>
    %127 = vector.broadcast %126 : vector<16x1xi1> to vector<16x128xi1>
    %128 = vector.broadcast %cst_57 : f32 to vector<16x128xf32>
    %129 = arith.select %127, %128, %125 : vector<16x128xi1>, vector<16x128xf32>
    %130 = arith.maximumf %124, %94 : vector<16x128xf32>
    %131 = arith.maximumf %130, %129 : vector<16x128xf32>
    %c127_i32_58 = arith.constant 127 : i32
    %132 = tpu.dynamic_rotate %131 by %c127_i32_58 dim 1 : vector<16x128xf32>, i32 -> vector<16x128xf32>
    %cst_59 = arith.constant 0.000000e+00 : f32
    %133 = vector.shape_cast %67 : vector<1x128xi1> to vector<1x128xi1>
    %134 = vector.broadcast %133 : vector<1x128xi1> to vector<16x128xi1>
    %135 = vector.broadcast %cst_59 : f32 to vector<16x128xf32>
    %136 = arith.select %134, %135, %132 : vector<16x128xi1>, vector<16x128xf32>
    %c1_i32_60 = arith.constant 1 : i32
    %137 = tpu.dynamic_rotate %131 by %c1_i32_60 dim 1 : vector<16x128xf32>, i32 -> vector<16x128xf32>
    %cst_61 = arith.constant 0.000000e+00 : f32
    %138 = vector.shape_cast %69 : vector<1x128xi1> to vector<1x128xi1>
    %139 = vector.broadcast %138 : vector<1x128xi1> to vector<16x128xi1>
    %140 = vector.broadcast %cst_61 : f32 to vector<16x128xf32>
    %141 = arith.select %139, %140, %137 : vector<16x128xi1>, vector<16x128xf32>
    %142 = arith.maximumf %136, %131 : vector<16x128xf32>
    %143 = arith.maximumf %142, %141 : vector<16x128xf32>
    %144 = arith.subf %59, %143 : vector<16x128xf32>
    %cst_62 = arith.constant 0.000000e+00 : f32
    %145 = vector.broadcast %cst_62 : f32 to vector<16x128xf32>
    %146 = arith.maximumf %144, %145 : vector<16x128xf32>
    %c15_i32_63 = arith.constant 15 : i32
    %147 = tpu.dynamic_rotate %119 by %c15_i32_63 dim 0 : vector<16x128xf32>, i32 -> vector<16x128xf32>
    %cst_64 = arith.constant 0.000000e+00 : f32
    %148 = vector.shape_cast %63 : vector<16x1xi1> to vector<16x1xi1>
    %149 = vector.broadcast %148 : vector<16x1xi1> to vector<16x128xi1>
    %150 = vector.broadcast %cst_64 : f32 to vector<16x128xf32>
    %151 = arith.select %149, %150, %147 : vector<16x128xi1>, vector<16x128xf32>
    %c1_i32_65 = arith.constant 1 : i32
    %152 = tpu.dynamic_rotate %119 by %c1_i32_65 dim 0 : vector<16x128xf32>, i32 -> vector<16x128xf32>
    %cst_66 = arith.constant 0.000000e+00 : f32
    %153 = vector.shape_cast %65 : vector<16x1xi1> to vector<16x1xi1>
    %154 = vector.broadcast %153 : vector<16x1xi1> to vector<16x128xi1>
    %155 = vector.broadcast %cst_66 : f32 to vector<16x128xf32>
    %156 = arith.select %154, %155, %152 : vector<16x128xi1>, vector<16x128xf32>
    %157 = arith.maximumf %151, %119 : vector<16x128xf32>
    %158 = arith.maximumf %157, %156 : vector<16x128xf32>
    %c127_i32_67 = arith.constant 127 : i32
    %159 = tpu.dynamic_rotate %158 by %c127_i32_67 dim 1 : vector<16x128xf32>, i32 -> vector<16x128xf32>
    %cst_68 = arith.constant 0.000000e+00 : f32
    %160 = vector.shape_cast %67 : vector<1x128xi1> to vector<1x128xi1>
    %161 = vector.broadcast %160 : vector<1x128xi1> to vector<16x128xi1>
    %162 = vector.broadcast %cst_68 : f32 to vector<16x128xf32>
    %163 = arith.select %161, %162, %159 : vector<16x128xi1>, vector<16x128xf32>
    %c1_i32_69 = arith.constant 1 : i32
    %164 = tpu.dynamic_rotate %158 by %c1_i32_69 dim 1 : vector<16x128xf32>, i32 -> vector<16x128xf32>
    %cst_70 = arith.constant 0.000000e+00 : f32
    %165 = vector.shape_cast %69 : vector<1x128xi1> to vector<1x128xi1>
    %166 = vector.broadcast %165 : vector<1x128xi1> to vector<16x128xi1>
    %167 = vector.broadcast %cst_70 : f32 to vector<16x128xf32>
    %168 = arith.select %166, %167, %164 : vector<16x128xi1>, vector<16x128xf32>
    %169 = arith.maximumf %163, %158 : vector<16x128xf32>
    %170 = arith.maximumf %169, %168 : vector<16x128xf32>
    %171 = arith.subf %55, %170 : vector<16x128xf32>
    %cst_71 = arith.constant 0.000000e+00 : f32
    %172 = vector.broadcast %cst_71 : f32 to vector<16x128xf32>
    %173 = arith.maximumf %171, %172 : vector<16x128xf32>
    %cst_72 = arith.constant 0.000000e+00 : f32
    %c0_i32_73 = arith.constant 0 : i32
    %c15_i32_74 = arith.constant 15 : i32
    %174 = tpu.dynamic_rotate %94 by %c15_i32_74 dim 0 : vector<16x128xf32>, i32 -> vector<16x128xf32>
    %cst_75 = arith.constant 1.000000e+00 : f32
    %175 = vector.shape_cast %63 : vector<16x1xi1> to vector<16x1xi1>
    %176 = vector.broadcast %175 : vector<16x1xi1> to vector<16x128xi1>
    %177 = vector.broadcast %cst_75 : f32 to vector<16x128xf32>
    %178 = arith.select %176, %177, %174 : vector<16x128xi1>, vector<16x128xf32>
    %c1_i32_76 = arith.constant 1 : i32
    %179 = tpu.dynamic_rotate %94 by %c1_i32_76 dim 0 : vector<16x128xf32>, i32 -> vector<16x128xf32>
    %cst_77 = arith.constant 1.000000e+00 : f32
    %180 = vector.shape_cast %65 : vector<16x1xi1> to vector<16x1xi1>
    %181 = vector.broadcast %180 : vector<16x1xi1> to vector<16x128xi1>
    %182 = vector.broadcast %cst_77 : f32 to vector<16x128xf32>
    %183 = arith.select %181, %182, %179 : vector<16x128xi1>, vector<16x128xf32>
    %184 = arith.minimumf %178, %94 : vector<16x128xf32>
    %185 = arith.minimumf %184, %183 : vector<16x128xf32>
    %c127_i32_78 = arith.constant 127 : i32
    %186 = tpu.dynamic_rotate %94 by %c127_i32_78 dim 1 : vector<16x128xf32>, i32 -> vector<16x128xf32>
    %cst_79 = arith.constant 1.000000e+00 : f32
    %187 = vector.shape_cast %67 : vector<1x128xi1> to vector<1x128xi1>
    %188 = vector.broadcast %187 : vector<1x128xi1> to vector<16x128xi1>
    %189 = vector.broadcast %cst_79 : f32 to vector<16x128xf32>
    %190 = arith.select %188, %189, %186 : vector<16x128xi1>, vector<16x128xf32>
    %c1_i32_80 = arith.constant 1 : i32
    %191 = tpu.dynamic_rotate %94 by %c1_i32_80 dim 1 : vector<16x128xf32>, i32 -> vector<16x128xf32>
    %cst_81 = arith.constant 1.000000e+00 : f32
    %192 = vector.shape_cast %69 : vector<1x128xi1> to vector<1x128xi1>
    %193 = vector.broadcast %192 : vector<1x128xi1> to vector<16x128xi1>
    %194 = vector.broadcast %cst_81 : f32 to vector<16x128xf32>
    %195 = arith.select %193, %194, %191 : vector<16x128xi1>, vector<16x128xf32>
    %196 = arith.minimumf %190, %94 : vector<16x128xf32>
    %197 = arith.minimumf %196, %195 : vector<16x128xf32>
    %198 = arith.minimumf %185, %197 : vector<16x128xf32>
    %c15_i32_82 = arith.constant 15 : i32
    %199 = tpu.dynamic_rotate %119 by %c15_i32_82 dim 0 : vector<16x128xf32>, i32 -> vector<16x128xf32>
    %cst_83 = arith.constant 1.000000e+00 : f32
    %200 = vector.shape_cast %63 : vector<16x1xi1> to vector<16x1xi1>
    %201 = vector.broadcast %200 : vector<16x1xi1> to vector<16x128xi1>
    %202 = vector.broadcast %cst_83 : f32 to vector<16x128xf32>
    %203 = arith.select %201, %202, %199 : vector<16x128xi1>, vector<16x128xf32>
    %c1_i32_84 = arith.constant 1 : i32
    %204 = tpu.dynamic_rotate %119 by %c1_i32_84 dim 0 : vector<16x128xf32>, i32 -> vector<16x128xf32>
    %cst_85 = arith.constant 1.000000e+00 : f32
    %205 = vector.shape_cast %65 : vector<16x1xi1> to vector<16x1xi1>
    %206 = vector.broadcast %205 : vector<16x1xi1> to vector<16x128xi1>
    %207 = vector.broadcast %cst_85 : f32 to vector<16x128xf32>
    %208 = arith.select %206, %207, %204 : vector<16x128xi1>, vector<16x128xf32>
    %209 = arith.minimumf %203, %119 : vector<16x128xf32>
    %210 = arith.minimumf %209, %208 : vector<16x128xf32>
    %c127_i32_86 = arith.constant 127 : i32
    %211 = tpu.dynamic_rotate %119 by %c127_i32_86 dim 1 : vector<16x128xf32>, i32 -> vector<16x128xf32>
    %cst_87 = arith.constant 1.000000e+00 : f32
    %212 = vector.shape_cast %67 : vector<1x128xi1> to vector<1x128xi1>
    %213 = vector.broadcast %212 : vector<1x128xi1> to vector<16x128xi1>
    %214 = vector.broadcast %cst_87 : f32 to vector<16x128xf32>
    %215 = arith.select %213, %214, %211 : vector<16x128xi1>, vector<16x128xf32>
    %c1_i32_88 = arith.constant 1 : i32
    %216 = tpu.dynamic_rotate %119 by %c1_i32_88 dim 1 : vector<16x128xf32>, i32 -> vector<16x128xf32>
    %cst_89 = arith.constant 1.000000e+00 : f32
    %217 = vector.shape_cast %69 : vector<1x128xi1> to vector<1x128xi1>
    %218 = vector.broadcast %217 : vector<1x128xi1> to vector<16x128xi1>
    %219 = vector.broadcast %cst_89 : f32 to vector<16x128xf32>
    %220 = arith.select %218, %219, %216 : vector<16x128xi1>, vector<16x128xf32>
    %221 = arith.minimumf %215, %119 : vector<16x128xf32>
    %222 = arith.minimumf %221, %220 : vector<16x128xf32>
    %223 = arith.minimumf %210, %222 : vector<16x128xf32>
    %c15_i32_90 = arith.constant 15 : i32
    %224 = tpu.dynamic_rotate %198 by %c15_i32_90 dim 0 : vector<16x128xf32>, i32 -> vector<16x128xf32>
    %cst_91 = arith.constant 0.000000e+00 : f32
    %225 = vector.shape_cast %63 : vector<16x1xi1> to vector<16x1xi1>
    %226 = vector.broadcast %225 : vector<16x1xi1> to vector<16x128xi1>
    %227 = vector.broadcast %cst_91 : f32 to vector<16x128xf32>
    %228 = arith.select %226, %227, %224 : vector<16x128xi1>, vector<16x128xf32>
    %c1_i32_92 = arith.constant 1 : i32
    %229 = tpu.dynamic_rotate %198 by %c1_i32_92 dim 0 : vector<16x128xf32>, i32 -> vector<16x128xf32>
    %cst_93 = arith.constant 0.000000e+00 : f32
    %230 = vector.shape_cast %65 : vector<16x1xi1> to vector<16x1xi1>
    %231 = vector.broadcast %230 : vector<16x1xi1> to vector<16x128xi1>
    %232 = vector.broadcast %cst_93 : f32 to vector<16x128xf32>
    %233 = arith.select %231, %232, %229 : vector<16x128xi1>, vector<16x128xf32>
    %234 = arith.maximumf %228, %198 : vector<16x128xf32>
    %235 = arith.maximumf %234, %233 : vector<16x128xf32>
    %c127_i32_94 = arith.constant 127 : i32
    %236 = tpu.dynamic_rotate %235 by %c127_i32_94 dim 1 : vector<16x128xf32>, i32 -> vector<16x128xf32>
    %cst_95 = arith.constant 0.000000e+00 : f32
    %237 = vector.shape_cast %67 : vector<1x128xi1> to vector<1x128xi1>
    %238 = vector.broadcast %237 : vector<1x128xi1> to vector<16x128xi1>
    %239 = vector.broadcast %cst_95 : f32 to vector<16x128xf32>
    %240 = arith.select %238, %239, %236 : vector<16x128xi1>, vector<16x128xf32>
    %c1_i32_96 = arith.constant 1 : i32
    %241 = tpu.dynamic_rotate %235 by %c1_i32_96 dim 1 : vector<16x128xf32>, i32 -> vector<16x128xf32>
    %cst_97 = arith.constant 0.000000e+00 : f32
    %242 = vector.shape_cast %69 : vector<1x128xi1> to vector<1x128xi1>
    %243 = vector.broadcast %242 : vector<1x128xi1> to vector<16x128xi1>
    %244 = vector.broadcast %cst_97 : f32 to vector<16x128xf32>
    %245 = arith.select %243, %244, %241 : vector<16x128xi1>, vector<16x128xf32>
    %246 = arith.maximumf %240, %235 : vector<16x128xf32>
    %247 = arith.maximumf %246, %245 : vector<16x128xf32>
    %248 = arith.subf %94, %247 : vector<16x128xf32>
    %249 = vector.broadcast %cst_72 : f32 to vector<16x128xf32>
    %250 = arith.maximumf %248, %249 : vector<16x128xf32>
    %c15_i32_98 = arith.constant 15 : i32
    %251 = tpu.dynamic_rotate %223 by %c15_i32_98 dim 0 : vector<16x128xf32>, i32 -> vector<16x128xf32>
    %cst_99 = arith.constant 0.000000e+00 : f32
    %252 = vector.shape_cast %63 : vector<16x1xi1> to vector<16x1xi1>
    %253 = vector.broadcast %252 : vector<16x1xi1> to vector<16x128xi1>
    %254 = vector.broadcast %cst_99 : f32 to vector<16x128xf32>
    %255 = arith.select %253, %254, %251 : vector<16x128xi1>, vector<16x128xf32>
    %c1_i32_100 = arith.constant 1 : i32
    %256 = tpu.dynamic_rotate %223 by %c1_i32_100 dim 0 : vector<16x128xf32>, i32 -> vector<16x128xf32>
    %cst_101 = arith.constant 0.000000e+00 : f32
    %257 = vector.shape_cast %65 : vector<16x1xi1> to vector<16x1xi1>
    %258 = vector.broadcast %257 : vector<16x1xi1> to vector<16x128xi1>
    %259 = vector.broadcast %cst_101 : f32 to vector<16x128xf32>
    %260 = arith.select %258, %259, %256 : vector<16x128xi1>, vector<16x128xf32>
    %261 = arith.maximumf %255, %223 : vector<16x128xf32>
    %262 = arith.maximumf %261, %260 : vector<16x128xf32>
    %c127_i32_102 = arith.constant 127 : i32
    %263 = tpu.dynamic_rotate %262 by %c127_i32_102 dim 1 : vector<16x128xf32>, i32 -> vector<16x128xf32>
    %cst_103 = arith.constant 0.000000e+00 : f32
    %264 = vector.shape_cast %67 : vector<1x128xi1> to vector<1x128xi1>
    %265 = vector.broadcast %264 : vector<1x128xi1> to vector<16x128xi1>
    %266 = vector.broadcast %cst_103 : f32 to vector<16x128xf32>
    %267 = arith.select %265, %266, %263 : vector<16x128xi1>, vector<16x128xf32>
    %c1_i32_104 = arith.constant 1 : i32
    %268 = tpu.dynamic_rotate %262 by %c1_i32_104 dim 1 : vector<16x128xf32>, i32 -> vector<16x128xf32>
    %cst_105 = arith.constant 0.000000e+00 : f32
    %269 = vector.shape_cast %69 : vector<1x128xi1> to vector<1x128xi1>
    %270 = vector.broadcast %269 : vector<1x128xi1> to vector<16x128xi1>
    %271 = vector.broadcast %cst_105 : f32 to vector<16x128xf32>
    %272 = arith.select %270, %271, %268 : vector<16x128xi1>, vector<16x128xf32>
    %273 = arith.maximumf %267, %262 : vector<16x128xf32>
    %274 = arith.maximumf %273, %272 : vector<16x128xf32>
    %275 = arith.subf %119, %274 : vector<16x128xf32>
    %276 = vector.broadcast %cst_72 : f32 to vector<16x128xf32>
    %277 = arith.maximumf %275, %276 : vector<16x128xf32>
    %278 = arith.addf %146, %250 : vector<16x128xf32>
    %279 = arith.mulf %146, %250 : vector<16x128xf32>
    %280 = arith.subf %278, %279 : vector<16x128xf32>
    %281 = arith.addf %173, %277 : vector<16x128xf32>
    %282 = arith.mulf %173, %277 : vector<16x128xf32>
    %283 = arith.subf %281, %282 : vector<16x128xf32>
    %c1_i32_106 = arith.constant 1 : i32
    %c15_i32_107 = arith.constant 15 : i32
    %284 = tpu.dynamic_rotate %198 by %c15_i32_107 dim 0 : vector<16x128xf32>, i32 -> vector<16x128xf32>
    %cst_108 = arith.constant 1.000000e+00 : f32
    %285 = vector.shape_cast %63 : vector<16x1xi1> to vector<16x1xi1>
    %286 = vector.broadcast %285 : vector<16x1xi1> to vector<16x128xi1>
    %287 = vector.broadcast %cst_108 : f32 to vector<16x128xf32>
    %288 = arith.select %286, %287, %284 : vector<16x128xi1>, vector<16x128xf32>
    %c1_i32_109 = arith.constant 1 : i32
    %289 = tpu.dynamic_rotate %198 by %c1_i32_109 dim 0 : vector<16x128xf32>, i32 -> vector<16x128xf32>
    %cst_110 = arith.constant 1.000000e+00 : f32
    %290 = vector.shape_cast %65 : vector<16x1xi1> to vector<16x1xi1>
    %291 = vector.broadcast %290 : vector<16x1xi1> to vector<16x128xi1>
    %292 = vector.broadcast %cst_110 : f32 to vector<16x128xf32>
    %293 = arith.select %291, %292, %289 : vector<16x128xi1>, vector<16x128xf32>
    %294 = arith.minimumf %288, %198 : vector<16x128xf32>
    %295 = arith.minimumf %294, %293 : vector<16x128xf32>
    %c127_i32_111 = arith.constant 127 : i32
    %296 = tpu.dynamic_rotate %198 by %c127_i32_111 dim 1 : vector<16x128xf32>, i32 -> vector<16x128xf32>
    %cst_112 = arith.constant 1.000000e+00 : f32
    %297 = vector.shape_cast %67 : vector<1x128xi1> to vector<1x128xi1>
    %298 = vector.broadcast %297 : vector<1x128xi1> to vector<16x128xi1>
    %299 = vector.broadcast %cst_112 : f32 to vector<16x128xf32>
    %300 = arith.select %298, %299, %296 : vector<16x128xi1>, vector<16x128xf32>
    %c1_i32_113 = arith.constant 1 : i32
    %301 = tpu.dynamic_rotate %198 by %c1_i32_113 dim 1 : vector<16x128xf32>, i32 -> vector<16x128xf32>
    %cst_114 = arith.constant 1.000000e+00 : f32
    %302 = vector.shape_cast %69 : vector<1x128xi1> to vector<1x128xi1>
    %303 = vector.broadcast %302 : vector<1x128xi1> to vector<16x128xi1>
    %304 = vector.broadcast %cst_114 : f32 to vector<16x128xf32>
    %305 = arith.select %303, %304, %301 : vector<16x128xi1>, vector<16x128xf32>
    %306 = arith.minimumf %300, %198 : vector<16x128xf32>
    %307 = arith.minimumf %306, %305 : vector<16x128xf32>
    %308 = arith.minimumf %295, %307 : vector<16x128xf32>
    %c15_i32_115 = arith.constant 15 : i32
    %309 = tpu.dynamic_rotate %223 by %c15_i32_115 dim 0 : vector<16x128xf32>, i32 -> vector<16x128xf32>
    %cst_116 = arith.constant 1.000000e+00 : f32
    %310 = vector.shape_cast %63 : vector<16x1xi1> to vector<16x1xi1>
    %311 = vector.broadcast %310 : vector<16x1xi1> to vector<16x128xi1>
    %312 = vector.broadcast %cst_116 : f32 to vector<16x128xf32>
    %313 = arith.select %311, %312, %309 : vector<16x128xi1>, vector<16x128xf32>
    %c1_i32_117 = arith.constant 1 : i32
    %314 = tpu.dynamic_rotate %223 by %c1_i32_117 dim 0 : vector<16x128xf32>, i32 -> vector<16x128xf32>
    %cst_118 = arith.constant 1.000000e+00 : f32
    %315 = vector.shape_cast %65 : vector<16x1xi1> to vector<16x1xi1>
    %316 = vector.broadcast %315 : vector<16x1xi1> to vector<16x128xi1>
    %317 = vector.broadcast %cst_118 : f32 to vector<16x128xf32>
    %318 = arith.select %316, %317, %314 : vector<16x128xi1>, vector<16x128xf32>
    %319 = arith.minimumf %313, %223 : vector<16x128xf32>
    %320 = arith.minimumf %319, %318 : vector<16x128xf32>
    %c127_i32_119 = arith.constant 127 : i32
    %321 = tpu.dynamic_rotate %223 by %c127_i32_119 dim 1 : vector<16x128xf32>, i32 -> vector<16x128xf32>
    %cst_120 = arith.constant 1.000000e+00 : f32
    %322 = vector.shape_cast %67 : vector<1x128xi1> to vector<1x128xi1>
    %323 = vector.broadcast %322 : vector<1x128xi1> to vector<16x128xi1>
    %324 = vector.broadcast %cst_120 : f32 to vector<16x128xf32>
    %325 = arith.select %323, %324, %321 : vector<16x128xi1>, vector<16x128xf32>
    %c1_i32_121 = arith.constant 1 : i32
    %326 = tpu.dynamic_rotate %223 by %c1_i32_121 dim 1 : vector<16x128xf32>, i32 -> vector<16x128xf32>
    %cst_122 = arith.constant 1.000000e+00 : f32
    %327 = vector.shape_cast %69 : vector<1x128xi1> to vector<1x128xi1>
    %328 = vector.broadcast %327 : vector<1x128xi1> to vector<16x128xi1>
    %329 = vector.broadcast %cst_122 : f32 to vector<16x128xf32>
    %330 = arith.select %328, %329, %326 : vector<16x128xi1>, vector<16x128xf32>
    %331 = arith.minimumf %325, %223 : vector<16x128xf32>
    %332 = arith.minimumf %331, %330 : vector<16x128xf32>
    %333 = arith.minimumf %320, %332 : vector<16x128xf32>
    %c15_i32_123 = arith.constant 15 : i32
    %334 = tpu.dynamic_rotate %308 by %c15_i32_123 dim 0 : vector<16x128xf32>, i32 -> vector<16x128xf32>
    %cst_124 = arith.constant 0.000000e+00 : f32
    %335 = vector.shape_cast %63 : vector<16x1xi1> to vector<16x1xi1>
    %336 = vector.broadcast %335 : vector<16x1xi1> to vector<16x128xi1>
    %337 = vector.broadcast %cst_124 : f32 to vector<16x128xf32>
    %338 = arith.select %336, %337, %334 : vector<16x128xi1>, vector<16x128xf32>
    %c1_i32_125 = arith.constant 1 : i32
    %339 = tpu.dynamic_rotate %308 by %c1_i32_125 dim 0 : vector<16x128xf32>, i32 -> vector<16x128xf32>
    %cst_126 = arith.constant 0.000000e+00 : f32
    %340 = vector.shape_cast %65 : vector<16x1xi1> to vector<16x1xi1>
    %341 = vector.broadcast %340 : vector<16x1xi1> to vector<16x128xi1>
    %342 = vector.broadcast %cst_126 : f32 to vector<16x128xf32>
    %343 = arith.select %341, %342, %339 : vector<16x128xi1>, vector<16x128xf32>
    %344 = arith.maximumf %338, %308 : vector<16x128xf32>
    %345 = arith.maximumf %344, %343 : vector<16x128xf32>
    %c127_i32_127 = arith.constant 127 : i32
    %346 = tpu.dynamic_rotate %345 by %c127_i32_127 dim 1 : vector<16x128xf32>, i32 -> vector<16x128xf32>
    %cst_128 = arith.constant 0.000000e+00 : f32
    %347 = vector.shape_cast %67 : vector<1x128xi1> to vector<1x128xi1>
    %348 = vector.broadcast %347 : vector<1x128xi1> to vector<16x128xi1>
    %349 = vector.broadcast %cst_128 : f32 to vector<16x128xf32>
    %350 = arith.select %348, %349, %346 : vector<16x128xi1>, vector<16x128xf32>
    %c1_i32_129 = arith.constant 1 : i32
    %351 = tpu.dynamic_rotate %345 by %c1_i32_129 dim 1 : vector<16x128xf32>, i32 -> vector<16x128xf32>
    %cst_130 = arith.constant 0.000000e+00 : f32
    %352 = vector.shape_cast %69 : vector<1x128xi1> to vector<1x128xi1>
    %353 = vector.broadcast %352 : vector<1x128xi1> to vector<16x128xi1>
    %354 = vector.broadcast %cst_130 : f32 to vector<16x128xf32>
    %355 = arith.select %353, %354, %351 : vector<16x128xi1>, vector<16x128xf32>
    %356 = arith.maximumf %350, %345 : vector<16x128xf32>
    %357 = arith.maximumf %356, %355 : vector<16x128xf32>
    %358 = arith.subf %198, %357 : vector<16x128xf32>
    %359 = vector.broadcast %cst_72 : f32 to vector<16x128xf32>
    %360 = arith.maximumf %358, %359 : vector<16x128xf32>
    %c15_i32_131 = arith.constant 15 : i32
    %361 = tpu.dynamic_rotate %333 by %c15_i32_131 dim 0 : vector<16x128xf32>, i32 -> vector<16x128xf32>
    %cst_132 = arith.constant 0.000000e+00 : f32
    %362 = vector.shape_cast %63 : vector<16x1xi1> to vector<16x1xi1>
    %363 = vector.broadcast %362 : vector<16x1xi1> to vector<16x128xi1>
    %364 = vector.broadcast %cst_132 : f32 to vector<16x128xf32>
    %365 = arith.select %363, %364, %361 : vector<16x128xi1>, vector<16x128xf32>
    %c1_i32_133 = arith.constant 1 : i32
    %366 = tpu.dynamic_rotate %333 by %c1_i32_133 dim 0 : vector<16x128xf32>, i32 -> vector<16x128xf32>
    %cst_134 = arith.constant 0.000000e+00 : f32
    %367 = vector.shape_cast %65 : vector<16x1xi1> to vector<16x1xi1>
    %368 = vector.broadcast %367 : vector<16x1xi1> to vector<16x128xi1>
    %369 = vector.broadcast %cst_134 : f32 to vector<16x128xf32>
    %370 = arith.select %368, %369, %366 : vector<16x128xi1>, vector<16x128xf32>
    %371 = arith.maximumf %365, %333 : vector<16x128xf32>
    %372 = arith.maximumf %371, %370 : vector<16x128xf32>
    %c127_i32_135 = arith.constant 127 : i32
    %373 = tpu.dynamic_rotate %372 by %c127_i32_135 dim 1 : vector<16x128xf32>, i32 -> vector<16x128xf32>
    %cst_136 = arith.constant 0.000000e+00 : f32
    %374 = vector.shape_cast %67 : vector<1x128xi1> to vector<1x128xi1>
    %375 = vector.broadcast %374 : vector<1x128xi1> to vector<16x128xi1>
    %376 = vector.broadcast %cst_136 : f32 to vector<16x128xf32>
    %377 = arith.select %375, %376, %373 : vector<16x128xi1>, vector<16x128xf32>
    %c1_i32_137 = arith.constant 1 : i32
    %378 = tpu.dynamic_rotate %372 by %c1_i32_137 dim 1 : vector<16x128xf32>, i32 -> vector<16x128xf32>
    %cst_138 = arith.constant 0.000000e+00 : f32
    %379 = vector.shape_cast %69 : vector<1x128xi1> to vector<1x128xi1>
    %380 = vector.broadcast %379 : vector<1x128xi1> to vector<16x128xi1>
    %381 = vector.broadcast %cst_138 : f32 to vector<16x128xf32>
    %382 = arith.select %380, %381, %378 : vector<16x128xi1>, vector<16x128xf32>
    %383 = arith.maximumf %377, %372 : vector<16x128xf32>
    %384 = arith.maximumf %383, %382 : vector<16x128xf32>
    %385 = arith.subf %223, %384 : vector<16x128xf32>
    %386 = vector.broadcast %cst_72 : f32 to vector<16x128xf32>
    %387 = arith.maximumf %385, %386 : vector<16x128xf32>
    %388 = arith.addf %280, %360 : vector<16x128xf32>
    %389 = arith.mulf %280, %360 : vector<16x128xf32>
    %390 = arith.subf %388, %389 : vector<16x128xf32>
    %391 = arith.addf %283, %387 : vector<16x128xf32>
    %392 = arith.mulf %283, %387 : vector<16x128xf32>
    %393 = arith.subf %391, %392 : vector<16x128xf32>
    %c2_i32_139 = arith.constant 2 : i32
    %c15_i32_140 = arith.constant 15 : i32
    %394 = tpu.dynamic_rotate %308 by %c15_i32_140 dim 0 : vector<16x128xf32>, i32 -> vector<16x128xf32>
    %cst_141 = arith.constant 1.000000e+00 : f32
    %395 = vector.shape_cast %63 : vector<16x1xi1> to vector<16x1xi1>
    %396 = vector.broadcast %395 : vector<16x1xi1> to vector<16x128xi1>
    %397 = vector.broadcast %cst_141 : f32 to vector<16x128xf32>
    %398 = arith.select %396, %397, %394 : vector<16x128xi1>, vector<16x128xf32>
    %c1_i32_142 = arith.constant 1 : i32
    %399 = tpu.dynamic_rotate %308 by %c1_i32_142 dim 0 : vector<16x128xf32>, i32 -> vector<16x128xf32>
    %cst_143 = arith.constant 1.000000e+00 : f32
    %400 = vector.shape_cast %65 : vector<16x1xi1> to vector<16x1xi1>
    %401 = vector.broadcast %400 : vector<16x1xi1> to vector<16x128xi1>
    %402 = vector.broadcast %cst_143 : f32 to vector<16x128xf32>
    %403 = arith.select %401, %402, %399 : vector<16x128xi1>, vector<16x128xf32>
    %404 = arith.minimumf %398, %308 : vector<16x128xf32>
    %405 = arith.minimumf %404, %403 : vector<16x128xf32>
    %c127_i32_144 = arith.constant 127 : i32
    %406 = tpu.dynamic_rotate %308 by %c127_i32_144 dim 1 : vector<16x128xf32>, i32 -> vector<16x128xf32>
    %cst_145 = arith.constant 1.000000e+00 : f32
    %407 = vector.shape_cast %67 : vector<1x128xi1> to vector<1x128xi1>
    %408 = vector.broadcast %407 : vector<1x128xi1> to vector<16x128xi1>
    %409 = vector.broadcast %cst_145 : f32 to vector<16x128xf32>
    %410 = arith.select %408, %409, %406 : vector<16x128xi1>, vector<16x128xf32>
    %c1_i32_146 = arith.constant 1 : i32
    %411 = tpu.dynamic_rotate %308 by %c1_i32_146 dim 1 : vector<16x128xf32>, i32 -> vector<16x128xf32>
    %cst_147 = arith.constant 1.000000e+00 : f32
    %412 = vector.shape_cast %69 : vector<1x128xi1> to vector<1x128xi1>
    %413 = vector.broadcast %412 : vector<1x128xi1> to vector<16x128xi1>
    %414 = vector.broadcast %cst_147 : f32 to vector<16x128xf32>
    %415 = arith.select %413, %414, %411 : vector<16x128xi1>, vector<16x128xf32>
    %416 = arith.minimumf %410, %308 : vector<16x128xf32>
    %417 = arith.minimumf %416, %415 : vector<16x128xf32>
    %418 = arith.minimumf %405, %417 : vector<16x128xf32>
    %c15_i32_148 = arith.constant 15 : i32
    %419 = tpu.dynamic_rotate %333 by %c15_i32_148 dim 0 : vector<16x128xf32>, i32 -> vector<16x128xf32>
    %cst_149 = arith.constant 1.000000e+00 : f32
    %420 = vector.shape_cast %63 : vector<16x1xi1> to vector<16x1xi1>
    %421 = vector.broadcast %420 : vector<16x1xi1> to vector<16x128xi1>
    %422 = vector.broadcast %cst_149 : f32 to vector<16x128xf32>
    %423 = arith.select %421, %422, %419 : vector<16x128xi1>, vector<16x128xf32>
    %c1_i32_150 = arith.constant 1 : i32
    %424 = tpu.dynamic_rotate %333 by %c1_i32_150 dim 0 : vector<16x128xf32>, i32 -> vector<16x128xf32>
    %cst_151 = arith.constant 1.000000e+00 : f32
    %425 = vector.shape_cast %65 : vector<16x1xi1> to vector<16x1xi1>
    %426 = vector.broadcast %425 : vector<16x1xi1> to vector<16x128xi1>
    %427 = vector.broadcast %cst_151 : f32 to vector<16x128xf32>
    %428 = arith.select %426, %427, %424 : vector<16x128xi1>, vector<16x128xf32>
    %429 = arith.minimumf %423, %333 : vector<16x128xf32>
    %430 = arith.minimumf %429, %428 : vector<16x128xf32>
    %c127_i32_152 = arith.constant 127 : i32
    %431 = tpu.dynamic_rotate %333 by %c127_i32_152 dim 1 : vector<16x128xf32>, i32 -> vector<16x128xf32>
    %cst_153 = arith.constant 1.000000e+00 : f32
    %432 = vector.shape_cast %67 : vector<1x128xi1> to vector<1x128xi1>
    %433 = vector.broadcast %432 : vector<1x128xi1> to vector<16x128xi1>
    %434 = vector.broadcast %cst_153 : f32 to vector<16x128xf32>
    %435 = arith.select %433, %434, %431 : vector<16x128xi1>, vector<16x128xf32>
    %c1_i32_154 = arith.constant 1 : i32
    %436 = tpu.dynamic_rotate %333 by %c1_i32_154 dim 1 : vector<16x128xf32>, i32 -> vector<16x128xf32>
    %cst_155 = arith.constant 1.000000e+00 : f32
    %437 = vector.shape_cast %69 : vector<1x128xi1> to vector<1x128xi1>
    %438 = vector.broadcast %437 : vector<1x128xi1> to vector<16x128xi1>
    %439 = vector.broadcast %cst_155 : f32 to vector<16x128xf32>
    %440 = arith.select %438, %439, %436 : vector<16x128xi1>, vector<16x128xf32>
    %441 = arith.minimumf %435, %333 : vector<16x128xf32>
    %442 = arith.minimumf %441, %440 : vector<16x128xf32>
    %443 = arith.minimumf %430, %442 : vector<16x128xf32>
    %c15_i32_156 = arith.constant 15 : i32
    %444 = tpu.dynamic_rotate %418 by %c15_i32_156 dim 0 : vector<16x128xf32>, i32 -> vector<16x128xf32>
    %cst_157 = arith.constant 0.000000e+00 : f32
    %445 = vector.shape_cast %63 : vector<16x1xi1> to vector<16x1xi1>
    %446 = vector.broadcast %445 : vector<16x1xi1> to vector<16x128xi1>
    %447 = vector.broadcast %cst_157 : f32 to vector<16x128xf32>
    %448 = arith.select %446, %447, %444 : vector<16x128xi1>, vector<16x128xf32>
    %c1_i32_158 = arith.constant 1 : i32
    %449 = tpu.dynamic_rotate %418 by %c1_i32_158 dim 0 : vector<16x128xf32>, i32 -> vector<16x128xf32>
    %cst_159 = arith.constant 0.000000e+00 : f32
    %450 = vector.shape_cast %65 : vector<16x1xi1> to vector<16x1xi1>
    %451 = vector.broadcast %450 : vector<16x1xi1> to vector<16x128xi1>
    %452 = vector.broadcast %cst_159 : f32 to vector<16x128xf32>
    %453 = arith.select %451, %452, %449 : vector<16x128xi1>, vector<16x128xf32>
    %454 = arith.maximumf %448, %418 : vector<16x128xf32>
    %455 = arith.maximumf %454, %453 : vector<16x128xf32>
    %c127_i32_160 = arith.constant 127 : i32
    %456 = tpu.dynamic_rotate %455 by %c127_i32_160 dim 1 : vector<16x128xf32>, i32 -> vector<16x128xf32>
    %cst_161 = arith.constant 0.000000e+00 : f32
    %457 = vector.shape_cast %67 : vector<1x128xi1> to vector<1x128xi1>
    %458 = vector.broadcast %457 : vector<1x128xi1> to vector<16x128xi1>
    %459 = vector.broadcast %cst_161 : f32 to vector<16x128xf32>
    %460 = arith.select %458, %459, %456 : vector<16x128xi1>, vector<16x128xf32>
    %c1_i32_162 = arith.constant 1 : i32
    %461 = tpu.dynamic_rotate %455 by %c1_i32_162 dim 1 : vector<16x128xf32>, i32 -> vector<16x128xf32>
    %cst_163 = arith.constant 0.000000e+00 : f32
    %462 = vector.shape_cast %69 : vector<1x128xi1> to vector<1x128xi1>
    %463 = vector.broadcast %462 : vector<1x128xi1> to vector<16x128xi1>
    %464 = vector.broadcast %cst_163 : f32 to vector<16x128xf32>
    %465 = arith.select %463, %464, %461 : vector<16x128xi1>, vector<16x128xf32>
    %466 = arith.maximumf %460, %455 : vector<16x128xf32>
    %467 = arith.maximumf %466, %465 : vector<16x128xf32>
    %468 = arith.subf %308, %467 : vector<16x128xf32>
    %469 = vector.broadcast %cst_72 : f32 to vector<16x128xf32>
    %470 = arith.maximumf %468, %469 : vector<16x128xf32>
    %c15_i32_164 = arith.constant 15 : i32
    %471 = tpu.dynamic_rotate %443 by %c15_i32_164 dim 0 : vector<16x128xf32>, i32 -> vector<16x128xf32>
    %cst_165 = arith.constant 0.000000e+00 : f32
    %472 = vector.shape_cast %63 : vector<16x1xi1> to vector<16x1xi1>
    %473 = vector.broadcast %472 : vector<16x1xi1> to vector<16x128xi1>
    %474 = vector.broadcast %cst_165 : f32 to vector<16x128xf32>
    %475 = arith.select %473, %474, %471 : vector<16x128xi1>, vector<16x128xf32>
    %c1_i32_166 = arith.constant 1 : i32
    %476 = tpu.dynamic_rotate %443 by %c1_i32_166 dim 0 : vector<16x128xf32>, i32 -> vector<16x128xf32>
    %cst_167 = arith.constant 0.000000e+00 : f32
    %477 = vector.shape_cast %65 : vector<16x1xi1> to vector<16x1xi1>
    %478 = vector.broadcast %477 : vector<16x1xi1> to vector<16x128xi1>
    %479 = vector.broadcast %cst_167 : f32 to vector<16x128xf32>
    %480 = arith.select %478, %479, %476 : vector<16x128xi1>, vector<16x128xf32>
    %481 = arith.maximumf %475, %443 : vector<16x128xf32>
    %482 = arith.maximumf %481, %480 : vector<16x128xf32>
    %c127_i32_168 = arith.constant 127 : i32
    %483 = tpu.dynamic_rotate %482 by %c127_i32_168 dim 1 : vector<16x128xf32>, i32 -> vector<16x128xf32>
    %cst_169 = arith.constant 0.000000e+00 : f32
    %484 = vector.shape_cast %67 : vector<1x128xi1> to vector<1x128xi1>
    %485 = vector.broadcast %484 : vector<1x128xi1> to vector<16x128xi1>
    %486 = vector.broadcast %cst_169 : f32 to vector<16x128xf32>
    %487 = arith.select %485, %486, %483 : vector<16x128xi1>, vector<16x128xf32>
    %c1_i32_170 = arith.constant 1 : i32
    %488 = tpu.dynamic_rotate %482 by %c1_i32_170 dim 1 : vector<16x128xf32>, i32 -> vector<16x128xf32>
    %cst_171 = arith.constant 0.000000e+00 : f32
    %489 = vector.shape_cast %69 : vector<1x128xi1> to vector<1x128xi1>
    %490 = vector.broadcast %489 : vector<1x128xi1> to vector<16x128xi1>
    %491 = vector.broadcast %cst_171 : f32 to vector<16x128xf32>
    %492 = arith.select %490, %491, %488 : vector<16x128xi1>, vector<16x128xf32>
    %493 = arith.maximumf %487, %482 : vector<16x128xf32>
    %494 = arith.maximumf %493, %492 : vector<16x128xf32>
    %495 = arith.subf %333, %494 : vector<16x128xf32>
    %496 = vector.broadcast %cst_72 : f32 to vector<16x128xf32>
    %497 = arith.maximumf %495, %496 : vector<16x128xf32>
    %498 = arith.addf %390, %470 : vector<16x128xf32>
    %499 = arith.mulf %390, %470 : vector<16x128xf32>
    %500 = arith.subf %498, %499 : vector<16x128xf32>
    %501 = arith.addf %393, %497 : vector<16x128xf32>
    %502 = arith.mulf %393, %497 : vector<16x128xf32>
    %503 = arith.subf %501, %502 : vector<16x128xf32>
    %c3_i32_172 = arith.constant 3 : i32
    %c15_i32_173 = arith.constant 15 : i32
    %504 = tpu.dynamic_rotate %418 by %c15_i32_173 dim 0 : vector<16x128xf32>, i32 -> vector<16x128xf32>
    %cst_174 = arith.constant 1.000000e+00 : f32
    %505 = vector.shape_cast %63 : vector<16x1xi1> to vector<16x1xi1>
    %506 = vector.broadcast %505 : vector<16x1xi1> to vector<16x128xi1>
    %507 = vector.broadcast %cst_174 : f32 to vector<16x128xf32>
    %508 = arith.select %506, %507, %504 : vector<16x128xi1>, vector<16x128xf32>
    %c1_i32_175 = arith.constant 1 : i32
    %509 = tpu.dynamic_rotate %418 by %c1_i32_175 dim 0 : vector<16x128xf32>, i32 -> vector<16x128xf32>
    %cst_176 = arith.constant 1.000000e+00 : f32
    %510 = vector.shape_cast %65 : vector<16x1xi1> to vector<16x1xi1>
    %511 = vector.broadcast %510 : vector<16x1xi1> to vector<16x128xi1>
    %512 = vector.broadcast %cst_176 : f32 to vector<16x128xf32>
    %513 = arith.select %511, %512, %509 : vector<16x128xi1>, vector<16x128xf32>
    %514 = arith.minimumf %508, %418 : vector<16x128xf32>
    %515 = arith.minimumf %514, %513 : vector<16x128xf32>
    %c127_i32_177 = arith.constant 127 : i32
    %516 = tpu.dynamic_rotate %418 by %c127_i32_177 dim 1 : vector<16x128xf32>, i32 -> vector<16x128xf32>
    %cst_178 = arith.constant 1.000000e+00 : f32
    %517 = vector.shape_cast %67 : vector<1x128xi1> to vector<1x128xi1>
    %518 = vector.broadcast %517 : vector<1x128xi1> to vector<16x128xi1>
    %519 = vector.broadcast %cst_178 : f32 to vector<16x128xf32>
    %520 = arith.select %518, %519, %516 : vector<16x128xi1>, vector<16x128xf32>
    %c1_i32_179 = arith.constant 1 : i32
    %521 = tpu.dynamic_rotate %418 by %c1_i32_179 dim 1 : vector<16x128xf32>, i32 -> vector<16x128xf32>
    %cst_180 = arith.constant 1.000000e+00 : f32
    %522 = vector.shape_cast %69 : vector<1x128xi1> to vector<1x128xi1>
    %523 = vector.broadcast %522 : vector<1x128xi1> to vector<16x128xi1>
    %524 = vector.broadcast %cst_180 : f32 to vector<16x128xf32>
    %525 = arith.select %523, %524, %521 : vector<16x128xi1>, vector<16x128xf32>
    %526 = arith.minimumf %520, %418 : vector<16x128xf32>
    %527 = arith.minimumf %526, %525 : vector<16x128xf32>
    %528 = arith.minimumf %515, %527 : vector<16x128xf32>
    %c15_i32_181 = arith.constant 15 : i32
    %529 = tpu.dynamic_rotate %443 by %c15_i32_181 dim 0 : vector<16x128xf32>, i32 -> vector<16x128xf32>
    %cst_182 = arith.constant 1.000000e+00 : f32
    %530 = vector.shape_cast %63 : vector<16x1xi1> to vector<16x1xi1>
    %531 = vector.broadcast %530 : vector<16x1xi1> to vector<16x128xi1>
    %532 = vector.broadcast %cst_182 : f32 to vector<16x128xf32>
    %533 = arith.select %531, %532, %529 : vector<16x128xi1>, vector<16x128xf32>
    %c1_i32_183 = arith.constant 1 : i32
    %534 = tpu.dynamic_rotate %443 by %c1_i32_183 dim 0 : vector<16x128xf32>, i32 -> vector<16x128xf32>
    %cst_184 = arith.constant 1.000000e+00 : f32
    %535 = vector.shape_cast %65 : vector<16x1xi1> to vector<16x1xi1>
    %536 = vector.broadcast %535 : vector<16x1xi1> to vector<16x128xi1>
    %537 = vector.broadcast %cst_184 : f32 to vector<16x128xf32>
    %538 = arith.select %536, %537, %534 : vector<16x128xi1>, vector<16x128xf32>
    %539 = arith.minimumf %533, %443 : vector<16x128xf32>
    %540 = arith.minimumf %539, %538 : vector<16x128xf32>
    %c127_i32_185 = arith.constant 127 : i32
    %541 = tpu.dynamic_rotate %443 by %c127_i32_185 dim 1 : vector<16x128xf32>, i32 -> vector<16x128xf32>
    %cst_186 = arith.constant 1.000000e+00 : f32
    %542 = vector.shape_cast %67 : vector<1x128xi1> to vector<1x128xi1>
    %543 = vector.broadcast %542 : vector<1x128xi1> to vector<16x128xi1>
    %544 = vector.broadcast %cst_186 : f32 to vector<16x128xf32>
    %545 = arith.select %543, %544, %541 : vector<16x128xi1>, vector<16x128xf32>
    %c1_i32_187 = arith.constant 1 : i32
    %546 = tpu.dynamic_rotate %443 by %c1_i32_187 dim 1 : vector<16x128xf32>, i32 -> vector<16x128xf32>
    %cst_188 = arith.constant 1.000000e+00 : f32
    %547 = vector.shape_cast %69 : vector<1x128xi1> to vector<1x128xi1>
    %548 = vector.broadcast %547 : vector<1x128xi1> to vector<16x128xi1>
    %549 = vector.broadcast %cst_188 : f32 to vector<16x128xf32>
    %550 = arith.select %548, %549, %546 : vector<16x128xi1>, vector<16x128xf32>
    %551 = arith.minimumf %545, %443 : vector<16x128xf32>
    %552 = arith.minimumf %551, %550 : vector<16x128xf32>
    %553 = arith.minimumf %540, %552 : vector<16x128xf32>
    %c15_i32_189 = arith.constant 15 : i32
    %554 = tpu.dynamic_rotate %528 by %c15_i32_189 dim 0 : vector<16x128xf32>, i32 -> vector<16x128xf32>
    %cst_190 = arith.constant 0.000000e+00 : f32
    %555 = vector.shape_cast %63 : vector<16x1xi1> to vector<16x1xi1>
    %556 = vector.broadcast %555 : vector<16x1xi1> to vector<16x128xi1>
    %557 = vector.broadcast %cst_190 : f32 to vector<16x128xf32>
    %558 = arith.select %556, %557, %554 : vector<16x128xi1>, vector<16x128xf32>
    %c1_i32_191 = arith.constant 1 : i32
    %559 = tpu.dynamic_rotate %528 by %c1_i32_191 dim 0 : vector<16x128xf32>, i32 -> vector<16x128xf32>
    %cst_192 = arith.constant 0.000000e+00 : f32
    %560 = vector.shape_cast %65 : vector<16x1xi1> to vector<16x1xi1>
    %561 = vector.broadcast %560 : vector<16x1xi1> to vector<16x128xi1>
    %562 = vector.broadcast %cst_192 : f32 to vector<16x128xf32>
    %563 = arith.select %561, %562, %559 : vector<16x128xi1>, vector<16x128xf32>
    %564 = arith.maximumf %558, %528 : vector<16x128xf32>
    %565 = arith.maximumf %564, %563 : vector<16x128xf32>
    %c127_i32_193 = arith.constant 127 : i32
    %566 = tpu.dynamic_rotate %565 by %c127_i32_193 dim 1 : vector<16x128xf32>, i32 -> vector<16x128xf32>
    %cst_194 = arith.constant 0.000000e+00 : f32
    %567 = vector.shape_cast %67 : vector<1x128xi1> to vector<1x128xi1>
    %568 = vector.broadcast %567 : vector<1x128xi1> to vector<16x128xi1>
    %569 = vector.broadcast %cst_194 : f32 to vector<16x128xf32>
    %570 = arith.select %568, %569, %566 : vector<16x128xi1>, vector<16x128xf32>
    %c1_i32_195 = arith.constant 1 : i32
    %571 = tpu.dynamic_rotate %565 by %c1_i32_195 dim 1 : vector<16x128xf32>, i32 -> vector<16x128xf32>
    %cst_196 = arith.constant 0.000000e+00 : f32
    %572 = vector.shape_cast %69 : vector<1x128xi1> to vector<1x128xi1>
    %573 = vector.broadcast %572 : vector<1x128xi1> to vector<16x128xi1>
    %574 = vector.broadcast %cst_196 : f32 to vector<16x128xf32>
    %575 = arith.select %573, %574, %571 : vector<16x128xi1>, vector<16x128xf32>
    %576 = arith.maximumf %570, %565 : vector<16x128xf32>
    %577 = arith.maximumf %576, %575 : vector<16x128xf32>
    %578 = arith.subf %418, %577 : vector<16x128xf32>
    %579 = vector.broadcast %cst_72 : f32 to vector<16x128xf32>
    %580 = arith.maximumf %578, %579 : vector<16x128xf32>
    %c15_i32_197 = arith.constant 15 : i32
    %581 = tpu.dynamic_rotate %553 by %c15_i32_197 dim 0 : vector<16x128xf32>, i32 -> vector<16x128xf32>
    %cst_198 = arith.constant 0.000000e+00 : f32
    %582 = vector.shape_cast %63 : vector<16x1xi1> to vector<16x1xi1>
    %583 = vector.broadcast %582 : vector<16x1xi1> to vector<16x128xi1>
    %584 = vector.broadcast %cst_198 : f32 to vector<16x128xf32>
    %585 = arith.select %583, %584, %581 : vector<16x128xi1>, vector<16x128xf32>
    %c1_i32_199 = arith.constant 1 : i32
    %586 = tpu.dynamic_rotate %553 by %c1_i32_199 dim 0 : vector<16x128xf32>, i32 -> vector<16x128xf32>
    %cst_200 = arith.constant 0.000000e+00 : f32
    %587 = vector.shape_cast %65 : vector<16x1xi1> to vector<16x1xi1>
    %588 = vector.broadcast %587 : vector<16x1xi1> to vector<16x128xi1>
    %589 = vector.broadcast %cst_200 : f32 to vector<16x128xf32>
    %590 = arith.select %588, %589, %586 : vector<16x128xi1>, vector<16x128xf32>
    %591 = arith.maximumf %585, %553 : vector<16x128xf32>
    %592 = arith.maximumf %591, %590 : vector<16x128xf32>
    %c127_i32_201 = arith.constant 127 : i32
    %593 = tpu.dynamic_rotate %592 by %c127_i32_201 dim 1 : vector<16x128xf32>, i32 -> vector<16x128xf32>
    %cst_202 = arith.constant 0.000000e+00 : f32
    %594 = vector.shape_cast %67 : vector<1x128xi1> to vector<1x128xi1>
    %595 = vector.broadcast %594 : vector<1x128xi1> to vector<16x128xi1>
    %596 = vector.broadcast %cst_202 : f32 to vector<16x128xf32>
    %597 = arith.select %595, %596, %593 : vector<16x128xi1>, vector<16x128xf32>
    %c1_i32_203 = arith.constant 1 : i32
    %598 = tpu.dynamic_rotate %592 by %c1_i32_203 dim 1 : vector<16x128xf32>, i32 -> vector<16x128xf32>
    %cst_204 = arith.constant 0.000000e+00 : f32
    %599 = vector.shape_cast %69 : vector<1x128xi1> to vector<1x128xi1>
    %600 = vector.broadcast %599 : vector<1x128xi1> to vector<16x128xi1>
    %601 = vector.broadcast %cst_204 : f32 to vector<16x128xf32>
    %602 = arith.select %600, %601, %598 : vector<16x128xi1>, vector<16x128xf32>
    %603 = arith.maximumf %597, %592 : vector<16x128xf32>
    %604 = arith.maximumf %603, %602 : vector<16x128xf32>
    %605 = arith.subf %443, %604 : vector<16x128xf32>
    %606 = vector.broadcast %cst_72 : f32 to vector<16x128xf32>
    %607 = arith.maximumf %605, %606 : vector<16x128xf32>
    %608 = arith.addf %500, %580 : vector<16x128xf32>
    %609 = arith.mulf %500, %580 : vector<16x128xf32>
    %610 = arith.subf %608, %609 : vector<16x128xf32>
    %611 = arith.addf %503, %607 : vector<16x128xf32>
    %612 = arith.mulf %503, %607 : vector<16x128xf32>
    %613 = arith.subf %611, %612 : vector<16x128xf32>
    %c4_i32 = arith.constant 4 : i32
    %c15_i32_205 = arith.constant 15 : i32
    %614 = tpu.dynamic_rotate %528 by %c15_i32_205 dim 0 : vector<16x128xf32>, i32 -> vector<16x128xf32>
    %cst_206 = arith.constant 1.000000e+00 : f32
    %615 = vector.shape_cast %63 : vector<16x1xi1> to vector<16x1xi1>
    %616 = vector.broadcast %615 : vector<16x1xi1> to vector<16x128xi1>
    %617 = vector.broadcast %cst_206 : f32 to vector<16x128xf32>
    %618 = arith.select %616, %617, %614 : vector<16x128xi1>, vector<16x128xf32>
    %c1_i32_207 = arith.constant 1 : i32
    %619 = tpu.dynamic_rotate %528 by %c1_i32_207 dim 0 : vector<16x128xf32>, i32 -> vector<16x128xf32>
    %cst_208 = arith.constant 1.000000e+00 : f32
    %620 = vector.shape_cast %65 : vector<16x1xi1> to vector<16x1xi1>
    %621 = vector.broadcast %620 : vector<16x1xi1> to vector<16x128xi1>
    %622 = vector.broadcast %cst_208 : f32 to vector<16x128xf32>
    %623 = arith.select %621, %622, %619 : vector<16x128xi1>, vector<16x128xf32>
    %624 = arith.minimumf %618, %528 : vector<16x128xf32>
    %625 = arith.minimumf %624, %623 : vector<16x128xf32>
    %c127_i32_209 = arith.constant 127 : i32
    %626 = tpu.dynamic_rotate %528 by %c127_i32_209 dim 1 : vector<16x128xf32>, i32 -> vector<16x128xf32>
    %cst_210 = arith.constant 1.000000e+00 : f32
    %627 = vector.shape_cast %67 : vector<1x128xi1> to vector<1x128xi1>
    %628 = vector.broadcast %627 : vector<1x128xi1> to vector<16x128xi1>
    %629 = vector.broadcast %cst_210 : f32 to vector<16x128xf32>
    %630 = arith.select %628, %629, %626 : vector<16x128xi1>, vector<16x128xf32>
    %c1_i32_211 = arith.constant 1 : i32
    %631 = tpu.dynamic_rotate %528 by %c1_i32_211 dim 1 : vector<16x128xf32>, i32 -> vector<16x128xf32>
    %cst_212 = arith.constant 1.000000e+00 : f32
    %632 = vector.shape_cast %69 : vector<1x128xi1> to vector<1x128xi1>
    %633 = vector.broadcast %632 : vector<1x128xi1> to vector<16x128xi1>
    %634 = vector.broadcast %cst_212 : f32 to vector<16x128xf32>
    %635 = arith.select %633, %634, %631 : vector<16x128xi1>, vector<16x128xf32>
    %636 = arith.minimumf %630, %528 : vector<16x128xf32>
    %637 = arith.minimumf %636, %635 : vector<16x128xf32>
    %638 = arith.minimumf %625, %637 : vector<16x128xf32>
    %c15_i32_213 = arith.constant 15 : i32
    %639 = tpu.dynamic_rotate %553 by %c15_i32_213 dim 0 : vector<16x128xf32>, i32 -> vector<16x128xf32>
    %cst_214 = arith.constant 1.000000e+00 : f32
    %640 = vector.shape_cast %63 : vector<16x1xi1> to vector<16x1xi1>
    %641 = vector.broadcast %640 : vector<16x1xi1> to vector<16x128xi1>
    %642 = vector.broadcast %cst_214 : f32 to vector<16x128xf32>
    %643 = arith.select %641, %642, %639 : vector<16x128xi1>, vector<16x128xf32>
    %c1_i32_215 = arith.constant 1 : i32
    %644 = tpu.dynamic_rotate %553 by %c1_i32_215 dim 0 : vector<16x128xf32>, i32 -> vector<16x128xf32>
    %cst_216 = arith.constant 1.000000e+00 : f32
    %645 = vector.shape_cast %65 : vector<16x1xi1> to vector<16x1xi1>
    %646 = vector.broadcast %645 : vector<16x1xi1> to vector<16x128xi1>
    %647 = vector.broadcast %cst_216 : f32 to vector<16x128xf32>
    %648 = arith.select %646, %647, %644 : vector<16x128xi1>, vector<16x128xf32>
    %649 = arith.minimumf %643, %553 : vector<16x128xf32>
    %650 = arith.minimumf %649, %648 : vector<16x128xf32>
    %c127_i32_217 = arith.constant 127 : i32
    %651 = tpu.dynamic_rotate %553 by %c127_i32_217 dim 1 : vector<16x128xf32>, i32 -> vector<16x128xf32>
    %cst_218 = arith.constant 1.000000e+00 : f32
    %652 = vector.shape_cast %67 : vector<1x128xi1> to vector<1x128xi1>
    %653 = vector.broadcast %652 : vector<1x128xi1> to vector<16x128xi1>
    %654 = vector.broadcast %cst_218 : f32 to vector<16x128xf32>
    %655 = arith.select %653, %654, %651 : vector<16x128xi1>, vector<16x128xf32>
    %c1_i32_219 = arith.constant 1 : i32
    %656 = tpu.dynamic_rotate %553 by %c1_i32_219 dim 1 : vector<16x128xf32>, i32 -> vector<16x128xf32>
    %cst_220 = arith.constant 1.000000e+00 : f32
    %657 = vector.shape_cast %69 : vector<1x128xi1> to vector<1x128xi1>
    %658 = vector.broadcast %657 : vector<1x128xi1> to vector<16x128xi1>
    %659 = vector.broadcast %cst_220 : f32 to vector<16x128xf32>
    %660 = arith.select %658, %659, %656 : vector<16x128xi1>, vector<16x128xf32>
    %661 = arith.minimumf %655, %553 : vector<16x128xf32>
    %662 = arith.minimumf %661, %660 : vector<16x128xf32>
    %663 = arith.minimumf %650, %662 : vector<16x128xf32>
    %c15_i32_221 = arith.constant 15 : i32
    %664 = tpu.dynamic_rotate %638 by %c15_i32_221 dim 0 : vector<16x128xf32>, i32 -> vector<16x128xf32>
    %cst_222 = arith.constant 0.000000e+00 : f32
    %665 = vector.shape_cast %63 : vector<16x1xi1> to vector<16x1xi1>
    %666 = vector.broadcast %665 : vector<16x1xi1> to vector<16x128xi1>
    %667 = vector.broadcast %cst_222 : f32 to vector<16x128xf32>
    %668 = arith.select %666, %667, %664 : vector<16x128xi1>, vector<16x128xf32>
    %c1_i32_223 = arith.constant 1 : i32
    %669 = tpu.dynamic_rotate %638 by %c1_i32_223 dim 0 : vector<16x128xf32>, i32 -> vector<16x128xf32>
    %cst_224 = arith.constant 0.000000e+00 : f32
    %670 = vector.shape_cast %65 : vector<16x1xi1> to vector<16x1xi1>
    %671 = vector.broadcast %670 : vector<16x1xi1> to vector<16x128xi1>
    %672 = vector.broadcast %cst_224 : f32 to vector<16x128xf32>
    %673 = arith.select %671, %672, %669 : vector<16x128xi1>, vector<16x128xf32>
    %674 = arith.maximumf %668, %638 : vector<16x128xf32>
    %675 = arith.maximumf %674, %673 : vector<16x128xf32>
    %c127_i32_225 = arith.constant 127 : i32
    %676 = tpu.dynamic_rotate %675 by %c127_i32_225 dim 1 : vector<16x128xf32>, i32 -> vector<16x128xf32>
    %cst_226 = arith.constant 0.000000e+00 : f32
    %677 = vector.shape_cast %67 : vector<1x128xi1> to vector<1x128xi1>
    %678 = vector.broadcast %677 : vector<1x128xi1> to vector<16x128xi1>
    %679 = vector.broadcast %cst_226 : f32 to vector<16x128xf32>
    %680 = arith.select %678, %679, %676 : vector<16x128xi1>, vector<16x128xf32>
    %c1_i32_227 = arith.constant 1 : i32
    %681 = tpu.dynamic_rotate %675 by %c1_i32_227 dim 1 : vector<16x128xf32>, i32 -> vector<16x128xf32>
    %cst_228 = arith.constant 0.000000e+00 : f32
    %682 = vector.shape_cast %69 : vector<1x128xi1> to vector<1x128xi1>
    %683 = vector.broadcast %682 : vector<1x128xi1> to vector<16x128xi1>
    %684 = vector.broadcast %cst_228 : f32 to vector<16x128xf32>
    %685 = arith.select %683, %684, %681 : vector<16x128xi1>, vector<16x128xf32>
    %686 = arith.maximumf %680, %675 : vector<16x128xf32>
    %687 = arith.maximumf %686, %685 : vector<16x128xf32>
    %688 = arith.subf %528, %687 : vector<16x128xf32>
    %689 = vector.broadcast %cst_72 : f32 to vector<16x128xf32>
    %690 = arith.maximumf %688, %689 : vector<16x128xf32>
    %c15_i32_229 = arith.constant 15 : i32
    %691 = tpu.dynamic_rotate %663 by %c15_i32_229 dim 0 : vector<16x128xf32>, i32 -> vector<16x128xf32>
    %cst_230 = arith.constant 0.000000e+00 : f32
    %692 = vector.shape_cast %63 : vector<16x1xi1> to vector<16x1xi1>
    %693 = vector.broadcast %692 : vector<16x1xi1> to vector<16x128xi1>
    %694 = vector.broadcast %cst_230 : f32 to vector<16x128xf32>
    %695 = arith.select %693, %694, %691 : vector<16x128xi1>, vector<16x128xf32>
    %c1_i32_231 = arith.constant 1 : i32
    %696 = tpu.dynamic_rotate %663 by %c1_i32_231 dim 0 : vector<16x128xf32>, i32 -> vector<16x128xf32>
    %cst_232 = arith.constant 0.000000e+00 : f32
    %697 = vector.shape_cast %65 : vector<16x1xi1> to vector<16x1xi1>
    %698 = vector.broadcast %697 : vector<16x1xi1> to vector<16x128xi1>
    %699 = vector.broadcast %cst_232 : f32 to vector<16x128xf32>
    %700 = arith.select %698, %699, %696 : vector<16x128xi1>, vector<16x128xf32>
    %701 = arith.maximumf %695, %663 : vector<16x128xf32>
    %702 = arith.maximumf %701, %700 : vector<16x128xf32>
    %c127_i32_233 = arith.constant 127 : i32
    %703 = tpu.dynamic_rotate %702 by %c127_i32_233 dim 1 : vector<16x128xf32>, i32 -> vector<16x128xf32>
    %cst_234 = arith.constant 0.000000e+00 : f32
    %704 = vector.shape_cast %67 : vector<1x128xi1> to vector<1x128xi1>
    %705 = vector.broadcast %704 : vector<1x128xi1> to vector<16x128xi1>
    %706 = vector.broadcast %cst_234 : f32 to vector<16x128xf32>
    %707 = arith.select %705, %706, %703 : vector<16x128xi1>, vector<16x128xf32>
    %c1_i32_235 = arith.constant 1 : i32
    %708 = tpu.dynamic_rotate %702 by %c1_i32_235 dim 1 : vector<16x128xf32>, i32 -> vector<16x128xf32>
    %cst_236 = arith.constant 0.000000e+00 : f32
    %709 = vector.shape_cast %69 : vector<1x128xi1> to vector<1x128xi1>
    %710 = vector.broadcast %709 : vector<1x128xi1> to vector<16x128xi1>
    %711 = vector.broadcast %cst_236 : f32 to vector<16x128xf32>
    %712 = arith.select %710, %711, %708 : vector<16x128xi1>, vector<16x128xf32>
    %713 = arith.maximumf %707, %702 : vector<16x128xf32>
    %714 = arith.maximumf %713, %712 : vector<16x128xf32>
    %715 = arith.subf %553, %714 : vector<16x128xf32>
    %716 = vector.broadcast %cst_72 : f32 to vector<16x128xf32>
    %717 = arith.maximumf %715, %716 : vector<16x128xf32>
    %718 = arith.addf %610, %690 : vector<16x128xf32>
    %719 = arith.mulf %610, %690 : vector<16x128xf32>
    %720 = arith.subf %718, %719 : vector<16x128xf32>
    %721 = arith.addf %613, %717 : vector<16x128xf32>
    %722 = arith.mulf %613, %717 : vector<16x128xf32>
    %723 = arith.subf %721, %722 : vector<16x128xf32>
    %c5_i32 = arith.constant 5 : i32
    %c15_i32_237 = arith.constant 15 : i32
    %724 = tpu.dynamic_rotate %638 by %c15_i32_237 dim 0 : vector<16x128xf32>, i32 -> vector<16x128xf32>
    %cst_238 = arith.constant 1.000000e+00 : f32
    %725 = vector.shape_cast %63 : vector<16x1xi1> to vector<16x1xi1>
    %726 = vector.broadcast %725 : vector<16x1xi1> to vector<16x128xi1>
    %727 = vector.broadcast %cst_238 : f32 to vector<16x128xf32>
    %728 = arith.select %726, %727, %724 : vector<16x128xi1>, vector<16x128xf32>
    %c1_i32_239 = arith.constant 1 : i32
    %729 = tpu.dynamic_rotate %638 by %c1_i32_239 dim 0 : vector<16x128xf32>, i32 -> vector<16x128xf32>
    %cst_240 = arith.constant 1.000000e+00 : f32
    %730 = vector.shape_cast %65 : vector<16x1xi1> to vector<16x1xi1>
    %731 = vector.broadcast %730 : vector<16x1xi1> to vector<16x128xi1>
    %732 = vector.broadcast %cst_240 : f32 to vector<16x128xf32>
    %733 = arith.select %731, %732, %729 : vector<16x128xi1>, vector<16x128xf32>
    %734 = arith.minimumf %728, %638 : vector<16x128xf32>
    %735 = arith.minimumf %734, %733 : vector<16x128xf32>
    %c127_i32_241 = arith.constant 127 : i32
    %736 = tpu.dynamic_rotate %638 by %c127_i32_241 dim 1 : vector<16x128xf32>, i32 -> vector<16x128xf32>
    %cst_242 = arith.constant 1.000000e+00 : f32
    %737 = vector.shape_cast %67 : vector<1x128xi1> to vector<1x128xi1>
    %738 = vector.broadcast %737 : vector<1x128xi1> to vector<16x128xi1>
    %739 = vector.broadcast %cst_242 : f32 to vector<16x128xf32>
    %740 = arith.select %738, %739, %736 : vector<16x128xi1>, vector<16x128xf32>
    %c1_i32_243 = arith.constant 1 : i32
    %741 = tpu.dynamic_rotate %638 by %c1_i32_243 dim 1 : vector<16x128xf32>, i32 -> vector<16x128xf32>
    %cst_244 = arith.constant 1.000000e+00 : f32
    %742 = vector.shape_cast %69 : vector<1x128xi1> to vector<1x128xi1>
    %743 = vector.broadcast %742 : vector<1x128xi1> to vector<16x128xi1>
    %744 = vector.broadcast %cst_244 : f32 to vector<16x128xf32>
    %745 = arith.select %743, %744, %741 : vector<16x128xi1>, vector<16x128xf32>
    %746 = arith.minimumf %740, %638 : vector<16x128xf32>
    %747 = arith.minimumf %746, %745 : vector<16x128xf32>
    %748 = arith.minimumf %735, %747 : vector<16x128xf32>
    %c15_i32_245 = arith.constant 15 : i32
    %749 = tpu.dynamic_rotate %663 by %c15_i32_245 dim 0 : vector<16x128xf32>, i32 -> vector<16x128xf32>
    %cst_246 = arith.constant 1.000000e+00 : f32
    %750 = vector.shape_cast %63 : vector<16x1xi1> to vector<16x1xi1>
    %751 = vector.broadcast %750 : vector<16x1xi1> to vector<16x128xi1>
    %752 = vector.broadcast %cst_246 : f32 to vector<16x128xf32>
    %753 = arith.select %751, %752, %749 : vector<16x128xi1>, vector<16x128xf32>
    %c1_i32_247 = arith.constant 1 : i32
    %754 = tpu.dynamic_rotate %663 by %c1_i32_247 dim 0 : vector<16x128xf32>, i32 -> vector<16x128xf32>
    %cst_248 = arith.constant 1.000000e+00 : f32
    %755 = vector.shape_cast %65 : vector<16x1xi1> to vector<16x1xi1>
    %756 = vector.broadcast %755 : vector<16x1xi1> to vector<16x128xi1>
    %757 = vector.broadcast %cst_248 : f32 to vector<16x128xf32>
    %758 = arith.select %756, %757, %754 : vector<16x128xi1>, vector<16x128xf32>
    %759 = arith.minimumf %753, %663 : vector<16x128xf32>
    %760 = arith.minimumf %759, %758 : vector<16x128xf32>
    %c127_i32_249 = arith.constant 127 : i32
    %761 = tpu.dynamic_rotate %663 by %c127_i32_249 dim 1 : vector<16x128xf32>, i32 -> vector<16x128xf32>
    %cst_250 = arith.constant 1.000000e+00 : f32
    %762 = vector.shape_cast %67 : vector<1x128xi1> to vector<1x128xi1>
    %763 = vector.broadcast %762 : vector<1x128xi1> to vector<16x128xi1>
    %764 = vector.broadcast %cst_250 : f32 to vector<16x128xf32>
    %765 = arith.select %763, %764, %761 : vector<16x128xi1>, vector<16x128xf32>
    %c1_i32_251 = arith.constant 1 : i32
    %766 = tpu.dynamic_rotate %663 by %c1_i32_251 dim 1 : vector<16x128xf32>, i32 -> vector<16x128xf32>
    %cst_252 = arith.constant 1.000000e+00 : f32
    %767 = vector.shape_cast %69 : vector<1x128xi1> to vector<1x128xi1>
    %768 = vector.broadcast %767 : vector<1x128xi1> to vector<16x128xi1>
    %769 = vector.broadcast %cst_252 : f32 to vector<16x128xf32>
    %770 = arith.select %768, %769, %766 : vector<16x128xi1>, vector<16x128xf32>
    %771 = arith.minimumf %765, %663 : vector<16x128xf32>
    %772 = arith.minimumf %771, %770 : vector<16x128xf32>
    %773 = arith.minimumf %760, %772 : vector<16x128xf32>
    %c15_i32_253 = arith.constant 15 : i32
    %774 = tpu.dynamic_rotate %748 by %c15_i32_253 dim 0 : vector<16x128xf32>, i32 -> vector<16x128xf32>
    %cst_254 = arith.constant 0.000000e+00 : f32
    %775 = vector.shape_cast %63 : vector<16x1xi1> to vector<16x1xi1>
    %776 = vector.broadcast %775 : vector<16x1xi1> to vector<16x128xi1>
    %777 = vector.broadcast %cst_254 : f32 to vector<16x128xf32>
    %778 = arith.select %776, %777, %774 : vector<16x128xi1>, vector<16x128xf32>
    %c1_i32_255 = arith.constant 1 : i32
    %779 = tpu.dynamic_rotate %748 by %c1_i32_255 dim 0 : vector<16x128xf32>, i32 -> vector<16x128xf32>
    %cst_256 = arith.constant 0.000000e+00 : f32
    %780 = vector.shape_cast %65 : vector<16x1xi1> to vector<16x1xi1>
    %781 = vector.broadcast %780 : vector<16x1xi1> to vector<16x128xi1>
    %782 = vector.broadcast %cst_256 : f32 to vector<16x128xf32>
    %783 = arith.select %781, %782, %779 : vector<16x128xi1>, vector<16x128xf32>
    %784 = arith.maximumf %778, %748 : vector<16x128xf32>
    %785 = arith.maximumf %784, %783 : vector<16x128xf32>
    %c127_i32_257 = arith.constant 127 : i32
    %786 = tpu.dynamic_rotate %785 by %c127_i32_257 dim 1 : vector<16x128xf32>, i32 -> vector<16x128xf32>
    %cst_258 = arith.constant 0.000000e+00 : f32
    %787 = vector.shape_cast %67 : vector<1x128xi1> to vector<1x128xi1>
    %788 = vector.broadcast %787 : vector<1x128xi1> to vector<16x128xi1>
    %789 = vector.broadcast %cst_258 : f32 to vector<16x128xf32>
    %790 = arith.select %788, %789, %786 : vector<16x128xi1>, vector<16x128xf32>
    %c1_i32_259 = arith.constant 1 : i32
    %791 = tpu.dynamic_rotate %785 by %c1_i32_259 dim 1 : vector<16x128xf32>, i32 -> vector<16x128xf32>
    %cst_260 = arith.constant 0.000000e+00 : f32
    %792 = vector.shape_cast %69 : vector<1x128xi1> to vector<1x128xi1>
    %793 = vector.broadcast %792 : vector<1x128xi1> to vector<16x128xi1>
    %794 = vector.broadcast %cst_260 : f32 to vector<16x128xf32>
    %795 = arith.select %793, %794, %791 : vector<16x128xi1>, vector<16x128xf32>
    %796 = arith.maximumf %790, %785 : vector<16x128xf32>
    %797 = arith.maximumf %796, %795 : vector<16x128xf32>
    %798 = arith.subf %638, %797 : vector<16x128xf32>
    %799 = vector.broadcast %cst_72 : f32 to vector<16x128xf32>
    %800 = arith.maximumf %798, %799 : vector<16x128xf32>
    %c15_i32_261 = arith.constant 15 : i32
    %801 = tpu.dynamic_rotate %773 by %c15_i32_261 dim 0 : vector<16x128xf32>, i32 -> vector<16x128xf32>
    %cst_262 = arith.constant 0.000000e+00 : f32
    %802 = vector.shape_cast %63 : vector<16x1xi1> to vector<16x1xi1>
    %803 = vector.broadcast %802 : vector<16x1xi1> to vector<16x128xi1>
    %804 = vector.broadcast %cst_262 : f32 to vector<16x128xf32>
    %805 = arith.select %803, %804, %801 : vector<16x128xi1>, vector<16x128xf32>
    %c1_i32_263 = arith.constant 1 : i32
    %806 = tpu.dynamic_rotate %773 by %c1_i32_263 dim 0 : vector<16x128xf32>, i32 -> vector<16x128xf32>
    %cst_264 = arith.constant 0.000000e+00 : f32
    %807 = vector.shape_cast %65 : vector<16x1xi1> to vector<16x1xi1>
    %808 = vector.broadcast %807 : vector<16x1xi1> to vector<16x128xi1>
    %809 = vector.broadcast %cst_264 : f32 to vector<16x128xf32>
    %810 = arith.select %808, %809, %806 : vector<16x128xi1>, vector<16x128xf32>
    %811 = arith.maximumf %805, %773 : vector<16x128xf32>
    %812 = arith.maximumf %811, %810 : vector<16x128xf32>
    %c127_i32_265 = arith.constant 127 : i32
    %813 = tpu.dynamic_rotate %812 by %c127_i32_265 dim 1 : vector<16x128xf32>, i32 -> vector<16x128xf32>
    %cst_266 = arith.constant 0.000000e+00 : f32
    %814 = vector.shape_cast %67 : vector<1x128xi1> to vector<1x128xi1>
    %815 = vector.broadcast %814 : vector<1x128xi1> to vector<16x128xi1>
    %816 = vector.broadcast %cst_266 : f32 to vector<16x128xf32>
    %817 = arith.select %815, %816, %813 : vector<16x128xi1>, vector<16x128xf32>
    %c1_i32_267 = arith.constant 1 : i32
    %818 = tpu.dynamic_rotate %812 by %c1_i32_267 dim 1 : vector<16x128xf32>, i32 -> vector<16x128xf32>
    %cst_268 = arith.constant 0.000000e+00 : f32
    %819 = vector.shape_cast %69 : vector<1x128xi1> to vector<1x128xi1>
    %820 = vector.broadcast %819 : vector<1x128xi1> to vector<16x128xi1>
    %821 = vector.broadcast %cst_268 : f32 to vector<16x128xf32>
    %822 = arith.select %820, %821, %818 : vector<16x128xi1>, vector<16x128xf32>
    %823 = arith.maximumf %817, %812 : vector<16x128xf32>
    %824 = arith.maximumf %823, %822 : vector<16x128xf32>
    %825 = arith.subf %663, %824 : vector<16x128xf32>
    %826 = vector.broadcast %cst_72 : f32 to vector<16x128xf32>
    %827 = arith.maximumf %825, %826 : vector<16x128xf32>
    %828 = arith.addf %720, %800 : vector<16x128xf32>
    %829 = arith.mulf %720, %800 : vector<16x128xf32>
    %830 = arith.subf %828, %829 : vector<16x128xf32>
    %831 = arith.addf %723, %827 : vector<16x128xf32>
    %832 = arith.mulf %723, %827 : vector<16x128xf32>
    %833 = arith.subf %831, %832 : vector<16x128xf32>
    %c6_i32 = arith.constant 6 : i32
    %c15_i32_269 = arith.constant 15 : i32
    %834 = tpu.dynamic_rotate %748 by %c15_i32_269 dim 0 : vector<16x128xf32>, i32 -> vector<16x128xf32>
    %cst_270 = arith.constant 1.000000e+00 : f32
    %835 = vector.shape_cast %63 : vector<16x1xi1> to vector<16x1xi1>
    %836 = vector.broadcast %835 : vector<16x1xi1> to vector<16x128xi1>
    %837 = vector.broadcast %cst_270 : f32 to vector<16x128xf32>
    %838 = arith.select %836, %837, %834 : vector<16x128xi1>, vector<16x128xf32>
    %c1_i32_271 = arith.constant 1 : i32
    %839 = tpu.dynamic_rotate %748 by %c1_i32_271 dim 0 : vector<16x128xf32>, i32 -> vector<16x128xf32>
    %cst_272 = arith.constant 1.000000e+00 : f32
    %840 = vector.shape_cast %65 : vector<16x1xi1> to vector<16x1xi1>
    %841 = vector.broadcast %840 : vector<16x1xi1> to vector<16x128xi1>
    %842 = vector.broadcast %cst_272 : f32 to vector<16x128xf32>
    %843 = arith.select %841, %842, %839 : vector<16x128xi1>, vector<16x128xf32>
    %844 = arith.minimumf %838, %748 : vector<16x128xf32>
    %845 = arith.minimumf %844, %843 : vector<16x128xf32>
    %c127_i32_273 = arith.constant 127 : i32
    %846 = tpu.dynamic_rotate %748 by %c127_i32_273 dim 1 : vector<16x128xf32>, i32 -> vector<16x128xf32>
    %cst_274 = arith.constant 1.000000e+00 : f32
    %847 = vector.shape_cast %67 : vector<1x128xi1> to vector<1x128xi1>
    %848 = vector.broadcast %847 : vector<1x128xi1> to vector<16x128xi1>
    %849 = vector.broadcast %cst_274 : f32 to vector<16x128xf32>
    %850 = arith.select %848, %849, %846 : vector<16x128xi1>, vector<16x128xf32>
    %c1_i32_275 = arith.constant 1 : i32
    %851 = tpu.dynamic_rotate %748 by %c1_i32_275 dim 1 : vector<16x128xf32>, i32 -> vector<16x128xf32>
    %cst_276 = arith.constant 1.000000e+00 : f32
    %852 = vector.shape_cast %69 : vector<1x128xi1> to vector<1x128xi1>
    %853 = vector.broadcast %852 : vector<1x128xi1> to vector<16x128xi1>
    %854 = vector.broadcast %cst_276 : f32 to vector<16x128xf32>
    %855 = arith.select %853, %854, %851 : vector<16x128xi1>, vector<16x128xf32>
    %856 = arith.minimumf %850, %748 : vector<16x128xf32>
    %857 = arith.minimumf %856, %855 : vector<16x128xf32>
    %858 = arith.minimumf %845, %857 : vector<16x128xf32>
    %c15_i32_277 = arith.constant 15 : i32
    %859 = tpu.dynamic_rotate %773 by %c15_i32_277 dim 0 : vector<16x128xf32>, i32 -> vector<16x128xf32>
    %cst_278 = arith.constant 1.000000e+00 : f32
    %860 = vector.shape_cast %63 : vector<16x1xi1> to vector<16x1xi1>
    %861 = vector.broadcast %860 : vector<16x1xi1> to vector<16x128xi1>
    %862 = vector.broadcast %cst_278 : f32 to vector<16x128xf32>
    %863 = arith.select %861, %862, %859 : vector<16x128xi1>, vector<16x128xf32>
    %c1_i32_279 = arith.constant 1 : i32
    %864 = tpu.dynamic_rotate %773 by %c1_i32_279 dim 0 : vector<16x128xf32>, i32 -> vector<16x128xf32>
    %cst_280 = arith.constant 1.000000e+00 : f32
    %865 = vector.shape_cast %65 : vector<16x1xi1> to vector<16x1xi1>
    %866 = vector.broadcast %865 : vector<16x1xi1> to vector<16x128xi1>
    %867 = vector.broadcast %cst_280 : f32 to vector<16x128xf32>
    %868 = arith.select %866, %867, %864 : vector<16x128xi1>, vector<16x128xf32>
    %869 = arith.minimumf %863, %773 : vector<16x128xf32>
    %870 = arith.minimumf %869, %868 : vector<16x128xf32>
    %c127_i32_281 = arith.constant 127 : i32
    %871 = tpu.dynamic_rotate %773 by %c127_i32_281 dim 1 : vector<16x128xf32>, i32 -> vector<16x128xf32>
    %cst_282 = arith.constant 1.000000e+00 : f32
    %872 = vector.shape_cast %67 : vector<1x128xi1> to vector<1x128xi1>
    %873 = vector.broadcast %872 : vector<1x128xi1> to vector<16x128xi1>
    %874 = vector.broadcast %cst_282 : f32 to vector<16x128xf32>
    %875 = arith.select %873, %874, %871 : vector<16x128xi1>, vector<16x128xf32>
    %c1_i32_283 = arith.constant 1 : i32
    %876 = tpu.dynamic_rotate %773 by %c1_i32_283 dim 1 : vector<16x128xf32>, i32 -> vector<16x128xf32>
    %cst_284 = arith.constant 1.000000e+00 : f32
    %877 = vector.shape_cast %69 : vector<1x128xi1> to vector<1x128xi1>
    %878 = vector.broadcast %877 : vector<1x128xi1> to vector<16x128xi1>
    %879 = vector.broadcast %cst_284 : f32 to vector<16x128xf32>
    %880 = arith.select %878, %879, %876 : vector<16x128xi1>, vector<16x128xf32>
    %881 = arith.minimumf %875, %773 : vector<16x128xf32>
    %882 = arith.minimumf %881, %880 : vector<16x128xf32>
    %883 = arith.minimumf %870, %882 : vector<16x128xf32>
    %c15_i32_285 = arith.constant 15 : i32
    %884 = tpu.dynamic_rotate %858 by %c15_i32_285 dim 0 : vector<16x128xf32>, i32 -> vector<16x128xf32>
    %cst_286 = arith.constant 0.000000e+00 : f32
    %885 = vector.shape_cast %63 : vector<16x1xi1> to vector<16x1xi1>
    %886 = vector.broadcast %885 : vector<16x1xi1> to vector<16x128xi1>
    %887 = vector.broadcast %cst_286 : f32 to vector<16x128xf32>
    %888 = arith.select %886, %887, %884 : vector<16x128xi1>, vector<16x128xf32>
    %c1_i32_287 = arith.constant 1 : i32
    %889 = tpu.dynamic_rotate %858 by %c1_i32_287 dim 0 : vector<16x128xf32>, i32 -> vector<16x128xf32>
    %cst_288 = arith.constant 0.000000e+00 : f32
    %890 = vector.shape_cast %65 : vector<16x1xi1> to vector<16x1xi1>
    %891 = vector.broadcast %890 : vector<16x1xi1> to vector<16x128xi1>
    %892 = vector.broadcast %cst_288 : f32 to vector<16x128xf32>
    %893 = arith.select %891, %892, %889 : vector<16x128xi1>, vector<16x128xf32>
    %894 = arith.maximumf %888, %858 : vector<16x128xf32>
    %895 = arith.maximumf %894, %893 : vector<16x128xf32>
    %c127_i32_289 = arith.constant 127 : i32
    %896 = tpu.dynamic_rotate %895 by %c127_i32_289 dim 1 : vector<16x128xf32>, i32 -> vector<16x128xf32>
    %cst_290 = arith.constant 0.000000e+00 : f32
    %897 = vector.shape_cast %67 : vector<1x128xi1> to vector<1x128xi1>
    %898 = vector.broadcast %897 : vector<1x128xi1> to vector<16x128xi1>
    %899 = vector.broadcast %cst_290 : f32 to vector<16x128xf32>
    %900 = arith.select %898, %899, %896 : vector<16x128xi1>, vector<16x128xf32>
    %c1_i32_291 = arith.constant 1 : i32
    %901 = tpu.dynamic_rotate %895 by %c1_i32_291 dim 1 : vector<16x128xf32>, i32 -> vector<16x128xf32>
    %cst_292 = arith.constant 0.000000e+00 : f32
    %902 = vector.shape_cast %69 : vector<1x128xi1> to vector<1x128xi1>
    %903 = vector.broadcast %902 : vector<1x128xi1> to vector<16x128xi1>
    %904 = vector.broadcast %cst_292 : f32 to vector<16x128xf32>
    %905 = arith.select %903, %904, %901 : vector<16x128xi1>, vector<16x128xf32>
    %906 = arith.maximumf %900, %895 : vector<16x128xf32>
    %907 = arith.maximumf %906, %905 : vector<16x128xf32>
    %908 = arith.subf %748, %907 : vector<16x128xf32>
    %909 = vector.broadcast %cst_72 : f32 to vector<16x128xf32>
    %910 = arith.maximumf %908, %909 : vector<16x128xf32>
    %c15_i32_293 = arith.constant 15 : i32
    %911 = tpu.dynamic_rotate %883 by %c15_i32_293 dim 0 : vector<16x128xf32>, i32 -> vector<16x128xf32>
    %cst_294 = arith.constant 0.000000e+00 : f32
    %912 = vector.shape_cast %63 : vector<16x1xi1> to vector<16x1xi1>
    %913 = vector.broadcast %912 : vector<16x1xi1> to vector<16x128xi1>
    %914 = vector.broadcast %cst_294 : f32 to vector<16x128xf32>
    %915 = arith.select %913, %914, %911 : vector<16x128xi1>, vector<16x128xf32>
    %c1_i32_295 = arith.constant 1 : i32
    %916 = tpu.dynamic_rotate %883 by %c1_i32_295 dim 0 : vector<16x128xf32>, i32 -> vector<16x128xf32>
    %cst_296 = arith.constant 0.000000e+00 : f32
    %917 = vector.shape_cast %65 : vector<16x1xi1> to vector<16x1xi1>
    %918 = vector.broadcast %917 : vector<16x1xi1> to vector<16x128xi1>
    %919 = vector.broadcast %cst_296 : f32 to vector<16x128xf32>
    %920 = arith.select %918, %919, %916 : vector<16x128xi1>, vector<16x128xf32>
    %921 = arith.maximumf %915, %883 : vector<16x128xf32>
    %922 = arith.maximumf %921, %920 : vector<16x128xf32>
    %c127_i32_297 = arith.constant 127 : i32
    %923 = tpu.dynamic_rotate %922 by %c127_i32_297 dim 1 : vector<16x128xf32>, i32 -> vector<16x128xf32>
    %cst_298 = arith.constant 0.000000e+00 : f32
    %924 = vector.shape_cast %67 : vector<1x128xi1> to vector<1x128xi1>
    %925 = vector.broadcast %924 : vector<1x128xi1> to vector<16x128xi1>
    %926 = vector.broadcast %cst_298 : f32 to vector<16x128xf32>
    %927 = arith.select %925, %926, %923 : vector<16x128xi1>, vector<16x128xf32>
    %c1_i32_299 = arith.constant 1 : i32
    %928 = tpu.dynamic_rotate %922 by %c1_i32_299 dim 1 : vector<16x128xf32>, i32 -> vector<16x128xf32>
    %cst_300 = arith.constant 0.000000e+00 : f32
    %929 = vector.shape_cast %69 : vector<1x128xi1> to vector<1x128xi1>
    %930 = vector.broadcast %929 : vector<1x128xi1> to vector<16x128xi1>
    %931 = vector.broadcast %cst_300 : f32 to vector<16x128xf32>
    %932 = arith.select %930, %931, %928 : vector<16x128xi1>, vector<16x128xf32>
    %933 = arith.maximumf %927, %922 : vector<16x128xf32>
    %934 = arith.maximumf %933, %932 : vector<16x128xf32>
    %935 = arith.subf %773, %934 : vector<16x128xf32>
    %936 = vector.broadcast %cst_72 : f32 to vector<16x128xf32>
    %937 = arith.maximumf %935, %936 : vector<16x128xf32>
    %938 = arith.addf %830, %910 : vector<16x128xf32>
    %939 = arith.mulf %830, %910 : vector<16x128xf32>
    %940 = arith.subf %938, %939 : vector<16x128xf32>
    %941 = arith.addf %833, %937 : vector<16x128xf32>
    %942 = arith.mulf %833, %937 : vector<16x128xf32>
    %943 = arith.subf %941, %942 : vector<16x128xf32>
    %c7_i32 = arith.constant 7 : i32
    %c15_i32_301 = arith.constant 15 : i32
    %944 = tpu.dynamic_rotate %858 by %c15_i32_301 dim 0 : vector<16x128xf32>, i32 -> vector<16x128xf32>
    %cst_302 = arith.constant 1.000000e+00 : f32
    %945 = vector.shape_cast %63 : vector<16x1xi1> to vector<16x1xi1>
    %946 = vector.broadcast %945 : vector<16x1xi1> to vector<16x128xi1>
    %947 = vector.broadcast %cst_302 : f32 to vector<16x128xf32>
    %948 = arith.select %946, %947, %944 : vector<16x128xi1>, vector<16x128xf32>
    %c1_i32_303 = arith.constant 1 : i32
    %949 = tpu.dynamic_rotate %858 by %c1_i32_303 dim 0 : vector<16x128xf32>, i32 -> vector<16x128xf32>
    %cst_304 = arith.constant 1.000000e+00 : f32
    %950 = vector.shape_cast %65 : vector<16x1xi1> to vector<16x1xi1>
    %951 = vector.broadcast %950 : vector<16x1xi1> to vector<16x128xi1>
    %952 = vector.broadcast %cst_304 : f32 to vector<16x128xf32>
    %953 = arith.select %951, %952, %949 : vector<16x128xi1>, vector<16x128xf32>
    %954 = arith.minimumf %948, %858 : vector<16x128xf32>
    %955 = arith.minimumf %954, %953 : vector<16x128xf32>
    %c127_i32_305 = arith.constant 127 : i32
    %956 = tpu.dynamic_rotate %858 by %c127_i32_305 dim 1 : vector<16x128xf32>, i32 -> vector<16x128xf32>
    %cst_306 = arith.constant 1.000000e+00 : f32
    %957 = vector.shape_cast %67 : vector<1x128xi1> to vector<1x128xi1>
    %958 = vector.broadcast %957 : vector<1x128xi1> to vector<16x128xi1>
    %959 = vector.broadcast %cst_306 : f32 to vector<16x128xf32>
    %960 = arith.select %958, %959, %956 : vector<16x128xi1>, vector<16x128xf32>
    %c1_i32_307 = arith.constant 1 : i32
    %961 = tpu.dynamic_rotate %858 by %c1_i32_307 dim 1 : vector<16x128xf32>, i32 -> vector<16x128xf32>
    %cst_308 = arith.constant 1.000000e+00 : f32
    %962 = vector.shape_cast %69 : vector<1x128xi1> to vector<1x128xi1>
    %963 = vector.broadcast %962 : vector<1x128xi1> to vector<16x128xi1>
    %964 = vector.broadcast %cst_308 : f32 to vector<16x128xf32>
    %965 = arith.select %963, %964, %961 : vector<16x128xi1>, vector<16x128xf32>
    %966 = arith.minimumf %960, %858 : vector<16x128xf32>
    %967 = arith.minimumf %966, %965 : vector<16x128xf32>
    %968 = arith.minimumf %955, %967 : vector<16x128xf32>
    %c15_i32_309 = arith.constant 15 : i32
    %969 = tpu.dynamic_rotate %883 by %c15_i32_309 dim 0 : vector<16x128xf32>, i32 -> vector<16x128xf32>
    %cst_310 = arith.constant 1.000000e+00 : f32
    %970 = vector.shape_cast %63 : vector<16x1xi1> to vector<16x1xi1>
    %971 = vector.broadcast %970 : vector<16x1xi1> to vector<16x128xi1>
    %972 = vector.broadcast %cst_310 : f32 to vector<16x128xf32>
    %973 = arith.select %971, %972, %969 : vector<16x128xi1>, vector<16x128xf32>
    %c1_i32_311 = arith.constant 1 : i32
    %974 = tpu.dynamic_rotate %883 by %c1_i32_311 dim 0 : vector<16x128xf32>, i32 -> vector<16x128xf32>
    %cst_312 = arith.constant 1.000000e+00 : f32
    %975 = vector.shape_cast %65 : vector<16x1xi1> to vector<16x1xi1>
    %976 = vector.broadcast %975 : vector<16x1xi1> to vector<16x128xi1>
    %977 = vector.broadcast %cst_312 : f32 to vector<16x128xf32>
    %978 = arith.select %976, %977, %974 : vector<16x128xi1>, vector<16x128xf32>
    %979 = arith.minimumf %973, %883 : vector<16x128xf32>
    %980 = arith.minimumf %979, %978 : vector<16x128xf32>
    %c127_i32_313 = arith.constant 127 : i32
    %981 = tpu.dynamic_rotate %883 by %c127_i32_313 dim 1 : vector<16x128xf32>, i32 -> vector<16x128xf32>
    %cst_314 = arith.constant 1.000000e+00 : f32
    %982 = vector.shape_cast %67 : vector<1x128xi1> to vector<1x128xi1>
    %983 = vector.broadcast %982 : vector<1x128xi1> to vector<16x128xi1>
    %984 = vector.broadcast %cst_314 : f32 to vector<16x128xf32>
    %985 = arith.select %983, %984, %981 : vector<16x128xi1>, vector<16x128xf32>
    %c1_i32_315 = arith.constant 1 : i32
    %986 = tpu.dynamic_rotate %883 by %c1_i32_315 dim 1 : vector<16x128xf32>, i32 -> vector<16x128xf32>
    %cst_316 = arith.constant 1.000000e+00 : f32
    %987 = vector.shape_cast %69 : vector<1x128xi1> to vector<1x128xi1>
    %988 = vector.broadcast %987 : vector<1x128xi1> to vector<16x128xi1>
    %989 = vector.broadcast %cst_316 : f32 to vector<16x128xf32>
    %990 = arith.select %988, %989, %986 : vector<16x128xi1>, vector<16x128xf32>
    %991 = arith.minimumf %985, %883 : vector<16x128xf32>
    %992 = arith.minimumf %991, %990 : vector<16x128xf32>
    %993 = arith.minimumf %980, %992 : vector<16x128xf32>
    %c15_i32_317 = arith.constant 15 : i32
    %994 = tpu.dynamic_rotate %968 by %c15_i32_317 dim 0 : vector<16x128xf32>, i32 -> vector<16x128xf32>
    %cst_318 = arith.constant 0.000000e+00 : f32
    %995 = vector.shape_cast %63 : vector<16x1xi1> to vector<16x1xi1>
    %996 = vector.broadcast %995 : vector<16x1xi1> to vector<16x128xi1>
    %997 = vector.broadcast %cst_318 : f32 to vector<16x128xf32>
    %998 = arith.select %996, %997, %994 : vector<16x128xi1>, vector<16x128xf32>
    %c1_i32_319 = arith.constant 1 : i32
    %999 = tpu.dynamic_rotate %968 by %c1_i32_319 dim 0 : vector<16x128xf32>, i32 -> vector<16x128xf32>
    %cst_320 = arith.constant 0.000000e+00 : f32
    %1000 = vector.shape_cast %65 : vector<16x1xi1> to vector<16x1xi1>
    %1001 = vector.broadcast %1000 : vector<16x1xi1> to vector<16x128xi1>
    %1002 = vector.broadcast %cst_320 : f32 to vector<16x128xf32>
    %1003 = arith.select %1001, %1002, %999 : vector<16x128xi1>, vector<16x128xf32>
    %1004 = arith.maximumf %998, %968 : vector<16x128xf32>
    %1005 = arith.maximumf %1004, %1003 : vector<16x128xf32>
    %c127_i32_321 = arith.constant 127 : i32
    %1006 = tpu.dynamic_rotate %1005 by %c127_i32_321 dim 1 : vector<16x128xf32>, i32 -> vector<16x128xf32>
    %cst_322 = arith.constant 0.000000e+00 : f32
    %1007 = vector.shape_cast %67 : vector<1x128xi1> to vector<1x128xi1>
    %1008 = vector.broadcast %1007 : vector<1x128xi1> to vector<16x128xi1>
    %1009 = vector.broadcast %cst_322 : f32 to vector<16x128xf32>
    %1010 = arith.select %1008, %1009, %1006 : vector<16x128xi1>, vector<16x128xf32>
    %c1_i32_323 = arith.constant 1 : i32
    %1011 = tpu.dynamic_rotate %1005 by %c1_i32_323 dim 1 : vector<16x128xf32>, i32 -> vector<16x128xf32>
    %cst_324 = arith.constant 0.000000e+00 : f32
    %1012 = vector.shape_cast %69 : vector<1x128xi1> to vector<1x128xi1>
    %1013 = vector.broadcast %1012 : vector<1x128xi1> to vector<16x128xi1>
    %1014 = vector.broadcast %cst_324 : f32 to vector<16x128xf32>
    %1015 = arith.select %1013, %1014, %1011 : vector<16x128xi1>, vector<16x128xf32>
    %1016 = arith.maximumf %1010, %1005 : vector<16x128xf32>
    %1017 = arith.maximumf %1016, %1015 : vector<16x128xf32>
    %1018 = arith.subf %858, %1017 : vector<16x128xf32>
    %1019 = vector.broadcast %cst_72 : f32 to vector<16x128xf32>
    %1020 = arith.maximumf %1018, %1019 : vector<16x128xf32>
    %c15_i32_325 = arith.constant 15 : i32
    %1021 = tpu.dynamic_rotate %993 by %c15_i32_325 dim 0 : vector<16x128xf32>, i32 -> vector<16x128xf32>
    %cst_326 = arith.constant 0.000000e+00 : f32
    %1022 = vector.shape_cast %63 : vector<16x1xi1> to vector<16x1xi1>
    %1023 = vector.broadcast %1022 : vector<16x1xi1> to vector<16x128xi1>
    %1024 = vector.broadcast %cst_326 : f32 to vector<16x128xf32>
    %1025 = arith.select %1023, %1024, %1021 : vector<16x128xi1>, vector<16x128xf32>
    %c1_i32_327 = arith.constant 1 : i32
    %1026 = tpu.dynamic_rotate %993 by %c1_i32_327 dim 0 : vector<16x128xf32>, i32 -> vector<16x128xf32>
    %cst_328 = arith.constant 0.000000e+00 : f32
    %1027 = vector.shape_cast %65 : vector<16x1xi1> to vector<16x1xi1>
    %1028 = vector.broadcast %1027 : vector<16x1xi1> to vector<16x128xi1>
    %1029 = vector.broadcast %cst_328 : f32 to vector<16x128xf32>
    %1030 = arith.select %1028, %1029, %1026 : vector<16x128xi1>, vector<16x128xf32>
    %1031 = arith.maximumf %1025, %993 : vector<16x128xf32>
    %1032 = arith.maximumf %1031, %1030 : vector<16x128xf32>
    %c127_i32_329 = arith.constant 127 : i32
    %1033 = tpu.dynamic_rotate %1032 by %c127_i32_329 dim 1 : vector<16x128xf32>, i32 -> vector<16x128xf32>
    %cst_330 = arith.constant 0.000000e+00 : f32
    %1034 = vector.shape_cast %67 : vector<1x128xi1> to vector<1x128xi1>
    %1035 = vector.broadcast %1034 : vector<1x128xi1> to vector<16x128xi1>
    %1036 = vector.broadcast %cst_330 : f32 to vector<16x128xf32>
    %1037 = arith.select %1035, %1036, %1033 : vector<16x128xi1>, vector<16x128xf32>
    %c1_i32_331 = arith.constant 1 : i32
    %1038 = tpu.dynamic_rotate %1032 by %c1_i32_331 dim 1 : vector<16x128xf32>, i32 -> vector<16x128xf32>
    %cst_332 = arith.constant 0.000000e+00 : f32
    %1039 = vector.shape_cast %69 : vector<1x128xi1> to vector<1x128xi1>
    %1040 = vector.broadcast %1039 : vector<1x128xi1> to vector<16x128xi1>
    %1041 = vector.broadcast %cst_332 : f32 to vector<16x128xf32>
    %1042 = arith.select %1040, %1041, %1038 : vector<16x128xi1>, vector<16x128xf32>
    %1043 = arith.maximumf %1037, %1032 : vector<16x128xf32>
    %1044 = arith.maximumf %1043, %1042 : vector<16x128xf32>
    %1045 = arith.subf %883, %1044 : vector<16x128xf32>
    %1046 = vector.broadcast %cst_72 : f32 to vector<16x128xf32>
    %1047 = arith.maximumf %1045, %1046 : vector<16x128xf32>
    %1048 = arith.addf %940, %1020 : vector<16x128xf32>
    %1049 = arith.mulf %940, %1020 : vector<16x128xf32>
    %1050 = arith.subf %1048, %1049 : vector<16x128xf32>
    %1051 = arith.addf %943, %1047 : vector<16x128xf32>
    %1052 = arith.mulf %943, %1047 : vector<16x128xf32>
    %1053 = arith.subf %1051, %1052 : vector<16x128xf32>
    %c8_i32 = arith.constant 8 : i32
    %c15_i32_333 = arith.constant 15 : i32
    %1054 = tpu.dynamic_rotate %968 by %c15_i32_333 dim 0 : vector<16x128xf32>, i32 -> vector<16x128xf32>
    %cst_334 = arith.constant 1.000000e+00 : f32
    %1055 = vector.shape_cast %63 : vector<16x1xi1> to vector<16x1xi1>
    %1056 = vector.broadcast %1055 : vector<16x1xi1> to vector<16x128xi1>
    %1057 = vector.broadcast %cst_334 : f32 to vector<16x128xf32>
    %1058 = arith.select %1056, %1057, %1054 : vector<16x128xi1>, vector<16x128xf32>
    %c1_i32_335 = arith.constant 1 : i32
    %1059 = tpu.dynamic_rotate %968 by %c1_i32_335 dim 0 : vector<16x128xf32>, i32 -> vector<16x128xf32>
    %cst_336 = arith.constant 1.000000e+00 : f32
    %1060 = vector.shape_cast %65 : vector<16x1xi1> to vector<16x1xi1>
    %1061 = vector.broadcast %1060 : vector<16x1xi1> to vector<16x128xi1>
    %1062 = vector.broadcast %cst_336 : f32 to vector<16x128xf32>
    %1063 = arith.select %1061, %1062, %1059 : vector<16x128xi1>, vector<16x128xf32>
    %1064 = arith.minimumf %1058, %968 : vector<16x128xf32>
    %1065 = arith.minimumf %1064, %1063 : vector<16x128xf32>
    %c127_i32_337 = arith.constant 127 : i32
    %1066 = tpu.dynamic_rotate %968 by %c127_i32_337 dim 1 : vector<16x128xf32>, i32 -> vector<16x128xf32>
    %cst_338 = arith.constant 1.000000e+00 : f32
    %1067 = vector.shape_cast %67 : vector<1x128xi1> to vector<1x128xi1>
    %1068 = vector.broadcast %1067 : vector<1x128xi1> to vector<16x128xi1>
    %1069 = vector.broadcast %cst_338 : f32 to vector<16x128xf32>
    %1070 = arith.select %1068, %1069, %1066 : vector<16x128xi1>, vector<16x128xf32>
    %c1_i32_339 = arith.constant 1 : i32
    %1071 = tpu.dynamic_rotate %968 by %c1_i32_339 dim 1 : vector<16x128xf32>, i32 -> vector<16x128xf32>
    %cst_340 = arith.constant 1.000000e+00 : f32
    %1072 = vector.shape_cast %69 : vector<1x128xi1> to vector<1x128xi1>
    %1073 = vector.broadcast %1072 : vector<1x128xi1> to vector<16x128xi1>
    %1074 = vector.broadcast %cst_340 : f32 to vector<16x128xf32>
    %1075 = arith.select %1073, %1074, %1071 : vector<16x128xi1>, vector<16x128xf32>
    %1076 = arith.minimumf %1070, %968 : vector<16x128xf32>
    %1077 = arith.minimumf %1076, %1075 : vector<16x128xf32>
    %1078 = arith.minimumf %1065, %1077 : vector<16x128xf32>
    %c15_i32_341 = arith.constant 15 : i32
    %1079 = tpu.dynamic_rotate %993 by %c15_i32_341 dim 0 : vector<16x128xf32>, i32 -> vector<16x128xf32>
    %cst_342 = arith.constant 1.000000e+00 : f32
    %1080 = vector.shape_cast %63 : vector<16x1xi1> to vector<16x1xi1>
    %1081 = vector.broadcast %1080 : vector<16x1xi1> to vector<16x128xi1>
    %1082 = vector.broadcast %cst_342 : f32 to vector<16x128xf32>
    %1083 = arith.select %1081, %1082, %1079 : vector<16x128xi1>, vector<16x128xf32>
    %c1_i32_343 = arith.constant 1 : i32
    %1084 = tpu.dynamic_rotate %993 by %c1_i32_343 dim 0 : vector<16x128xf32>, i32 -> vector<16x128xf32>
    %cst_344 = arith.constant 1.000000e+00 : f32
    %1085 = vector.shape_cast %65 : vector<16x1xi1> to vector<16x1xi1>
    %1086 = vector.broadcast %1085 : vector<16x1xi1> to vector<16x128xi1>
    %1087 = vector.broadcast %cst_344 : f32 to vector<16x128xf32>
    %1088 = arith.select %1086, %1087, %1084 : vector<16x128xi1>, vector<16x128xf32>
    %1089 = arith.minimumf %1083, %993 : vector<16x128xf32>
    %1090 = arith.minimumf %1089, %1088 : vector<16x128xf32>
    %c127_i32_345 = arith.constant 127 : i32
    %1091 = tpu.dynamic_rotate %993 by %c127_i32_345 dim 1 : vector<16x128xf32>, i32 -> vector<16x128xf32>
    %cst_346 = arith.constant 1.000000e+00 : f32
    %1092 = vector.shape_cast %67 : vector<1x128xi1> to vector<1x128xi1>
    %1093 = vector.broadcast %1092 : vector<1x128xi1> to vector<16x128xi1>
    %1094 = vector.broadcast %cst_346 : f32 to vector<16x128xf32>
    %1095 = arith.select %1093, %1094, %1091 : vector<16x128xi1>, vector<16x128xf32>
    %c1_i32_347 = arith.constant 1 : i32
    %1096 = tpu.dynamic_rotate %993 by %c1_i32_347 dim 1 : vector<16x128xf32>, i32 -> vector<16x128xf32>
    %cst_348 = arith.constant 1.000000e+00 : f32
    %1097 = vector.shape_cast %69 : vector<1x128xi1> to vector<1x128xi1>
    %1098 = vector.broadcast %1097 : vector<1x128xi1> to vector<16x128xi1>
    %1099 = vector.broadcast %cst_348 : f32 to vector<16x128xf32>
    %1100 = arith.select %1098, %1099, %1096 : vector<16x128xi1>, vector<16x128xf32>
    %1101 = arith.minimumf %1095, %993 : vector<16x128xf32>
    %1102 = arith.minimumf %1101, %1100 : vector<16x128xf32>
    %1103 = arith.minimumf %1090, %1102 : vector<16x128xf32>
    %c15_i32_349 = arith.constant 15 : i32
    %1104 = tpu.dynamic_rotate %1078 by %c15_i32_349 dim 0 : vector<16x128xf32>, i32 -> vector<16x128xf32>
    %cst_350 = arith.constant 0.000000e+00 : f32
    %1105 = vector.shape_cast %63 : vector<16x1xi1> to vector<16x1xi1>
    %1106 = vector.broadcast %1105 : vector<16x1xi1> to vector<16x128xi1>
    %1107 = vector.broadcast %cst_350 : f32 to vector<16x128xf32>
    %1108 = arith.select %1106, %1107, %1104 : vector<16x128xi1>, vector<16x128xf32>
    %c1_i32_351 = arith.constant 1 : i32
    %1109 = tpu.dynamic_rotate %1078 by %c1_i32_351 dim 0 : vector<16x128xf32>, i32 -> vector<16x128xf32>
    %cst_352 = arith.constant 0.000000e+00 : f32
    %1110 = vector.shape_cast %65 : vector<16x1xi1> to vector<16x1xi1>
    %1111 = vector.broadcast %1110 : vector<16x1xi1> to vector<16x128xi1>
    %1112 = vector.broadcast %cst_352 : f32 to vector<16x128xf32>
    %1113 = arith.select %1111, %1112, %1109 : vector<16x128xi1>, vector<16x128xf32>
    %1114 = arith.maximumf %1108, %1078 : vector<16x128xf32>
    %1115 = arith.maximumf %1114, %1113 : vector<16x128xf32>
    %c127_i32_353 = arith.constant 127 : i32
    %1116 = tpu.dynamic_rotate %1115 by %c127_i32_353 dim 1 : vector<16x128xf32>, i32 -> vector<16x128xf32>
    %cst_354 = arith.constant 0.000000e+00 : f32
    %1117 = vector.shape_cast %67 : vector<1x128xi1> to vector<1x128xi1>
    %1118 = vector.broadcast %1117 : vector<1x128xi1> to vector<16x128xi1>
    %1119 = vector.broadcast %cst_354 : f32 to vector<16x128xf32>
    %1120 = arith.select %1118, %1119, %1116 : vector<16x128xi1>, vector<16x128xf32>
    %c1_i32_355 = arith.constant 1 : i32
    %1121 = tpu.dynamic_rotate %1115 by %c1_i32_355 dim 1 : vector<16x128xf32>, i32 -> vector<16x128xf32>
    %cst_356 = arith.constant 0.000000e+00 : f32
    %1122 = vector.shape_cast %69 : vector<1x128xi1> to vector<1x128xi1>
    %1123 = vector.broadcast %1122 : vector<1x128xi1> to vector<16x128xi1>
    %1124 = vector.broadcast %cst_356 : f32 to vector<16x128xf32>
    %1125 = arith.select %1123, %1124, %1121 : vector<16x128xi1>, vector<16x128xf32>
    %1126 = arith.maximumf %1120, %1115 : vector<16x128xf32>
    %1127 = arith.maximumf %1126, %1125 : vector<16x128xf32>
    %1128 = arith.subf %968, %1127 : vector<16x128xf32>
    %1129 = vector.broadcast %cst_72 : f32 to vector<16x128xf32>
    %1130 = arith.maximumf %1128, %1129 : vector<16x128xf32>
    %c15_i32_357 = arith.constant 15 : i32
    %1131 = tpu.dynamic_rotate %1103 by %c15_i32_357 dim 0 : vector<16x128xf32>, i32 -> vector<16x128xf32>
    %cst_358 = arith.constant 0.000000e+00 : f32
    %1132 = vector.shape_cast %63 : vector<16x1xi1> to vector<16x1xi1>
    %1133 = vector.broadcast %1132 : vector<16x1xi1> to vector<16x128xi1>
    %1134 = vector.broadcast %cst_358 : f32 to vector<16x128xf32>
    %1135 = arith.select %1133, %1134, %1131 : vector<16x128xi1>, vector<16x128xf32>
    %c1_i32_359 = arith.constant 1 : i32
    %1136 = tpu.dynamic_rotate %1103 by %c1_i32_359 dim 0 : vector<16x128xf32>, i32 -> vector<16x128xf32>
    %cst_360 = arith.constant 0.000000e+00 : f32
    %1137 = vector.shape_cast %65 : vector<16x1xi1> to vector<16x1xi1>
    %1138 = vector.broadcast %1137 : vector<16x1xi1> to vector<16x128xi1>
    %1139 = vector.broadcast %cst_360 : f32 to vector<16x128xf32>
    %1140 = arith.select %1138, %1139, %1136 : vector<16x128xi1>, vector<16x128xf32>
    %1141 = arith.maximumf %1135, %1103 : vector<16x128xf32>
    %1142 = arith.maximumf %1141, %1140 : vector<16x128xf32>
    %c127_i32_361 = arith.constant 127 : i32
    %1143 = tpu.dynamic_rotate %1142 by %c127_i32_361 dim 1 : vector<16x128xf32>, i32 -> vector<16x128xf32>
    %cst_362 = arith.constant 0.000000e+00 : f32
    %1144 = vector.shape_cast %67 : vector<1x128xi1> to vector<1x128xi1>
    %1145 = vector.broadcast %1144 : vector<1x128xi1> to vector<16x128xi1>
    %1146 = vector.broadcast %cst_362 : f32 to vector<16x128xf32>
    %1147 = arith.select %1145, %1146, %1143 : vector<16x128xi1>, vector<16x128xf32>
    %c1_i32_363 = arith.constant 1 : i32
    %1148 = tpu.dynamic_rotate %1142 by %c1_i32_363 dim 1 : vector<16x128xf32>, i32 -> vector<16x128xf32>
    %cst_364 = arith.constant 0.000000e+00 : f32
    %1149 = vector.shape_cast %69 : vector<1x128xi1> to vector<1x128xi1>
    %1150 = vector.broadcast %1149 : vector<1x128xi1> to vector<16x128xi1>
    %1151 = vector.broadcast %cst_364 : f32 to vector<16x128xf32>
    %1152 = arith.select %1150, %1151, %1148 : vector<16x128xi1>, vector<16x128xf32>
    %1153 = arith.maximumf %1147, %1142 : vector<16x128xf32>
    %1154 = arith.maximumf %1153, %1152 : vector<16x128xf32>
    %1155 = arith.subf %993, %1154 : vector<16x128xf32>
    %1156 = vector.broadcast %cst_72 : f32 to vector<16x128xf32>
    %1157 = arith.maximumf %1155, %1156 : vector<16x128xf32>
    %1158 = arith.addf %1050, %1130 : vector<16x128xf32>
    %1159 = arith.mulf %1050, %1130 : vector<16x128xf32>
    %1160 = arith.subf %1158, %1159 : vector<16x128xf32>
    %1161 = arith.addf %1053, %1157 : vector<16x128xf32>
    %1162 = arith.mulf %1053, %1157 : vector<16x128xf32>
    %1163 = arith.subf %1161, %1162 : vector<16x128xf32>
    %c9_i32 = arith.constant 9 : i32
    %c15_i32_365 = arith.constant 15 : i32
    %1164 = tpu.dynamic_rotate %1078 by %c15_i32_365 dim 0 : vector<16x128xf32>, i32 -> vector<16x128xf32>
    %cst_366 = arith.constant 1.000000e+00 : f32
    %1165 = vector.shape_cast %63 : vector<16x1xi1> to vector<16x1xi1>
    %1166 = vector.broadcast %1165 : vector<16x1xi1> to vector<16x128xi1>
    %1167 = vector.broadcast %cst_366 : f32 to vector<16x128xf32>
    %1168 = arith.select %1166, %1167, %1164 : vector<16x128xi1>, vector<16x128xf32>
    %c1_i32_367 = arith.constant 1 : i32
    %1169 = tpu.dynamic_rotate %1078 by %c1_i32_367 dim 0 : vector<16x128xf32>, i32 -> vector<16x128xf32>
    %cst_368 = arith.constant 1.000000e+00 : f32
    %1170 = vector.shape_cast %65 : vector<16x1xi1> to vector<16x1xi1>
    %1171 = vector.broadcast %1170 : vector<16x1xi1> to vector<16x128xi1>
    %1172 = vector.broadcast %cst_368 : f32 to vector<16x128xf32>
    %1173 = arith.select %1171, %1172, %1169 : vector<16x128xi1>, vector<16x128xf32>
    %1174 = arith.minimumf %1168, %1078 : vector<16x128xf32>
    %1175 = arith.minimumf %1174, %1173 : vector<16x128xf32>
    %c127_i32_369 = arith.constant 127 : i32
    %1176 = tpu.dynamic_rotate %1078 by %c127_i32_369 dim 1 : vector<16x128xf32>, i32 -> vector<16x128xf32>
    %cst_370 = arith.constant 1.000000e+00 : f32
    %1177 = vector.shape_cast %67 : vector<1x128xi1> to vector<1x128xi1>
    %1178 = vector.broadcast %1177 : vector<1x128xi1> to vector<16x128xi1>
    %1179 = vector.broadcast %cst_370 : f32 to vector<16x128xf32>
    %1180 = arith.select %1178, %1179, %1176 : vector<16x128xi1>, vector<16x128xf32>
    %c1_i32_371 = arith.constant 1 : i32
    %1181 = tpu.dynamic_rotate %1078 by %c1_i32_371 dim 1 : vector<16x128xf32>, i32 -> vector<16x128xf32>
    %cst_372 = arith.constant 1.000000e+00 : f32
    %1182 = vector.shape_cast %69 : vector<1x128xi1> to vector<1x128xi1>
    %1183 = vector.broadcast %1182 : vector<1x128xi1> to vector<16x128xi1>
    %1184 = vector.broadcast %cst_372 : f32 to vector<16x128xf32>
    %1185 = arith.select %1183, %1184, %1181 : vector<16x128xi1>, vector<16x128xf32>
    %1186 = arith.minimumf %1180, %1078 : vector<16x128xf32>
    %1187 = arith.minimumf %1186, %1185 : vector<16x128xf32>
    %1188 = arith.minimumf %1175, %1187 : vector<16x128xf32>
    %c15_i32_373 = arith.constant 15 : i32
    %1189 = tpu.dynamic_rotate %1103 by %c15_i32_373 dim 0 : vector<16x128xf32>, i32 -> vector<16x128xf32>
    %cst_374 = arith.constant 1.000000e+00 : f32
    %1190 = vector.shape_cast %63 : vector<16x1xi1> to vector<16x1xi1>
    %1191 = vector.broadcast %1190 : vector<16x1xi1> to vector<16x128xi1>
    %1192 = vector.broadcast %cst_374 : f32 to vector<16x128xf32>
    %1193 = arith.select %1191, %1192, %1189 : vector<16x128xi1>, vector<16x128xf32>
    %c1_i32_375 = arith.constant 1 : i32
    %1194 = tpu.dynamic_rotate %1103 by %c1_i32_375 dim 0 : vector<16x128xf32>, i32 -> vector<16x128xf32>
    %cst_376 = arith.constant 1.000000e+00 : f32
    %1195 = vector.shape_cast %65 : vector<16x1xi1> to vector<16x1xi1>
    %1196 = vector.broadcast %1195 : vector<16x1xi1> to vector<16x128xi1>
    %1197 = vector.broadcast %cst_376 : f32 to vector<16x128xf32>
    %1198 = arith.select %1196, %1197, %1194 : vector<16x128xi1>, vector<16x128xf32>
    %1199 = arith.minimumf %1193, %1103 : vector<16x128xf32>
    %1200 = arith.minimumf %1199, %1198 : vector<16x128xf32>
    %c127_i32_377 = arith.constant 127 : i32
    %1201 = tpu.dynamic_rotate %1103 by %c127_i32_377 dim 1 : vector<16x128xf32>, i32 -> vector<16x128xf32>
    %cst_378 = arith.constant 1.000000e+00 : f32
    %1202 = vector.shape_cast %67 : vector<1x128xi1> to vector<1x128xi1>
    %1203 = vector.broadcast %1202 : vector<1x128xi1> to vector<16x128xi1>
    %1204 = vector.broadcast %cst_378 : f32 to vector<16x128xf32>
    %1205 = arith.select %1203, %1204, %1201 : vector<16x128xi1>, vector<16x128xf32>
    %c1_i32_379 = arith.constant 1 : i32
    %1206 = tpu.dynamic_rotate %1103 by %c1_i32_379 dim 1 : vector<16x128xf32>, i32 -> vector<16x128xf32>
    %cst_380 = arith.constant 1.000000e+00 : f32
    %1207 = vector.shape_cast %69 : vector<1x128xi1> to vector<1x128xi1>
    %1208 = vector.broadcast %1207 : vector<1x128xi1> to vector<16x128xi1>
    %1209 = vector.broadcast %cst_380 : f32 to vector<16x128xf32>
    %1210 = arith.select %1208, %1209, %1206 : vector<16x128xi1>, vector<16x128xf32>
    %1211 = arith.minimumf %1205, %1103 : vector<16x128xf32>
    %1212 = arith.minimumf %1211, %1210 : vector<16x128xf32>
    %1213 = arith.minimumf %1200, %1212 : vector<16x128xf32>
    %c15_i32_381 = arith.constant 15 : i32
    %1214 = tpu.dynamic_rotate %1188 by %c15_i32_381 dim 0 : vector<16x128xf32>, i32 -> vector<16x128xf32>
    %cst_382 = arith.constant 0.000000e+00 : f32
    %1215 = vector.shape_cast %63 : vector<16x1xi1> to vector<16x1xi1>
    %1216 = vector.broadcast %1215 : vector<16x1xi1> to vector<16x128xi1>
    %1217 = vector.broadcast %cst_382 : f32 to vector<16x128xf32>
    %1218 = arith.select %1216, %1217, %1214 : vector<16x128xi1>, vector<16x128xf32>
    %c1_i32_383 = arith.constant 1 : i32
    %1219 = tpu.dynamic_rotate %1188 by %c1_i32_383 dim 0 : vector<16x128xf32>, i32 -> vector<16x128xf32>
    %cst_384 = arith.constant 0.000000e+00 : f32
    %1220 = vector.shape_cast %65 : vector<16x1xi1> to vector<16x1xi1>
    %1221 = vector.broadcast %1220 : vector<16x1xi1> to vector<16x128xi1>
    %1222 = vector.broadcast %cst_384 : f32 to vector<16x128xf32>
    %1223 = arith.select %1221, %1222, %1219 : vector<16x128xi1>, vector<16x128xf32>
    %1224 = arith.maximumf %1218, %1188 : vector<16x128xf32>
    %1225 = arith.maximumf %1224, %1223 : vector<16x128xf32>
    %c127_i32_385 = arith.constant 127 : i32
    %1226 = tpu.dynamic_rotate %1225 by %c127_i32_385 dim 1 : vector<16x128xf32>, i32 -> vector<16x128xf32>
    %cst_386 = arith.constant 0.000000e+00 : f32
    %1227 = vector.shape_cast %67 : vector<1x128xi1> to vector<1x128xi1>
    %1228 = vector.broadcast %1227 : vector<1x128xi1> to vector<16x128xi1>
    %1229 = vector.broadcast %cst_386 : f32 to vector<16x128xf32>
    %1230 = arith.select %1228, %1229, %1226 : vector<16x128xi1>, vector<16x128xf32>
    %c1_i32_387 = arith.constant 1 : i32
    %1231 = tpu.dynamic_rotate %1225 by %c1_i32_387 dim 1 : vector<16x128xf32>, i32 -> vector<16x128xf32>
    %cst_388 = arith.constant 0.000000e+00 : f32
    %1232 = vector.shape_cast %69 : vector<1x128xi1> to vector<1x128xi1>
    %1233 = vector.broadcast %1232 : vector<1x128xi1> to vector<16x128xi1>
    %1234 = vector.broadcast %cst_388 : f32 to vector<16x128xf32>
    %1235 = arith.select %1233, %1234, %1231 : vector<16x128xi1>, vector<16x128xf32>
    %1236 = arith.maximumf %1230, %1225 : vector<16x128xf32>
    %1237 = arith.maximumf %1236, %1235 : vector<16x128xf32>
    %1238 = arith.subf %1078, %1237 : vector<16x128xf32>
    %1239 = vector.broadcast %cst_72 : f32 to vector<16x128xf32>
    %1240 = arith.maximumf %1238, %1239 : vector<16x128xf32>
    %c15_i32_389 = arith.constant 15 : i32
    %1241 = tpu.dynamic_rotate %1213 by %c15_i32_389 dim 0 : vector<16x128xf32>, i32 -> vector<16x128xf32>
    %cst_390 = arith.constant 0.000000e+00 : f32
    %1242 = vector.shape_cast %63 : vector<16x1xi1> to vector<16x1xi1>
    %1243 = vector.broadcast %1242 : vector<16x1xi1> to vector<16x128xi1>
    %1244 = vector.broadcast %cst_390 : f32 to vector<16x128xf32>
    %1245 = arith.select %1243, %1244, %1241 : vector<16x128xi1>, vector<16x128xf32>
    %c1_i32_391 = arith.constant 1 : i32
    %1246 = tpu.dynamic_rotate %1213 by %c1_i32_391 dim 0 : vector<16x128xf32>, i32 -> vector<16x128xf32>
    %cst_392 = arith.constant 0.000000e+00 : f32
    %1247 = vector.shape_cast %65 : vector<16x1xi1> to vector<16x1xi1>
    %1248 = vector.broadcast %1247 : vector<16x1xi1> to vector<16x128xi1>
    %1249 = vector.broadcast %cst_392 : f32 to vector<16x128xf32>
    %1250 = arith.select %1248, %1249, %1246 : vector<16x128xi1>, vector<16x128xf32>
    %1251 = arith.maximumf %1245, %1213 : vector<16x128xf32>
    %1252 = arith.maximumf %1251, %1250 : vector<16x128xf32>
    %c127_i32_393 = arith.constant 127 : i32
    %1253 = tpu.dynamic_rotate %1252 by %c127_i32_393 dim 1 : vector<16x128xf32>, i32 -> vector<16x128xf32>
    %cst_394 = arith.constant 0.000000e+00 : f32
    %1254 = vector.shape_cast %67 : vector<1x128xi1> to vector<1x128xi1>
    %1255 = vector.broadcast %1254 : vector<1x128xi1> to vector<16x128xi1>
    %1256 = vector.broadcast %cst_394 : f32 to vector<16x128xf32>
    %1257 = arith.select %1255, %1256, %1253 : vector<16x128xi1>, vector<16x128xf32>
    %c1_i32_395 = arith.constant 1 : i32
    %1258 = tpu.dynamic_rotate %1252 by %c1_i32_395 dim 1 : vector<16x128xf32>, i32 -> vector<16x128xf32>
    %cst_396 = arith.constant 0.000000e+00 : f32
    %1259 = vector.shape_cast %69 : vector<1x128xi1> to vector<1x128xi1>
    %1260 = vector.broadcast %1259 : vector<1x128xi1> to vector<16x128xi1>
    %1261 = vector.broadcast %cst_396 : f32 to vector<16x128xf32>
    %1262 = arith.select %1260, %1261, %1258 : vector<16x128xi1>, vector<16x128xf32>
    %1263 = arith.maximumf %1257, %1252 : vector<16x128xf32>
    %1264 = arith.maximumf %1263, %1262 : vector<16x128xf32>
    %1265 = arith.subf %1103, %1264 : vector<16x128xf32>
    %1266 = vector.broadcast %cst_72 : f32 to vector<16x128xf32>
    %1267 = arith.maximumf %1265, %1266 : vector<16x128xf32>
    %1268 = arith.addf %1160, %1240 : vector<16x128xf32>
    %1269 = arith.mulf %1160, %1240 : vector<16x128xf32>
    %1270 = arith.subf %1268, %1269 : vector<16x128xf32>
    %1271 = arith.addf %1163, %1267 : vector<16x128xf32>
    %1272 = arith.mulf %1163, %1267 : vector<16x128xf32>
    %1273 = arith.subf %1271, %1272 : vector<16x128xf32>
    %1274 = vector.shape_cast %53 : vector<16x128xf32> to vector<1x16x128xf32>
    %cst_397 = arith.constant dense<0.000000e+00> : vector<1xf32>
    %1275 = vector.multi_reduction <add>, %1274, %cst_397 [1, 2] : vector<1x16x128xf32> to vector<1xf32>
    %1276 = vector.shape_cast %1275 : vector<1xf32> to vector<1x1x1xf32>
    %1277 = vector.extract %1276[0, 0, 0] : f32 from vector<1x1x1xf32>
    %1278 = arith.mulf %53, %1270 : vector<16x128xf32>
    %1279 = vector.shape_cast %1278 : vector<16x128xf32> to vector<1x16x128xf32>
    %cst_398 = arith.constant dense<0.000000e+00> : vector<1xf32>
    %1280 = vector.multi_reduction <add>, %1279, %cst_398 [1, 2] : vector<1x16x128xf32> to vector<1xf32>
    %1281 = vector.shape_cast %1280 : vector<1xf32> to vector<1x1x1xf32>
    %1282 = vector.extract %1281[0, 0, 0] : f32 from vector<1x1x1xf32>
    %1283 = arith.mulf %53, %1273 : vector<16x128xf32>
    %1284 = vector.shape_cast %1283 : vector<16x128xf32> to vector<1x16x128xf32>
    %cst_399 = arith.constant dense<0.000000e+00> : vector<1xf32>
    %1285 = vector.multi_reduction <add>, %1284, %cst_399 [1, 2] : vector<1x16x128xf32> to vector<1xf32>
    %1286 = vector.shape_cast %1285 : vector<1xf32> to vector<1x1x1xf32>
    %1287 = vector.extract %1286[0, 0, 0] : f32 from vector<1x1x1xf32>
    %1288 = tpu.iota {dimensions = array<i32: 1>} : vector<1x8x128xi32>
    %c0_i32_400 = arith.constant 0 : i32
    %1289 = vector.broadcast %c0_i32_400 : i32 to vector<1x8x128xi32>
    %1290 = arith.cmpi eq, %1288, %1289 : vector<1x8x128xi32>
    %c1_i32_401 = arith.constant 1 : i32
    %1291 = vector.broadcast %c1_i32_401 : i32 to vector<1x8x128xi32>
    %1292 = arith.cmpi eq, %1288, %1291 : vector<1x8x128xi32>
    %c2_i32_402 = arith.constant 2 : i32
    %1293 = vector.broadcast %c2_i32_402 : i32 to vector<1x8x128xi32>
    %1294 = arith.cmpi eq, %1288, %1293 : vector<1x8x128xi32>
    %cst_403 = arith.constant 0.000000e+00 : f32
    %1295 = vector.broadcast %1287 : f32 to vector<1x8x128xf32>
    %1296 = vector.broadcast %cst_403 : f32 to vector<1x8x128xf32>
    %1297 = arith.select %1294, %1295, %1296 : vector<1x8x128xi1>, vector<1x8x128xf32>
    %1298 = vector.broadcast %1282 : f32 to vector<1x8x128xf32>
    %1299 = arith.select %1292, %1298, %1297 : vector<1x8x128xi1>, vector<1x8x128xf32>
    %1300 = vector.broadcast %1277 : f32 to vector<1x8x128xf32>
    %1301 = arith.select %1290, %1300, %1299 : vector<1x8x128xi1>, vector<1x8x128xf32>
    %c0_404 = arith.constant 0 : index
    %c0_405 = arith.constant 0 : index
    %c0_406 = arith.constant 0 : index
    %1302 = vector.load %arg3[%c0_404, %c0_405, %c0_406] : memref<1x8x128xf32, #tpu.memory_space<vmem>>, vector<1x8x128xf32>
    tpu.vector_store %arg3[%c0_404, %c0_405, %c0_406], %1301 {strides = array<i32>} : memref<1x8x128xf32, #tpu.memory_space<vmem>>, vector<1x8x128xf32>,
    return
  }
  func.func @transform_0(%arg0: i32) -> (i32, i32, i32, i32) {
    %c0_i32 = arith.constant 0 : i32
    %c0_i32_0 = arith.constant 0 : i32
    %c0_i32_1 = arith.constant 0 : i32
    %c0_i32_2 = arith.constant 0 : i32
    return %arg0, %c0_i32, %c0_i32_0, %c0_i32_1 : i32, i32, i32, i32
  }
  func.func @transform_1(%arg0: i32) -> (i32, i32, i32, i32) {
    %c0_i32 = arith.constant 0 : i32
    %c0_i32_0 = arith.constant 0 : i32
    %c0_i32_1 = arith.constant 0 : i32
    %c0_i32_2 = arith.constant 0 : i32
    return %arg0, %c0_i32, %c0_i32_0, %c0_i32_1 : i32, i32, i32, i32
  }
  func.func @transform_2(%arg0: i32) -> (i32, i32, i32) {
    %c0_i32 = arith.constant 0 : i32
    %c0_i32_0 = arith.constant 0 : i32
    %c0_i32_1 = arith.constant 0 : i32
    return %arg0, %c0_i32, %c0_i32_0 : i32, i32, i32
  }
}

</mosaic_0001>

<bundles_post_ra>
// kernel: tpu_custom_call.1
= control target key start
LH: loop header
LB: loop body
LE: loop exit
PB: predicated region body
PF: predicated region fallthrough
CT: control target
= control target key end

     0   :  { %7 = vsyncpa [#allocation3], 0  ;;  %s4448_s0 = inlined_call_operand.hbm [shape: f32[2,4,16,128], index: 0, kind: input, shape index: {}]   ;;  %s4449_s1 = inlined_call_operand.hbm [shape: s32[2,1,16,128], index: 1, kind: input, shape index: {}]   ;;  %s4450_s2 = inlined_call_operand.hbm [shape: f32[2,8,128], index: 2, kind: output, shape index: {}]  }
   0x1   :  { %9 = vsyncpa [#allocation3 + $0x1], 0 }
   0x2   :  { %10 = vsyncpa [#allocation6], 0 }
   0x3   :  { %12 = vsyncpa [#allocation6 + $0x1], 0 }
   0x4   :  { %13 = vsyncpa [#allocation4], 0 }
   0x5   :  { %15 = vsyncpa [#allocation4 + $0x1], 0  ;;  %s2454_s9 = smov 0   ;;  %s2456_s10 = smov 0  }
   0x6   :  { %s2458_s11 = smov 0   ;;  %s2460_s12 = smov 0  }
   0x7 LB: > { %s2475_s13 = sadd.s32 4294967295, %s2429_s12   ;;  %s1964_s14 = sadd.s32 4294967294, %s2429_s12   ;;  %s2429_s12 = sphi %s2460_s12, %s4633_s12   ;;  %s2425_s11 = sphi %s2458_s11, %s4632_s11   ;;  %s2421_s10 = sphi %s2456_s10, %s4631_s10   ;;  %s2417_s9 = sphi %s2454_s9, %s4630_s9  }
   0x8   : > { %s2479_s15 = sadd.s32 1, %s2429_s12   ;;  %s28_s16 = sadd.s32 1, %s2425_s11 }
   0x9   : > { %s25_s17 = ssub.s32 %s2429_s12, %s2479_s15  ;;  %p35_p0 = scmp.ne.s32.totalorder %s2425_s11, %s2421_s10 }
   0xa   : > { %p26_p1 = scmp.eq.s32.totalorder %s25_s17, 0  ;;  %p36_p2 = scmp.eq.s32.totalorder %s2429_s12, 0 }
   0xb   : > { %p41_p3 = scmp.ne.s32.totalorder %s2421_s10, %s2417_s9  ;;  %p42_p4 = scmp.eq.s32.totalorder %s2475_s13, 0 }
   0xc   : > { %s2491_s18 = scalar_select %p26_p1, %s2425_s11, %s28_s16  }
   0xd   : > { %p2493_p5 = por %p36_p2, %p35_p0  ;;  %p2497_p6 = por %p42_p4, %p41_p3 }
   0xe   : > { %p91_p7 = scmp.eq.s32.totalorder %s2475_s13, 1  ;;  %p97_p8 = scmp.eq.s32.totalorder %s1964_s14, 1 }
   0xf   : > { %s4509_s20 = scalar_select %p2497_p6, 1, 0 }
  0x10   : > { %p2014_p10 = scmp.lt.s32.totalorder %s2429_s12, 2  ;;  %p2504_p11 = por %p91_p7, %p35_p0 }
  0x11   : > { %p2508_p12 = por %p97_p8, %p41_p3  ;;  %s2513_s23 = sand.u32 1, %s2425_s11  }
  0x12   : > { %s4510_s21 = scalar_select %p2504_p11, 1, 0 }
  0x13   : > { %s4511_s22 = scalar_select %p2508_p12, 1, 0 }
  0x14   : > { %s1989_s24 = sshll.u32 %s2429_s12, 10  ;;  %s1967_s25 = sshll.u32 %s2513_s23, 6 }
  0x15   : > { %s2520_s28 = scalar_lea.hbm %s4448_s0, %s1989_s24  ;;  %s121_s29 = scalar_lea.vmem [#allocation2], %s1967_s25 }
  0x16   : > { %s128_s30 = sshll.u32 %s121_s29, 4  ;;  %p2524_p13 = pnand %p2014_p10, %p2493_p5  ;;  %s2528_s30 = int_to_ptr.vmem [resolvable:$true] %s128_s30 }
  0x17   : > { %s118_s4 = scalar_lea.sflag [#allocation3], %s2513_s23  ;;  %s2305_s5 = scalar_lea.hbm %s2520_s28, 1024 }
  0x18   : > { %p2306_p0 = scmp.ne.s32.totalorder %s2520_s28, %s2305_s5  ;;  %p2307_p1 = pneg %p2524_p13 }
  0x19   : > { %s2310_s8 = scalar_lea.hbm %s4448_s0, 2048  ;;  %p2311_p4 = scmp.lt.s32.totalorder %s2520_s28, %s4448_s0 }
  0x1a   : > { %p2308_p2 = pnand %p2307_p1, %p2306_p0  ;;  %p2312_p5 = scmp.lt.s32.totalorder %s2310_s8, %s2305_s5 }
  0x1c   : > { %p2309_p3 = pneg %p2308_p2  ;;  %p2313_p7 = por %p2312_p5, %p2311_p4 }
  0x1e   : > { %p2314_p8 = pnand %p2313_p7, %p2309_p3 }
  0x20   : > { %2317 = shalt.err (!%p2314_p8)
}
  0x21   : > { %s2318_s17 = scalar_lea.vmem %s2528_s30, 1024  ;;  %s2431_s19 = smov [#allocation2]  }
  0x22   : > { %p2319_p10 = scmp.ne.s32.totalorder %s2528_s30, %s2318_s17  ;;  %s2323_s24 = sshll.u32 %s2431_s19, 4  ;;  %s2324_s24 = int_to_ptr.vmem [resolvable:$false] %s2323_s24 }
  0x23   : > { %s2325_s25 = scalar_lea.vmem %s2324_s24, 2048  ;;  %p2326_p9 = scmp.lt.s32.totalorder %s2528_s30, %s2324_s24 }
  0x24   : > { %p2321_p0 = pnand %p2319_p10, %p2307_p1  ;;  %p2327_p12 = scmp.lt.s32.totalorder %s2325_s25, %s2318_s17 }
  0x26   : > { %p2322_p2 = pneg %p2321_p0  ;;  %p2328_p11 = por %p2327_p12, %p2326_p9 }
  0x28   : > { %p2329_p4 = pnand %p2328_p11, %p2322_p2 }
  0x2a   : > { %2332 = shalt.err (!%p2329_p4)
}
  0x2b   : > { %s2432_s26 = smov 128   ;;  %s2433_s27 = smov 8  }
  0x2c   : > { %2006 = dma.hbm_to_vmem [thread:$0]  (!%p2524_p13), %s2520_s28, 1024, %s2528_s30, %s118_s4, %s2432_s26, %s2432_s26, %s2433_s27  }
  0x2d   : > { %p1973_p9 = scmp.ge.s32.totalorder %s2429_s12, 1  ;;  %p157_p11 = scmp.lt.s32.totalorder %s2429_s12, 3 }
  0x2e   : > { %s1970_s29 = sshll.u32 %s2513_s23, 4  ;;  %s1990_s6 = sshll.u32 %s2429_s12, 8 }
  0x2f   : > { %p2563_p12 = pnand %p1973_p9, %p157_p11  ;;  %s142_s7 = scalar_lea.vmem [#allocation5], %s1970_s29 }
  0x30   : > { %s149_s8 = sshll.u32 %s142_s7, 4  ;;  %s2571_s17 = scalar_lea.hbm %s4449_s1, %s1990_s6  ;;  %s2573_s8 = int_to_ptr.vmem [resolvable:$true] %s149_s8 }
  0x31   : > { %s139_s28 = scalar_lea.sflag [#allocation6], %s2513_s23  ;;  %s2333_s30 = scalar_lea.hbm %s2571_s17, 256 }
  0x32   : > { %p2334_p3 = scmp.ne.s32.totalorder %s2571_s17, %s2333_s30  ;;  %s2338_s24 = scalar_lea.hbm %s4449_s1, 512 }
  0x33   : > { %p2339_p8 = scmp.lt.s32.totalorder %s2571_s17, %s4449_s1  ;;  %p2340_p10 = scmp.lt.s32.totalorder %s2338_s24, %s2333_s30 }
  0x34   : > { %p2336_p5 = pnand %p2334_p3, %p2307_p1 }
  0x35   : > { %p2341_p0 = por %p2340_p10, %p2339_p8 }
  0x36   : > { %p2337_p7 = pneg %p2336_p5 }
  0x38   : > { %p2342_p2 = pnand %p2341_p0, %p2337_p7 }
  0x3a   : > { %2345 = shalt.err (!%p2342_p2)
}
  0x3b   : > { %s2346_s23 = scalar_lea.vmem %s2573_s8, 256  ;;  %s2434_s6 = smov [#allocation5]  }
  0x3c   : > { %p2347_p4 = scmp.ne.s32.totalorder %s2573_s8, %s2346_s23  ;;  %s2351_s7 = sshll.u32 %s2434_s6, 4  ;;  %s2352_s7 = int_to_ptr.vmem [resolvable:$false] %s2351_s7 }
  0x3d   : > { %s2353_s14 = scalar_lea.vmem %s2352_s7, 512  ;;  %p2354_p3 = scmp.lt.s32.totalorder %s2573_s8, %s2352_s7 }
  0x3e   : > { %p2349_p9 = pnand %p2347_p4, %p2307_p1  ;;  %p2355_p5 = scmp.lt.s32.totalorder %s2353_s14, %s2346_s23 }
  0x40   : > { %p2350_p11 = pneg %p2349_p9  ;;  %p2356_p6 = por %p2355_p5, %p2354_p3 }
  0x42   : > { %p2357_p8 = pnand %p2356_p6, %p2350_p11 }
  0x44   : > { %2360 = shalt.err (!%p2357_p8)
}
  0x45   : > { %2009 = dma.hbm_to_vmem [thread:$0]  (!%p2524_p13), %s2571_s17, 256, %s2573_s8, %s139_s28, %s2432_s26, %s2432_s26, %s2433_s27  }
  0x46   : > { %161 = sbr.rel (%p2563_p12) target bundleno = 1860 (0x744), region = 28 }
  0x4b   : > { %s2604_s16 = sand.u32 1, %s2421_s10   ;;  %p4514_p6 = scmp.ne.s32.totalorder %s4509_s20, 0 }
  0x4c   : > { %s1974_s30 = sshll.u32 %s2604_s16, 6  ;;  %s164_s4 = scalar_lea.sflag [#allocation3], %s2604_s16 }
  0x4d   : > { %s2608_s19 = scalar_lea.vmem [#allocation2], %s1974_s30 }
  0x4e   : > { %2404 = dma.done.wait (%p4514_p6), %s164_s4, 1024  }
  0x4f   : > { %2406 = vsyncadd (%p4514_p6), %s164_s4, 4294966272  ;;  %s1975_s3 = sshll.u32 %s2604_s16, 4  ;;  %s173_s26 = scalar_lea.sflag [#allocation6], %s2604_s16 }
  0x50   : > { %s2616_s27 = scalar_lea.vmem [#allocation5], %s1975_s3 }
  0x51   : > { %2408 = dma.done.wait (%p4514_p6), %s173_s26, 256  }
  0x52   : > { %2410 = vsyncadd (%p4514_p6), %s173_s26, 4294967040  ;;  %v202_v0 = vld [vmem:[%s2616_s27] sm:$0xff]  ;;  %v203_v1 = vld [vmem:[%s2616_s27 + $0x8] sm:$0xff]  ;;  %v2435_v11 = vmov 0.0   ;;  %s2436_s20 = smov 127   ;;  %s2437_s5 = smov 1   ;;  %v289_v56 = vlaneseq }
  0x53   : > { %v204_v2 = vld [vmem:[%s2608_s19] sm:$0xff]  ;;  %v205_v3 = vld [vmem:[%s2608_s19 + $0x8] sm:$0xff]  ;;  %v1977_v4 = vld [vmem:[%s2608_s19 + $0x10] sm:$0xff]  ;;  %vm215_vm0 = vcmp.eq.s32.totalorder %v202_v0, 1  ;;  %vm216_vm1 = vcmp.eq.s32.totalorder %v203_v1, 1  ;;  %s1976_s8 = sshll.u32 %s2604_s16, 3 }
  0x54   : > { %v1978_v5 = vld [vmem:[%s2608_s19 + $0x18] sm:$0xff]  ;;  %v213_v6 = vmax.f32 %v204_v2, %v1977_v4  ;;  %v1979_v9 = vld [vmem:[%s2608_s19 + $0x20] sm:$0xff]  ;;  %v1980_v10 = vld [vmem:[%s2608_s19 + $0x28] sm:$0xff]  ;;  %v2632_v12 = vsel %vm215_vm0, 1.0, %v2435_v11  ;;  %v2636_v15 = vsel %vm216_vm1, 1.0, %v2435_v11  ;;  %v2638_v16 = vsel %vm215_vm0, %v1977_v4, 0.0 }
  0x55   : > { %v214_v7 = vmax.f32 %v205_v3, %v1978_v5  ;;  %v2628_v8 = vsel %vm216_vm1, %v1978_v5, 0.0  ;;  %v1981_v13 = vld [vmem:[%s2608_s19 + $0x30] sm:$0xff]  ;;  %v1982_v14 = vld [vmem:[%s2608_s19 + $0x38] sm:$0xff]  ;;  %4516 = vst [vmem:[#allocation12_spill] sm:$0xff] %v2638_v16  ;;  %v2053_v19 = vpack.i.bf16 %v2636_v15, %v2632_v12  ;;  %v2674_v57 = vshrl.u32 %v289_v56, 7  ;;  %s1986_s24 = sshll.u32 %s2475_s13, 7 }
  0x56   : > { %4515 = vst [vmem:[#allocation11_spill] sm:$0xff] %v2628_v8  ;;  %v224_v17 = vmax.f32 %v213_v6, %v1979_v9  ;;  %v301_v59 = vrot.slane %v2636_v15, 1  ;;  %v300_v60 = vrot.slane %v2632_v12, 1  ;;  %v312_v61 = vrot.slane %v2636_v15, 7  ;;  %s201_s29 = scalar_lea.vmem [#allocation7], %s1976_s8  ;;  %s4409_s14 = scalar_lea.hbm %s4450_s2, %s1986_s24 }
  0x57   : > { %v225_v18 = vmax.f32 %v214_v7, %v1980_v10  ;;  %2054 = vrot.lane.b32.xlu0 %v2053_v19, %s2436_s20  ;;  %2059 = vrot.lane.b32.xlu1 %v2053_v19, %s2437_s5  ;;  %4522 = vst [vmem:[#allocation18_spill] sm:$0xff] %v2674_v57  ;;  %v2677_v58 = vadd.s32 8, %v2674_v57  ;;  %vm302_vm2 = vcmp.lt.s32.totalorder %v2674_v57, 7  ;;  %v311_v62 = vrot.slane %v2632_v12, 7  ;;  %s1871_s23 = sshll.u32 %s201_s29, 4  ;;  %s1858_s13 = scalar_lea.sflag [#allocation4], %s2604_s16  ;;  %s1872_s23 = int_to_ptr.vmem [resolvable:$true] %s1871_s23 }
  0x58   : > { %v2642_v20 = vmax.f32 %v224_v17, %v1981_v13  ;;  %vm313_vm4 = vcmp.lt.s32.totalorder %v2674_v57, 1  ;;  %v304_v63 = vsel %vm302_vm2, %v301_v59, %v300_v60  ;;  %v2688_v0 = vand.u32 127, %v289_v56  ;;  %s2361_s30 = scalar_lea.vmem %s1872_s23, 128  ;;  %p4627_p1 = scmp.ne.s32.totalorder %s4510_s21, 0 }
  0x59   : > { %v2644_v21 = vmax.f32 %v225_v18, %v1982_v14  ;;  %vm295_vm3 = vcmp.eq.s32.totalorder %v2677_v58, 15  ;;  %vm296_vm5 = vcmp.eq.s32.totalorder %v2674_v57, 0  ;;  %v303_v1 = vsel %vm302_vm2, %v300_v60, %v301_v59  ;;  %p2362_p13 = scmp.ne.s32.totalorder %s1872_s23, %s2361_s30  ;;  %s2438_s4 = smov [#allocation7]  }
  0x5a   : > { %4517 = vst [vmem:[#allocation13_spill] sm:$0xff] %v2642_v20  ;;  %v243_v22 = vsub.f32 %v204_v2, %v2642_v20  ;;  %v249_v24 = vsub.f32 %v1977_v4, %v2642_v20  ;;  %v257_v26 = vsub.f32 %v1979_v9, %v2642_v20  ;;  %v265_v31 = vsub.f32 %v1981_v13, %v2642_v20 }
  0x5b   : > { %4518 = vst [vmem:[#allocation14_spill] sm:$0xff] %v2644_v21  ;;  %v244_v23 = vsub.f32 %v205_v3, %v2644_v21  ;;  %v250_v25 = vsub.f32 %v1978_v5, %v2644_v21  ;;  %v258_v27 = vsub.f32 %v1980_v10, %v2644_v21  ;;  %v266_v33 = vsub.f32 %v1982_v14, %v2644_v21  ;;  %p2363_p12 = pnand %p2362_p13, %p4627_p1 }
  0x5c   : > { %v245_v28 = vmul.f32 1.442695, %v243_v22  ;;  %v251_v30 = vmul.f32 1.442695, %v249_v24  ;;  %v259_v34 = vmul.f32 1.442695, %v257_v26  ;;  %v315_v3 = vsel %vm313_vm4, %v312_v61, %v311_v62 }
  0x5d   : > { %v247_v29 = vmul.f32 1.442695, %v244_v23  ;;  %v253_v32 = vmul.f32 1.442695, %v250_v25  ;;  %v261_v35 = vmul.f32 1.442695, %v258_v27  ;;  %v314_v6 = vsel %vm313_vm4, %v311_v62, %v312_v61  ;;  %p2364_p7 = pneg %p2363_p12 }
  0x5e   : > { %2273 = vpow2.f32 %v245_v28  ;;  %v267_v36 = vmul.f32 1.442695, %v265_v31  ;;  %v269_v37 = vmul.f32 1.442695, %v266_v33  ;;  %v310_v2 = vsel %vm295_vm3, 1.0, %v304_v63 }
  0x5f   : > { %2275 = vpow2.f32 %v247_v29  ;;  %vm298_vm6 = vcmp.eq.s32.totalorder %v2688_v0, 127  ;;  %vm299_vm7 = vcmp.eq.s32.totalorder %v2688_v0, 0  ;;  %v320_v7 = vsel %vm296_vm5, 1.0, %v315_v3 }
  0x60   : > { %2277 = vpow2.f32 %v251_v30  ;;  %v322_v9 = vmin.f32 %v303_v1, %v2632_v12  ;;  %v323_v10 = vmin.f32 %v310_v2, %v2636_v15 }
  0x61   : > { %2279 = vpow2.f32 %v253_v32 }
  0x62   : > { %2281 = vpow2.f32 %v259_v34  ;;  %v324_v26 = vmin.f32 %v322_v9, %v320_v7  ;;  %v325_v27 = vmin.f32 %v323_v10, %v314_v6 }
  0x63   : > { %2283 = vpow2.f32 %v261_v35 }
  0x64   : > { %2285 = vpow2.f32 %v267_v36 }
  0x65   : > { %2287 = vpow2.f32 %v269_v37 }
  0x6b   : > { %v2274_v38 = vpop.eup %2273 }
  0x6c   : > { %v2276_v39 = vpop.eup %2275 }
  0x6d   : > { %v2278_v40 = vpop.eup %2277 }
  0x6e   : > { %v2280_v41 = vpop.eup %2279  ;;  %v255_v42 = vadd.f32 %v2278_v40, %v2274_v38 }
  0x6f   : > { %v2282_v43 = vpop.eup %2281  ;;  %v256_v44 = vadd.f32 %v2280_v41, %v2276_v39 }
  0x70   : > { %v2284_v45 = vpop.eup %2283  ;;  %v263_v46 = vadd.f32 %v2282_v43, %v255_v42 }
  0x71   : > { %v2286_v47 = vpop.eup %2285  ;;  %v264_v48 = vadd.f32 %v2284_v45, %v256_v44 }
  0x72   : > { %v2288_v49 = vpop.eup %2287  ;;  %v2656_v50 = vadd.f32 %v2286_v47, %v263_v46 }
  0x73   : > { %v2658_v51 = vadd.f32 %v2288_v49, %v264_v48 }
  0x74   : > { %4519 = vst [vmem:[#allocation15_spill] sm:$0xff] %v2656_v50  ;;  %2289 = vrcp.f32 %v2656_v50 }
  0x75   : > { %4520 = vst [vmem:[#allocation16_spill] sm:$0xff] %v2658_v51  ;;  %2291 = vrcp.f32 %v2658_v51 }
  0x81   : > { %v2290_v52 = vpop.eup %2289 }
  0x82   : > { %v2292_v53 = vpop.eup %2291  ;;  %v2662_v54 = vmul.f32 %v2290_v52, %v2278_v40 }
  0x83   : > { %v2664_v55 = vmul.f32 %v2292_v53, %v2280_v41 }
  0x84   : > { %364 = vrot.lane.b32.xlu0 %v2662_v54, %s2436_s20  ;;  %v348_v47 = vrot.slane %v2662_v54, 1  ;;  %v354_v49 = vrot.slane %v2662_v54, 7 }
  0x85   : > { %4521 = vst [vmem:[#allocation17_spill] sm:$0xff] %v2664_v55  ;;  %366 = vrot.lane.b32.xlu1 %v2664_v55, %s2436_s20  ;;  %v349_v48 = vrot.slane %v2664_v55, 1  ;;  %v355_v52 = vrot.slane %v2664_v55, 7 }
  0x87   : > { %v351_v53 = vsel %vm302_vm2, %v349_v48, %v348_v47  ;;  %v350_v56 = vsel %vm302_vm2, %v348_v47, %v349_v48  ;;  %v357_v60 = vsel %vm313_vm4, %v355_v52, %v354_v49 }
  0x88   : > { %370 = vrot.lane.b32.xlu0 %v2662_v54, %s2437_s5  ;;  %v353_v59 = vsel %vm295_vm3, 1.0, %v351_v53  ;;  %v360_v62 = vmin.f32 %v350_v56, %v2662_v54  ;;  %v358_v3 = vsel %vm296_vm5, 1.0, %v357_v60 }
  0x89   : > { %372 = vrot.lane.b32.xlu1 %v2664_v55, %s2437_s5  ;;  %v361_v2 = vmin.f32 %v353_v59, %v2664_v55 }
  0x8a   : > { %v362_v7 = vmin.f32 %v360_v62, %v358_v3 }
  0xc9   : > { %v2055_v4 = vpop.permute.xlu0 %2054  ;;  %v2060_v5 = vpop.permute.xlu1 %2059 }
  0xca   : > { %v2057_v11 = vunpack.i.h.bf16 %v2055_v4  ;;  %v2056_v13 = vunpack.i.l.bf16 %v2055_v4  ;;  %v2062_v14 = vunpack.i.h.bf16 %v2060_v5  ;;  %v2061_v17 = vunpack.i.l.bf16 %v2060_v5 }
  0xcb   : > { %v356_v5 = vsel %vm313_vm4, %v354_v49, %v355_v52 }
  0xcc   : > { %v333_v18 = vsel %vm298_vm6, 1.0, %v2057_v11  ;;  %v332_v19 = vsel %vm298_vm6, 1.0, %v2056_v13  ;;  %v341_v22 = vsel %vm299_vm7, 1.0, %v2062_v14  ;;  %v340_v23 = vsel %vm299_vm7, 1.0, %v2061_v17 }
  0xcd   : > { %v343_v24 = vmin.f32 %v333_v18, %v2636_v15  ;;  %v342_v25 = vmin.f32 %v332_v19, %v2632_v12  ;;  %v363_v11 = vmin.f32 %v361_v2, %v356_v5 }
  0xcf   : > { %v344_v28 = vmin.f32 %v342_v25, %v340_v23  ;;  %v345_v29 = vmin.f32 %v343_v24, %v341_v22 }
  0xd1   : > { %v2715_v30 = vmin.f32 %v324_v26, %v344_v28  ;;  %v2717_v31 = vmin.f32 %v325_v27, %v345_v29 }
  0xd3   : > { %v2063_v32 = vpack.i.bf16 %v2717_v31, %v2715_v30  ;;  %v383_v33 = vrot.slane %v2717_v31, 1  ;;  %v389_v34 = vrot.slane %v2717_v31, 7  ;;  %v382_v35 = vrot.slane %v2715_v30, 1 }
  0xd4   : > { %v388_v36 = vrot.slane %v2715_v30, 7 }
  0xd5   : > { %2064 = vrot.lane.b32.xlu0 %v2063_v32, %s2436_s20  ;;  %2069 = vrot.lane.b32.xlu1 %v2063_v32, %s2437_s5  ;;  %v2729_v37 = vsel %vm302_vm2, %v382_v35, %v383_v33  ;;  %v385_v38 = vsel %vm302_vm2, %v383_v33, %v382_v35 }
  0xd6   : > { %v391_v39 = vsel %vm313_vm4, %v389_v34, %v388_v36  ;;  %v2737_v40 = vsel %vm313_vm4, %v388_v36, %v389_v34  ;;  %v387_v41 = vsel %vm295_vm3, 0.0, %v385_v38  ;;  %v394_v43 = vmax.f32 %v2729_v37, %v2715_v30 }
  0xd7   : > { %v392_v42 = vsel %vm296_vm5, 0.0, %v391_v39  ;;  %v395_v44 = vmax.f32 %v387_v41, %v2717_v31  ;;  %v456_v59 = vsel %vm296_vm5, 1.0, %v391_v39  ;;  %v458_v60 = vmin.f32 %v2729_v37, %v2715_v30 }
  0xd8   : > { %v2746_v45 = vmax.f32 %v394_v43, %v392_v42 }
  0xd9   : > { %v2749_v46 = vmax.f32 %v395_v44, %v2737_v40  ;;  %v455_v44 = vsel %vm295_vm3, 1.0, %v385_v38  ;;  %v460_v3 = vmin.f32 %v458_v60, %v456_v59 }
  0xf6   : > { %v365_v61 = vpop.permute.xlu0 %364 }
  0xf7   : > { %v367_v63 = vpop.permute.xlu1 %366  ;;  %v368_v1 = vsel %vm298_vm6, 1.0, %v365_v61  ;;  %v459_v61 = vmin.f32 %v455_v44, %v2717_v31 }
  0xf8   : > { %v369_v4 = vsel %vm298_vm6, 1.0, %v367_v63  ;;  %v376_v6 = vmin.f32 %v368_v1, %v2662_v54 }
  0xf9   : > { %v377_v10 = vmin.f32 %v369_v4, %v2664_v55  ;;  %v461_v37 = vmin.f32 %v459_v61, %v2737_v40 }
  0xfa   : > { %v371_v9 = vpop.permute.xlu0 %370 }
  0xfb   : > { %v373_v13 = vpop.permute.xlu1 %372  ;;  %v374_v14 = vsel %vm299_vm7, 1.0, %v371_v9 }
  0xfc   : > { %v375_v17 = vsel %vm299_vm7, 1.0, %v373_v13  ;;  %v378_v18 = vmin.f32 %v376_v6, %v374_v14 }
  0xfd   : > { %v379_v19 = vmin.f32 %v377_v10, %v375_v17 }
  0xfe   : > { %v2779_v22 = vmin.f32 %v362_v7, %v378_v18 }
  0xff   : > { %v2781_v23 = vmin.f32 %v363_v11, %v379_v19 }
 0x100   : > { %4523 = vst [vmem:[#allocation19_spill] sm:$0xff] %v2779_v22  ;;  %488 = vrot.lane.b32.xlu1 %v2779_v22, %s2436_s20  ;;  %v418_v24 = vrot.slane %v2779_v22, 1  ;;  %v424_v25 = vrot.slane %v2779_v22, 7 }
 0x101   : > { %4524 = vst [vmem:[#allocation20_spill] sm:$0xff] %v2781_v23  ;;  %490 = vrot.lane.b32.xlu0 %v2781_v23, %s2436_s20  ;;  %v419_v26 = vrot.slane %v2781_v23, 1  ;;  %v425_v27 = vrot.slane %v2781_v23, 7 }
 0x103   : > { %v421_v28 = vsel %vm302_vm2, %v419_v26, %v418_v24  ;;  %v2795_v29 = vsel %vm302_vm2, %v418_v24, %v419_v26  ;;  %v427_v32 = vsel %vm313_vm4, %v425_v27, %v424_v25  ;;  %v426_v41 = vsel %vm313_vm4, %v424_v25, %v425_v27 }
 0x104   : > { %496 = vrot.lane.b32.xlu1 %v2781_v23, %s2437_s5  ;;  %v428_v33 = vsel %vm296_vm5, 0.0, %v427_v32  ;;  %v430_v34 = vmax.f32 %v2795_v29, %v2779_v22  ;;  %v423_v35 = vsel %vm295_vm3, 0.0, %v421_v28  ;;  %v482_v59 = vsel %vm296_vm5, 1.0, %v427_v32 }
 0x105   : > { %494 = vrot.lane.b32.xlu0 %v2779_v22, %s2437_s5  ;;  %v431_v36 = vmax.f32 %v423_v35, %v2781_v23  ;;  %v481_v35 = vsel %vm295_vm3, 1.0, %v421_v28 }
 0x106   : > { %v2812_v42 = vmax.f32 %v430_v34, %v428_v33 }
 0x107   : > { %v2814_v43 = vmax.f32 %v431_v36, %v426_v41 }
 0x147   : > { %v2065_v47 = vpop.permute.xlu0 %2064  ;;  %v2070_v48 = vpop.permute.xlu1 %2069 }
 0x148   : > { %v2067_v49 = vunpack.i.h.bf16 %v2065_v47  ;;  %v2066_v52 = vunpack.i.l.bf16 %v2065_v47  ;;  %v2072_v53 = vunpack.i.h.bf16 %v2070_v48  ;;  %v2071_v56 = vunpack.i.l.bf16 %v2070_v48 }
 0x14a   : > { %v467_v62 = vsel %vm298_vm6, 1.0, %v2067_v49  ;;  %v466_v38 = vsel %vm298_vm6, 1.0, %v2066_v52  ;;  %v473_v63 = vsel %vm299_vm7, 1.0, %v2072_v53  ;;  %v472_v1 = vsel %vm299_vm7, 1.0, %v2071_v56 }
 0x14b   : > { %v475_v2 = vmin.f32 %v467_v62, %v2717_v31  ;;  %v474_v39 = vmin.f32 %v466_v38, %v2715_v30  ;;  %v485_v49 = vmin.f32 %v481_v35, %v2781_v23  ;;  %v484_v52 = vmin.f32 %v2795_v29, %v2779_v22 }
 0x14d   : > { %v476_v4 = vmin.f32 %v474_v39, %v472_v1  ;;  %v477_v5 = vmin.f32 %v475_v2, %v473_v63  ;;  %v487_v62 = vmin.f32 %v485_v49, %v426_v41  ;;  %v486_v1 = vmin.f32 %v484_v52, %v482_v59 }
 0x14f   : > { %v2834_v6 = vmin.f32 %v460_v3, %v476_v4  ;;  %v2836_v7 = vmin.f32 %v461_v37, %v477_v5 }
 0x151   : > { %4525 = vst [vmem:[#allocation21_spill] sm:$0xff] %v2834_v6  ;;  %4526 = vst [vmem:[#allocation22_spill] sm:$0xff] %v2836_v7  ;;  %v2078_v9 = vpack.i.bf16 %v2836_v7, %v2834_v6  ;;  %v507_v10 = vrot.slane %v2836_v7, 1  ;;  %v513_v11 = vrot.slane %v2836_v7, 7  ;;  %v506_v13 = vrot.slane %v2834_v6, 1 }
 0x152   : > { %v512_v14 = vrot.slane %v2834_v6, 7 }
 0x153   : > { %2079 = vrot.lane.b32.xlu1 %v2078_v9, %s2437_s5  ;;  %2074 = vrot.lane.b32.xlu0 %v2078_v9, %s2436_s20  ;;  %v2848_v40 = vsel %vm302_vm2, %v506_v13, %v507_v10  ;;  %v509_v17 = vsel %vm302_vm2, %v507_v10, %v506_v13 }
 0x154   : > { %v515_v18 = vsel %vm313_vm4, %v513_v11, %v512_v14  ;;  %v511_v19 = vsel %vm295_vm3, 0.0, %v509_v17  ;;  %v518_v25 = vmax.f32 %v2848_v40, %v2834_v6  ;;  %v514_v27 = vsel %vm313_vm4, %v512_v14, %v513_v11 }
 0x155   : > { %v516_v24 = vsel %vm296_vm5, 0.0, %v515_v18  ;;  %v519_v26 = vmax.f32 %v511_v19, %v2836_v7  ;;  %v594_v52 = vmin.f32 %v2848_v40, %v2834_v6  ;;  %v592_v59 = vsel %vm296_vm5, 1.0, %v515_v18 }
 0x156   : > { %v2863_v33 = vmax.f32 %v518_v25, %v516_v24 }
 0x157   : > { %v2865_v34 = vmax.f32 %v519_v26, %v514_v27  ;;  %v591_v26 = vsel %vm295_vm3, 1.0, %v509_v17 }
 0x172   : > { %v489_v36 = vpop.permute.xlu1 %488 }
 0x173   : > { %v491_v44 = vpop.permute.xlu0 %490  ;;  %v492_v47 = vsel %vm298_vm6, 1.0, %v489_v36 }
 0x174   : > { %v493_v48 = vsel %vm298_vm6, 1.0, %v491_v44  ;;  %v500_v28 = vmin.f32 %v492_v47, %v2779_v22 }
 0x175   : > { %v501_v53 = vmin.f32 %v493_v48, %v2781_v23 }
 0x176   : > { %v497_v56 = vpop.permute.xlu1 %496 }
 0x177   : > { %v499_v60 = vsel %vm299_vm7, 1.0, %v497_v56  ;;  %v495_v61 = vpop.permute.xlu0 %494 }
 0x178   : > { %v503_v38 = vmin.f32 %v501_v53, %v499_v60  ;;  %v498_v63 = vsel %vm299_vm7, 1.0, %v495_v61  ;;  %v595_v53 = vmin.f32 %v591_v26, %v2836_v7 }
 0x179   : > { %v502_v2 = vmin.f32 %v500_v28, %v498_v63 }
 0x17a   : > { %v2884_v29 = vmin.f32 %v487_v62, %v503_v38  ;;  %v596_v38 = vmin.f32 %v594_v52, %v592_v59  ;;  %v597_v63 = vmin.f32 %v595_v53, %v514_v27 }
 0x17b   : > { %v2886_v39 = vmin.f32 %v486_v1, %v502_v2 }
 0x17c   : > { %4527 = vst [vmem:[#allocation23_spill] sm:$0xff] %v2884_v29  ;;  %626 = vrot.lane.b32.xlu0 %v2884_v29, %s2436_s20  ;;  %v543_v32 = vrot.slane %v2884_v29, 1  ;;  %v549_v3 = vrot.slane %v2884_v29, 7 }
 0x17d   : > { %4528 = vst [vmem:[#allocation24_spill] sm:$0xff] %v2886_v39  ;;  %624 = vrot.lane.b32.xlu1 %v2886_v39, %s2436_s20  ;;  %v542_v41 = vrot.slane %v2886_v39, 1  ;;  %v548_v37 = vrot.slane %v2886_v39, 7 }
 0x17f   : > { %v545_v4 = vsel %vm302_vm2, %v543_v32, %v542_v41  ;;  %v2900_v5 = vsel %vm302_vm2, %v542_v41, %v543_v32  ;;  %v551_v9 = vsel %vm313_vm4, %v549_v3, %v548_v37  ;;  %v550_v19 = vsel %vm313_vm4, %v548_v37, %v549_v3 }
 0x180   : > { %630 = vrot.lane.b32.xlu0 %v2886_v39, %s2437_s5  ;;  %v547_v10 = vsel %vm295_vm3, 0.0, %v545_v4  ;;  %v552_v13 = vsel %vm296_vm5, 0.0, %v551_v9  ;;  %v554_v14 = vmax.f32 %v2900_v5, %v2886_v39  ;;  %v617_v52 = vsel %vm295_vm3, 1.0, %v545_v4 }
 0x181   : > { %632 = vrot.lane.b32.xlu1 %v2884_v29, %s2437_s5  ;;  %v555_v11 = vmax.f32 %v547_v10, %v2884_v29 }
 0x182   : > { %v2919_v25 = vmax.f32 %v554_v14, %v552_v13 }
 0x183   : > { %v2917_v24 = vmax.f32 %v555_v11, %v550_v19 }
 0x1c5   : > { %v2080_v35 = vpop.permute.xlu1 %2079  ;;  %v2075_v36 = vpop.permute.xlu0 %2074 }
 0x1c6   : > { %v2082_v44 = vunpack.i.h.bf16 %v2080_v35  ;;  %v2081_v47 = vunpack.i.l.bf16 %v2080_v35  ;;  %v2077_v48 = vunpack.i.h.bf16 %v2075_v36  ;;  %v2076_v49 = vunpack.i.l.bf16 %v2075_v36 }
 0x1c8   : > { %v603_v56 = vsel %vm298_vm6, 1.0, %v2077_v48  ;;  %v602_v17 = vsel %vm298_vm6, 1.0, %v2076_v49  ;;  %v609_v61 = vsel %vm299_vm7, 1.0, %v2082_v44  ;;  %v608_v40 = vsel %vm299_vm7, 1.0, %v2081_v47 }
 0x1c9   : > { %v611_v28 = vmin.f32 %v603_v56, %v2836_v7  ;;  %v610_v60 = vmin.f32 %v602_v17, %v2834_v6  ;;  %v620_v17 = vmin.f32 %v2900_v5, %v2886_v39 }
 0x1cb   : > { %v613_v62 = vmin.f32 %v611_v28, %v609_v61  ;;  %v612_v1 = vmin.f32 %v610_v60, %v608_v40  ;;  %v621_v28 = vmin.f32 %v617_v52, %v2884_v29  ;;  %v618_v60 = vsel %vm296_vm5, 1.0, %v551_v9 }
 0x1cd   : > { %v2938_v2 = vmin.f32 %v596_v38, %v612_v1  ;;  %v2940_v18 = vmin.f32 %v597_v63, %v613_v62  ;;  %v622_v1 = vmin.f32 %v620_v17, %v618_v60  ;;  %v623_v5 = vmin.f32 %v621_v28, %v550_v19 }
 0x1cf   : > { %4529 = vst [vmem:[#allocation25_spill] sm:$0xff] %v2938_v2  ;;  %4530 = vst [vmem:[#allocation26_spill] sm:$0xff] %v2940_v18  ;;  %v2088_v32 = vpack.i.bf16 %v2940_v18, %v2938_v2  ;;  %v643_v3 = vrot.slane %v2940_v18, 1  ;;  %v649_v41 = vrot.slane %v2940_v18, 7  ;;  %v642_v37 = vrot.slane %v2938_v2, 1 }
 0x1d0   : > { %v648_v10 = vrot.slane %v2938_v2, 7 }
 0x1d1   : > { %2089 = vrot.lane.b32.xlu1 %v2088_v32, %s2437_s5  ;;  %2084 = vrot.lane.b32.xlu0 %v2088_v32, %s2436_s20  ;;  %v2952_v27 = vsel %vm302_vm2, %v642_v37, %v643_v3  ;;  %v645_v11 = vsel %vm302_vm2, %v643_v3, %v642_v37 }
 0x1d2   : > { %v651_v13 = vsel %vm313_vm4, %v649_v41, %v648_v10  ;;  %v647_v14 = vsel %vm295_vm3, 0.0, %v645_v11  ;;  %v654_v35 = vmax.f32 %v2952_v27, %v2938_v2  ;;  %v650_v44 = vsel %vm313_vm4, %v648_v10, %v649_v41 }
 0x1d3   : > { %v652_v26 = vsel %vm296_vm5, 0.0, %v651_v13  ;;  %v655_v36 = vmax.f32 %v647_v14, %v2940_v18  ;;  %v727_v60 = vsel %vm295_vm3, 1.0, %v645_v11 }
 0x1d4   : > { %v2967_v47 = vmax.f32 %v654_v35, %v652_v26 }
 0x1d5   : > { %v2969_v48 = vmax.f32 %v655_v36, %v650_v44 }
 0x1ee   : > { %v627_v49 = vpop.permute.xlu0 %626 }
 0x1ef   : > { %v625_v53 = vpop.permute.xlu1 %624  ;;  %v629_v59 = vsel %vm298_vm6, 1.0, %v627_v49 }
 0x1f0   : > { %v628_v56 = vsel %vm298_vm6, 1.0, %v625_v53  ;;  %v637_v4 = vmin.f32 %v629_v59, %v2884_v29 }
 0x1f1   : > { %v636_v61 = vmin.f32 %v628_v56, %v2886_v39 }
 0x1f2   : > { %v631_v40 = vpop.permute.xlu0 %630 }
 0x1f3   : > { %v633_v62 = vpop.permute.xlu1 %632  ;;  %v634_v38 = vsel %vm299_vm7, 1.0, %v631_v40 }
 0x1f4   : > { %v635_v63 = vsel %vm299_vm7, 1.0, %v633_v62  ;;  %v638_v32 = vmin.f32 %v636_v61, %v634_v38 }
 0x1f5   : > { %v639_v3 = vmin.f32 %v637_v4, %v635_v63 }
 0x1f6   : > { %v2988_v41 = vmin.f32 %v622_v1, %v638_v32  ;;  %v730_v1 = vmin.f32 %v2952_v27, %v2938_v2  ;;  %v731_v32 = vmin.f32 %v727_v60, %v2940_v18 }
 0x1f7   : > { %v2990_v37 = vmin.f32 %v623_v5, %v639_v3  ;;  %v728_v3 = vsel %vm296_vm5, 1.0, %v651_v13 }
 0x1f8   : > { %4531 = vst [vmem:[#allocation27_spill] sm:$0xff] %v2988_v41  ;;  %760 = vrot.lane.b32.xlu1 %v2988_v41, %s2436_s20  ;;  %v678_v9 = vrot.slane %v2988_v41, 1  ;;  %v684_v10 = vrot.slane %v2988_v41, 7 }
 0x1f9   : > { %4532 = vst [vmem:[#allocation28_spill] sm:$0xff] %v2990_v37  ;;  %762 = vrot.lane.b32.xlu0 %v2990_v37, %s2436_s20  ;;  %v679_v14 = vrot.slane %v2990_v37, 1  ;;  %v685_v26 = vrot.slane %v2990_v37, 7 }
 0x1fb   : > { %v681_v19 = vsel %vm302_vm2, %v679_v14, %v678_v9  ;;  %v3004_v35 = vsel %vm302_vm2, %v678_v9, %v679_v14  ;;  %v687_v36 = vsel %vm313_vm4, %v685_v26, %v684_v10  ;;  %v686_v59 = vsel %vm313_vm4, %v684_v10, %v685_v26 }
 0x1fc   : > { %768 = vrot.lane.b32.xlu1 %v2990_v37, %s2437_s5  ;;  %v688_v49 = vsel %vm296_vm5, 0.0, %v687_v36  ;;  %v690_v52 = vmax.f32 %v3004_v35, %v2988_v41  ;;  %v683_v53 = vsel %vm295_vm3, 0.0, %v681_v19 }
 0x1fd   : > { %766 = vrot.lane.b32.xlu0 %v2988_v41, %s2437_s5  ;;  %v691_v56 = vmax.f32 %v683_v53, %v2990_v37 }
 0x1fe   : > { %v3021_v17 = vmax.f32 %v690_v52, %v688_v49  ;;  %v732_v49 = vmin.f32 %v730_v1, %v728_v3  ;;  %v733_v52 = vmin.f32 %v731_v32, %v650_v44 }
 0x1ff   : > { %v3023_v28 = vmax.f32 %v691_v56, %v686_v59 }
 0x243   : > { %v2090_v61 = vpop.permute.xlu1 %2089  ;;  %v2085_v40 = vpop.permute.xlu0 %2084 }
 0x244   : > { %v2092_v4 = vunpack.i.h.bf16 %v2090_v61  ;;  %v2091_v62 = vunpack.i.l.bf16 %v2090_v61  ;;  %v2087_v38 = vunpack.i.h.bf16 %v2085_v40  ;;  %v2086_v63 = vunpack.i.l.bf16 %v2085_v40 }
 0x246   : > { %v739_v5 = vsel %vm298_vm6, 1.0, %v2087_v38  ;;  %v738_v11 = vsel %vm298_vm6, 1.0, %v2086_v63  ;;  %v745_v14 = vsel %vm299_vm7, 1.0, %v2092_v4  ;;  %v744_v27 = vsel %vm299_vm7, 1.0, %v2091_v62 }
 0x247   : > { %v747_v9 = vmin.f32 %v739_v5, %v2940_v18  ;;  %v746_v10 = vmin.f32 %v738_v11, %v2938_v2 }
 0x249   : > { %v749_v26 = vmin.f32 %v747_v9, %v745_v14  ;;  %v748_v53 = vmin.f32 %v746_v10, %v744_v27  ;;  %v753_v14 = vsel %vm295_vm3, 1.0, %v681_v19 }
 0x24b   : > { %v3042_v56 = vmin.f32 %v732_v49, %v748_v53  ;;  %v3044_v13 = vmin.f32 %v733_v52, %v749_v26  ;;  %v757_v53 = vmin.f32 %v753_v14, %v2990_v37 }
 0x24d   : > { %4533 = vst [vmem:[#allocation29_spill] sm:$0xff] %v3042_v56  ;;  %4534 = vst [vmem:[#allocation30_spill] sm:$0xff] %v3044_v13  ;;  %v2098_v60 = vpack.i.bf16 %v3044_v13, %v3042_v56  ;;  %v779_v61 = vrot.slane %v3044_v13, 1  ;;  %v785_v40 = vrot.slane %v3044_v13, 7  ;;  %v778_v4 = vrot.slane %v3042_v56, 1 }
 0x24e   : > { %v784_v38 = vrot.slane %v3042_v56, 7 }
 0x24f   : > { %2099 = vrot.lane.b32.xlu1 %v2098_v60, %s2437_s5  ;;  %2094 = vrot.lane.b32.xlu0 %v2098_v60, %s2436_s20  ;;  %v3056_v44 = vsel %vm302_vm2, %v778_v4, %v779_v61  ;;  %v781_v62 = vsel %vm302_vm2, %v779_v61, %v778_v4  ;;  %v756_v60 = vmin.f32 %v3004_v35, %v2988_v41  ;;  %v754_v4 = vsel %vm296_vm5, 1.0, %v687_v36 }
 0x250   : > { %v787_v63 = vsel %vm313_vm4, %v785_v40, %v784_v38  ;;  %v783_v1 = vsel %vm295_vm3, 0.0, %v781_v62  ;;  %v790_v5 = vmax.f32 %v3056_v44, %v3042_v56  ;;  %v786_v11 = vsel %vm313_vm4, %v784_v38, %v785_v40 }
 0x251   : > { %v788_v32 = vsel %vm296_vm5, 0.0, %v787_v63  ;;  %v791_v3 = vmax.f32 %v783_v1, %v3044_v13  ;;  %v758_v14 = vmin.f32 %v756_v60, %v754_v4  ;;  %v866_v8 = vmin.f32 %v3056_v44, %v3042_v56 }
 0x252   : > { %v3071_v9 = vmax.f32 %v790_v5, %v788_v32  ;;  %v759_v32 = vmin.f32 %v757_v53, %v686_v59 }
 0x253   : > { %v3073_v10 = vmax.f32 %v791_v3, %v786_v11 }
 0x26a   : > { %v761_v27 = vpop.permute.xlu1 %760 }
 0x26b   : > { %v763_v26 = vpop.permute.xlu0 %762  ;;  %v764_v49 = vsel %vm298_vm6, 1.0, %v761_v27 }
 0x26c   : > { %v765_v52 = vsel %vm298_vm6, 1.0, %v763_v26  ;;  %v772_v19 = vmin.f32 %v764_v49, %v2988_v41 }
 0x26d   : > { %v773_v61 = vmin.f32 %v765_v52, %v2990_v37 }
 0x26e   : > { %v769_v40 = vpop.permute.xlu1 %768 }
 0x26f   : > { %v771_v38 = vsel %vm299_vm7, 1.0, %v769_v40  ;;  %v767_v1 = vpop.permute.xlu0 %766 }
 0x270   : > { %v775_v5 = vmin.f32 %v773_v61, %v771_v38  ;;  %v770_v3 = vsel %vm299_vm7, 1.0, %v767_v1 }
 0x271   : > { %v774_v27 = vmin.f32 %v772_v19, %v770_v3  ;;  %v863_v3 = vsel %vm295_vm3, 1.0, %v781_v62 }
 0x272   : > { %v3092_v35 = vmin.f32 %v759_v32, %v775_v5 }
 0x273   : > { %v3094_v26 = vmin.f32 %v758_v14, %v774_v27 }
 0x274   : > { %4535 = vst [vmem:[#allocation31_spill] sm:$0xff] %v3092_v35  ;;  %898 = vrot.lane.b32.xlu0 %v3092_v35, %s2436_s20  ;;  %v815_v36 = vrot.slane %v3092_v35, 1  ;;  %v821_v49 = vrot.slane %v3092_v35, 7 }
 0x275   : > { %4536 = vst [vmem:[#allocation32_spill] sm:$0xff] %v3094_v26  ;;  %896 = vrot.lane.b32.xlu1 %v3094_v26, %s2436_s20  ;;  %v814_v59 = vrot.slane %v3094_v26, 1  ;;  %v820_v52 = vrot.slane %v3094_v26, 7 }
 0x277   : > { %v817_v53 = vsel %vm302_vm2, %v815_v36, %v814_v59  ;;  %v3108_v60 = vsel %vm302_vm2, %v814_v59, %v815_v36  ;;  %v823_v61 = vsel %vm313_vm4, %v821_v49, %v820_v52  ;;  %v822_v1 = vsel %vm313_vm4, %v820_v52, %v821_v49 }
 0x278   : > { %902 = vrot.lane.b32.xlu0 %v3094_v26, %s2437_s5  ;;  %v824_v40 = vsel %vm296_vm5, 0.0, %v823_v61  ;;  %v826_v4 = vmax.f32 %v3108_v60, %v3094_v26  ;;  %v819_v19 = vsel %vm295_vm3, 0.0, %v817_v53  ;;  %v864_v52 = vsel %vm296_vm5, 1.0, %v787_v63 }
 0x279   : > { %904 = vrot.lane.b32.xlu1 %v3092_v35, %s2437_s5  ;;  %v827_v38 = vmax.f32 %v819_v19, %v3092_v35  ;;  %v867_v19 = vmin.f32 %v863_v3, %v3044_v13 }
 0x27a   : > { %v3125_v32 = vmax.f32 %v826_v4, %v824_v40 }
 0x27b   : > { %v3127_v5 = vmax.f32 %v827_v38, %v822_v1 }
 0x2c1   : > { %v2100_v14 = vpop.permute.xlu1 %2099  ;;  %v2095_v27 = vpop.permute.xlu0 %2094 }
 0x2c2   : > { %v2102_v36 = vunpack.i.h.bf16 %v2100_v14  ;;  %v2101_v59 = vunpack.i.l.bf16 %v2100_v14  ;;  %v2097_v21 = vunpack.i.h.bf16 %v2095_v27  ;;  %v2096_v20 = vunpack.i.l.bf16 %v2095_v27 }
 0x2c3   : > { %v868_v14 = vmin.f32 %v866_v8, %v864_v52  ;;  %v869_v27 = vmin.f32 %v867_v19, %v786_v11 }
 0x2c4   : > { %v875_v49 = vsel %vm298_vm6, 1.0, %v2097_v21  ;;  %v874_v62 = vsel %vm298_vm6, 1.0, %v2096_v20  ;;  %v881_v38 = vsel %vm299_vm7, 1.0, %v2102_v36  ;;  %v880_v44 = vsel %vm299_vm7, 1.0, %v2101_v59 }
 0x2c5   : > { %v883_v40 = vmin.f32 %v875_v49, %v3044_v13  ;;  %v882_v4 = vmin.f32 %v874_v62, %v3042_v56 }
 0x2c7   : > { %v885_v3 = vmin.f32 %v883_v40, %v881_v38  ;;  %v884_v21 = vmin.f32 %v882_v4, %v880_v44 }
 0x2c9   : > { %v3146_v16 = vmin.f32 %v868_v14, %v884_v21  ;;  %v3148_v63 = vmin.f32 %v869_v27, %v885_v3  ;;  %v889_v27 = vsel %vm295_vm3, 1.0, %v817_v53 }
 0x2cb   : > { %4537 = vst [vmem:[#allocation33_spill] sm:$0xff] %v3146_v16  ;;  %4538 = vst [vmem:[#allocation34_spill] sm:$0xff] %v3148_v63  ;;  %v2108_v20 = vpack.i.bf16 %v3148_v63, %v3146_v16  ;;  %v915_v49 = vrot.slane %v3148_v63, 1  ;;  %v921_v62 = vrot.slane %v3148_v63, 7  ;;  %v914_v36 = vrot.slane %v3146_v16, 1 }
 0x2cc   : > { %v920_v51 = vrot.slane %v3146_v16, 7 }
 0x2cd   : > { %2109 = vrot.lane.b32.xlu1 %v2108_v20, %s2437_s5  ;;  %2104 = vrot.lane.b32.xlu0 %v2108_v20, %s2436_s20  ;;  %v3160_v8 = vsel %vm302_vm2, %v914_v36, %v915_v49  ;;  %v917_v11 = vsel %vm302_vm2, %v915_v49, %v914_v36  ;;  %v892_v36 = vmin.f32 %v3108_v60, %v3094_v26 }
 0x2ce   : > { %v923_v59 = vsel %vm313_vm4, %v921_v62, %v920_v51  ;;  %v919_v19 = vsel %vm295_vm3, 0.0, %v917_v11  ;;  %v926_v40 = vmax.f32 %v3160_v8, %v3146_v16  ;;  %v922_v38 = vsel %vm313_vm4, %v920_v51, %v921_v62 }
 0x2cf   : > { %v924_v52 = vsel %vm296_vm5, 0.0, %v923_v59  ;;  %v927_v4 = vmax.f32 %v919_v19, %v3148_v63  ;;  %v893_v51 = vmin.f32 %v889_v27, %v3092_v35  ;;  %v890_v62 = vsel %vm296_vm5, 1.0, %v823_v61 }
 0x2d0   : > { %v3175_v44 = vmax.f32 %v926_v40, %v924_v52  ;;  %v1002_v41 = vmin.f32 %v3160_v8, %v3146_v16 }
 0x2d1   : > { %v3177_v3 = vmax.f32 %v927_v4, %v922_v38  ;;  %v895_v60 = vmin.f32 %v893_v51, %v822_v1 }
 0x2d2   : > { %4539 = vst [vmem:[#allocation35_spill] sm:$0xff] %v3175_v44 }
 0x2e6   : > { %v899_v14 = vpop.permute.xlu0 %898 }
 0x2e7   : > { %v897_v21 = vpop.permute.xlu1 %896  ;;  %v901_v49 = vsel %vm298_vm6, 1.0, %v899_v14 }
 0x2e8   : > { %v900_v20 = vsel %vm298_vm6, 1.0, %v897_v21  ;;  %v909_v53 = vmin.f32 %v901_v49, %v3092_v35  ;;  %v894_v21 = vmin.f32 %v892_v36, %v890_v62 }
 0x2e9   : > { %v908_v19 = vmin.f32 %v900_v20, %v3094_v26 }
 0x2ea   : > { %v903_v52 = vpop.permute.xlu0 %902 }
 0x2eb   : > { %v905_v40 = vpop.permute.xlu1 %904  ;;  %v906_v4 = vsel %vm299_vm7, 1.0, %v903_v52 }
 0x2ec   : > { %v907_v14 = vsel %vm299_vm7, 1.0, %v905_v40  ;;  %v910_v50 = vmin.f32 %v908_v19, %v906_v4 }
 0x2ed   : > { %v911_v13 = vmin.f32 %v909_v53, %v907_v14  ;;  %v999_v14 = vsel %vm295_vm3, 1.0, %v917_v11 }
 0x2ee   : > { %v3196_v27 = vmin.f32 %v894_v21, %v910_v50 }
 0x2ef   : > { %v3198_v56 = vmin.f32 %v895_v60, %v911_v13 }
 0x2f0   : > { %4540 = vst [vmem:[#allocation36_spill] sm:$0xff] %v3196_v27  ;;  %1032 = vrot.lane.b32.xlu1 %v3196_v27, %s2436_s20  ;;  %v950_v61 = vrot.slane %v3196_v27, 1  ;;  %v956_v20 = vrot.slane %v3196_v27, 7 }
 0x2f1   : > { %4541 = vst [vmem:[#allocation37_spill] sm:$0xff] %v3198_v56  ;;  %1034 = vrot.lane.b32.xlu0 %v3198_v56, %s2436_s20  ;;  %v951_v49 = vrot.slane %v3198_v56, 1  ;;  %v957_v36 = vrot.slane %v3198_v56, 7 }
 0x2f3   : > { %v953_v50 = vsel %vm302_vm2, %v951_v49, %v950_v61  ;;  %v3212_v13 = vsel %vm302_vm2, %v950_v61, %v951_v49  ;;  %v959_v1 = vsel %vm313_vm4, %v957_v36, %v956_v20  ;;  %v958_v53 = vsel %vm313_vm4, %v956_v20, %v957_v36 }
 0x2f4   : > { %1040 = vrot.lane.b32.xlu1 %v3198_v56, %s2437_s5  ;;  %v960_v51 = vsel %vm296_vm5, 0.0, %v959_v1  ;;  %v962_v62 = vmax.f32 %v3212_v13, %v3196_v27  ;;  %v955_v19 = vsel %vm295_vm3, 0.0, %v953_v50  ;;  %v1000_v36 = vsel %vm296_vm5, 1.0, %v923_v59 }
 0x2f5   : > { %1038 = vrot.lane.b32.xlu0 %v3196_v27, %s2437_s5  ;;  %v963_v52 = vmax.f32 %v955_v19, %v3198_v56  ;;  %v1003_v19 = vmin.f32 %v999_v14, %v3148_v63 }
 0x2f6   : > { %v3229_v40 = vmax.f32 %v962_v62, %v960_v51 }
 0x2f7   : > { %v3231_v4 = vmax.f32 %v963_v52, %v958_v53  ;;  %v4594_v58 = vld [vmem:[#allocation36_spill] sm:$0xff] }
 0x2f9   : > { %4542 = vst [vmem:[#allocation38_spill] sm:$0xff] %v3231_v4 }
 0x33f   : > { %v2110_v21 = vpop.permute.xlu1 %2109  ;;  %v2105_v60 = vpop.permute.xlu0 %2104 }
 0x340   : > { %v2112_v61 = vunpack.i.h.bf16 %v2110_v21  ;;  %v2111_v49 = vunpack.i.l.bf16 %v2110_v21  ;;  %v2107_v35 = vunpack.i.h.bf16 %v2105_v60  ;;  %v2106_v26 = vunpack.i.l.bf16 %v2105_v60 }
 0x341   : > { %v1004_v21 = vmin.f32 %v1002_v41, %v1000_v36  ;;  %v1005_v60 = vmin.f32 %v1003_v19, %v922_v38 }
 0x342   : > { %v1011_v20 = vsel %vm298_vm6, 1.0, %v2107_v35  ;;  %v1010_v11 = vsel %vm298_vm6, 1.0, %v2106_v26  ;;  %v1017_v52 = vsel %vm299_vm7, 1.0, %v2112_v61  ;;  %v1016_v8 = vsel %vm299_vm7, 1.0, %v2111_v49 }
 0x343   : > { %v1019_v51 = vmin.f32 %v1011_v20, %v3148_v63  ;;  %v1018_v62 = vmin.f32 %v1010_v11, %v3146_v16 }
 0x345   : > { %v1021_v14 = vmin.f32 %v1019_v51, %v1017_v52  ;;  %v1020_v35 = vmin.f32 %v1018_v62, %v1016_v8 }
 0x347   : > { %v3250_v37 = vmin.f32 %v1004_v21, %v1020_v35  ;;  %v3252_v59 = vmin.f32 %v1005_v60, %v1021_v14  ;;  %v1025_v21 = vsel %vm295_vm3, 1.0, %v953_v50 }
 0x349   : > { %4543 = vst [vmem:[#allocation39_spill] sm:$0xff] %v3250_v37  ;;  %4544 = vst [vmem:[#allocation40_spill] sm:$0xff] %v3252_v59  ;;  %v2118_v26 = vpack.i.bf16 %v3252_v59, %v3250_v37  ;;  %v1051_v20 = vrot.slane %v3252_v59, 1  ;;  %v1057_v11 = vrot.slane %v3252_v59, 7  ;;  %v1050_v61 = vrot.slane %v3250_v37, 1 }
 0x34a   : > { %v1056_v63 = vrot.slane %v3250_v37, 7 }
 0x34b   : > { %2119 = vrot.lane.b32.xlu1 %v2118_v26, %s2437_s5  ;;  %2114 = vrot.lane.b32.xlu0 %v2118_v26, %s2436_s20  ;;  %v3264_v41 = vsel %vm302_vm2, %v1050_v61, %v1051_v20  ;;  %v1053_v38 = vsel %vm302_vm2, %v1051_v20, %v1050_v61  ;;  %v1029_v61 = vmin.f32 %v1025_v21, %v3198_v56 }
 0x34c   : > { %v1059_v49 = vsel %vm313_vm4, %v1057_v11, %v1056_v63  ;;  %v1055_v19 = vsel %vm295_vm3, 0.0, %v1053_v38  ;;  %v1062_v51 = vmax.f32 %v3264_v41, %v3250_v37  ;;  %v1058_v52 = vsel %vm313_vm4, %v1056_v63, %v1057_v11 }
 0x34d   : > { %v1060_v36 = vsel %vm296_vm5, 0.0, %v1059_v49  ;;  %v1063_v62 = vmax.f32 %v1055_v19, %v3252_v59  ;;  %v1028_v63 = vmin.f32 %v3212_v13, %v3196_v27  ;;  %v1138_v39 = vmin.f32 %v3264_v41, %v3250_v37 }
 0x34e   : > { %v3279_v8 = vmax.f32 %v1062_v51, %v1060_v36  ;;  %v1026_v36 = vsel %vm296_vm5, 1.0, %v959_v1 }
 0x34f   : > { %v3281_v14 = vmax.f32 %v1063_v62, %v1058_v52 }
 0x350   : > { %4545 = vst [vmem:[#allocation41_spill] sm:$0xff] %v3279_v8 }
 0x351   : > { %4546 = vst [vmem:[#allocation42_spill] sm:$0xff] %v3281_v14 }
 0x362   : > { %v1033_v60 = vpop.permute.xlu1 %1032 }
 0x363   : > { %v1035_v35 = vpop.permute.xlu0 %1034  ;;  %v1036_v26 = vsel %vm298_vm6, 1.0, %v1033_v60  ;;  %v1031_v60 = vmin.f32 %v1029_v61, %v958_v53 }
 0x364   : > { %v1037_v20 = vsel %vm298_vm6, 1.0, %v1035_v35  ;;  %v1044_v50 = vmin.f32 %v1036_v26, %v3196_v27  ;;  %v1030_v35 = vmin.f32 %v1028_v63, %v1026_v36 }
 0x365   : > { %v1045_v11 = vmin.f32 %v1037_v20, %v3198_v56 }
 0x366   : > { %v1041_v19 = vpop.permute.xlu1 %1040 }
 0x367   : > { %v1043_v51 = vsel %vm299_vm7, 1.0, %v1041_v19  ;;  %v1039_v62 = vpop.permute.xlu0 %1038 }
 0x368   : > { %v1047_v16 = vmin.f32 %v1045_v11, %v1043_v51  ;;  %v1042_v21 = vsel %vm299_vm7, 1.0, %v1039_v62 }
 0x369   : > { %v1046_v18 = vmin.f32 %v1044_v50, %v1042_v21  ;;  %v1135_v21 = vsel %vm295_vm3, 1.0, %v1053_v38 }
 0x36a   : > { %v3300_v13 = vmin.f32 %v1031_v60, %v1047_v16 }
 0x36b   : > { %v3302_v20 = vmin.f32 %v1030_v35, %v1046_v18 }
 0x36c   : > { %4547 = vst [vmem:[#allocation43_spill] sm:$0xff] %v3300_v13  ;;  %1170 = vrot.lane.b32.xlu0 %v3300_v13, %s2436_s20  ;;  %v1087_v1 = vrot.slane %v3300_v13, 1  ;;  %v1093_v26 = vrot.slane %v3300_v13, 7 }
 0x36d   : > { %4548 = vst [vmem:[#allocation44_spill] sm:$0xff] %v3302_v20  ;;  %1168 = vrot.lane.b32.xlu1 %v3302_v20, %s2436_s20  ;;  %v1086_v53 = vrot.slane %v3302_v20, 1  ;;  %v1092_v61 = vrot.slane %v3302_v20, 7 }
 0x36f   : > { %v1089_v16 = vsel %vm302_vm2, %v1087_v1, %v1086_v53  ;;  %v3316_v18 = vsel %vm302_vm2, %v1086_v53, %v1087_v1  ;;  %v1095_v63 = vsel %vm313_vm4, %v1093_v26, %v1092_v61  ;;  %v1094_v51 = vsel %vm313_vm4, %v1092_v61, %v1093_v26 }
 0x370   : > { %1174 = vrot.lane.b32.xlu0 %v3302_v20, %s2437_s5  ;;  %v1096_v11 = vsel %vm296_vm5, 0.0, %v1095_v63  ;;  %v1098_v19 = vmax.f32 %v3316_v18, %v3302_v20  ;;  %v1091_v36 = vsel %vm295_vm3, 0.0, %v1089_v16  ;;  %v1136_v61 = vsel %vm296_vm5, 1.0, %v1059_v49 }
 0x371   : > { %1176 = vrot.lane.b32.xlu1 %v3300_v13, %s2437_s5  ;;  %v1099_v50 = vmax.f32 %v1091_v36, %v3300_v13  ;;  %v1139_v36 = vmin.f32 %v1135_v21, %v3252_v59 }
 0x372   : > { %v3333_v62 = vmax.f32 %v1098_v19, %v1096_v11 }
 0x373   : > { %v3335_v60 = vmax.f32 %v1099_v50, %v1094_v51 }
 0x3bd   : > { %v2120_v35 = vpop.permute.xlu1 %2119  ;;  %v2115_v1 = vpop.permute.xlu0 %2114 }
 0x3be   : > { %v2122_v53 = vunpack.i.h.bf16 %v2120_v35  ;;  %v2121_v56 = vunpack.i.l.bf16 %v2120_v35  ;;  %v2117_v27 = vunpack.i.h.bf16 %v2115_v1  ;;  %v2116_v2 = vunpack.i.l.bf16 %v2115_v1 }
 0x3bf   : > { %v1140_v35 = vmin.f32 %v1138_v39, %v1136_v61  ;;  %v1141_v1 = vmin.f32 %v1139_v36, %v1058_v52 }
 0x3c0   : > { %v1147_v26 = vsel %vm298_vm6, 1.0, %v2117_v27  ;;  %v1146_v38 = vsel %vm298_vm6, 1.0, %v2116_v2  ;;  %v1153_v50 = vsel %vm299_vm7, 1.0, %v2122_v53  ;;  %v1152_v41 = vsel %vm299_vm7, 1.0, %v2121_v56 }
 0x3c1   : > { %v1155_v11 = vmin.f32 %v1147_v26, %v3252_v59  ;;  %v1154_v19 = vmin.f32 %v1146_v38, %v3250_v37 }
 0x3c3   : > { %v1157_v21 = vmin.f32 %v1155_v11, %v1153_v50  ;;  %v1156_v27 = vmin.f32 %v1154_v19, %v1152_v41 }
 0x3c5   : > { %v3354_v29 = vmin.f32 %v1140_v35, %v1156_v27  ;;  %v3356_v49 = vmin.f32 %v1141_v1, %v1157_v21  ;;  %v1161_v1 = vsel %vm295_vm3, 1.0, %v1089_v16 }
 0x3c7   : > { %4549 = vst [vmem:[#allocation45_spill] sm:$0xff] %v3354_v29  ;;  %4550 = vst [vmem:[#allocation46_spill] sm:$0xff] %v3356_v49  ;;  %v2128_v2 = vpack.i.bf16 %v3356_v49, %v3354_v29  ;;  %v1187_v26 = vrot.slane %v3356_v49, 1  ;;  %v1193_v38 = vrot.slane %v3356_v49, 7  ;;  %v1186_v53 = vrot.slane %v3354_v29, 1 }
 0x3c8   : > { %v1192_v59 = vrot.slane %v3354_v29, 7 }
 0x3c9   : > { %2129 = vrot.lane.b32.xlu1 %v2128_v2, %s2437_s5  ;;  %2124 = vrot.lane.b32.xlu0 %v2128_v2, %s2436_s20  ;;  %v3368_v39 = vsel %vm302_vm2, %v1186_v53, %v1187_v26  ;;  %v1189_v56 = vsel %vm302_vm2, %v1187_v26, %v1186_v53  ;;  %v1164_v53 = vmin.f32 %v3316_v18, %v3302_v20 }
 0x3ca   : > { %v1195_v52 = vsel %vm313_vm4, %v1193_v38, %v1192_v59  ;;  %v1191_v36 = vsel %vm295_vm3, 0.0, %v1189_v56  ;;  %v1198_v11 = vmax.f32 %v3368_v39, %v3354_v29  ;;  %v1194_v50 = vsel %vm313_vm4, %v1192_v59, %v1193_v38 }
 0x3cb   : > { %v1196_v61 = vsel %vm296_vm5, 0.0, %v1195_v52  ;;  %v1199_v19 = vmax.f32 %v1191_v36, %v3356_v49  ;;  %v1165_v59 = vmin.f32 %v1161_v1, %v3300_v13  ;;  %v1162_v38 = vsel %vm296_vm5, 1.0, %v1095_v63 }
 0x3cc   : > { %v3383_v41 = vmax.f32 %v1198_v11, %v1196_v61  ;;  %v1274_v22 = vmin.f32 %v3368_v39, %v3354_v29 }
 0x3cd   : > { %v3385_v21 = vmax.f32 %v1199_v19, %v1194_v50  ;;  %v1167_v18 = vmin.f32 %v1165_v59, %v1094_v51 }
 0x3de   : > { %v1171_v35 = vpop.permute.xlu0 %1170 }
 0x3df   : > { %v1169_v27 = vpop.permute.xlu1 %1168  ;;  %v1173_v26 = vsel %vm298_vm6, 1.0, %v1171_v35 }
 0x3e0   : > { %v1172_v2 = vsel %vm298_vm6, 1.0, %v1169_v27  ;;  %v1181_v16 = vmin.f32 %v1173_v26, %v3300_v13  ;;  %v1166_v27 = vmin.f32 %v1164_v53, %v1162_v38 }
 0x3e1   : > { %v1180_v36 = vmin.f32 %v1172_v2, %v3302_v20 }
 0x3e2   : > { %v1175_v61 = vpop.permute.xlu0 %1174 }
 0x3e3   : > { %v1177_v11 = vpop.permute.xlu1 %1176  ;;  %v1178_v19 = vsel %vm299_vm7, 1.0, %v1175_v61 }
 0x3e4   : > { %v1179_v35 = vsel %vm299_vm7, 1.0, %v1177_v11  ;;  %v1182_v37 = vmin.f32 %v1180_v36, %v1178_v19 }
 0x3e5   : > { %v1183_v7 = vmin.f32 %v1181_v16, %v1179_v35  ;;  %v1271_v35 = vsel %vm295_vm3, 1.0, %v1189_v56 }
 0x3e6   : > { %v3404_v1 = vmin.f32 %v1166_v27, %v1182_v37 }
 0x3e7   : > { %v3406_v6 = vmin.f32 %v1167_v18, %v1183_v7 }
 0x3e8   : > { %4551 = vst [vmem:[#allocation47_spill] sm:$0xff] %v3404_v1  ;;  %1304 = vrot.lane.b32.xlu1 %v3404_v1, %s2436_s20  ;;  %v1222_v63 = vrot.slane %v3404_v1, 1  ;;  %v1228_v2 = vrot.slane %v3404_v1, 7 }
 0x3e9   : > { %4552 = vst [vmem:[#allocation48_spill] sm:$0xff] %v3406_v6  ;;  %1306 = vrot.lane.b32.xlu0 %v3406_v6, %s2436_s20  ;;  %v1223_v26 = vrot.slane %v3406_v6, 1  ;;  %v1229_v53 = vrot.slane %v3406_v6, 7 }
 0x3eb   : > { %v1225_v37 = vsel %vm302_vm2, %v1223_v26, %v1222_v63  ;;  %v3420_v7 = vsel %vm302_vm2, %v1222_v63, %v1223_v26  ;;  %v1231_v51 = vsel %vm313_vm4, %v1229_v53, %v1228_v2  ;;  %v1230_v16 = vsel %vm313_vm4, %v1228_v2, %v1229_v53 }
 0x3ec   : > { %1312 = vrot.lane.b32.xlu1 %v3406_v6, %s2437_s5  ;;  %v1232_v59 = vsel %vm296_vm5, 0.0, %v1231_v51  ;;  %v1234_v38 = vmax.f32 %v3420_v7, %v3404_v1  ;;  %v1227_v36 = vsel %vm295_vm3, 0.0, %v1225_v37  ;;  %v1272_v53 = vsel %vm296_vm5, 1.0, %v1195_v52 }
 0x3ed   : > { %1310 = vrot.lane.b32.xlu0 %v3404_v1, %s2437_s5  ;;  %v1235_v61 = vmax.f32 %v1227_v36, %v3406_v6  ;;  %v1275_v36 = vmin.f32 %v1271_v35, %v3356_v49 }
 0x3ee   : > { %v3437_v11 = vmax.f32 %v1234_v38, %v1232_v59 }
 0x3ef   : > { %v3439_v19 = vmax.f32 %v1235_v61, %v1230_v16 }
 0x3f0   : > { %4553 = vst [vmem:[#allocation49_spill] sm:$0xff] %v3437_v11 }
 0x3f1   : > { %4554 = vst [vmem:[#allocation50_spill] sm:$0xff] %v3439_v19 }
 0x43b   : > { %v2130_v27 = vpop.permute.xlu1 %2129  ;;  %v2125_v18 = vpop.permute.xlu0 %2124 }
 0x43c   : > { %v2132_v63 = vunpack.i.h.bf16 %v2130_v27  ;;  %v2131_v26 = vunpack.i.l.bf16 %v2130_v27  ;;  %v2127_v20 = vunpack.i.h.bf16 %v2125_v18  ;;  %v2126_v13 = vunpack.i.l.bf16 %v2125_v18 }
 0x43d   : > { %v1276_v27 = vmin.f32 %v1274_v22, %v1272_v53  ;;  %v1277_v18 = vmin.f32 %v1275_v36, %v1194_v50 }
 0x43e   : > { %v1283_v2 = vsel %vm298_vm6, 1.0, %v2127_v20  ;;  %v1282_v56 = vsel %vm298_vm6, 1.0, %v2126_v13  ;;  %v1289_v61 = vsel %vm299_vm7, 1.0, %v2132_v63  ;;  %v1288_v39 = vsel %vm299_vm7, 1.0, %v2131_v26 }
 0x43f   : > { %v1291_v59 = vmin.f32 %v1283_v2, %v3356_v49  ;;  %v1290_v38 = vmin.f32 %v1282_v56, %v3354_v29 }
 0x441   : > { %v1293_v35 = vmin.f32 %v1291_v59, %v1289_v61  ;;  %v1292_v20 = vmin.f32 %v1290_v38, %v1288_v39 }
 0x443   : > { %v3458_v19 = vmin.f32 %v1276_v27, %v1292_v20  ;;  %v3460_v52 = vmin.f32 %v1277_v18, %v1293_v35  ;;  %v1297_v27 = vsel %vm295_vm3, 1.0, %v1225_v37 }
 0x445   : > { %4555 = vst [vmem:[#allocation51_spill] sm:$0xff] %v3458_v19  ;;  %4556 = vst [vmem:[#allocation52_spill] sm:$0xff] %v3460_v52  ;;  %v2138_v13 = vpack.i.bf16 %v3460_v52, %v3458_v19  ;;  %v1323_v2 = vrot.slane %v3460_v52, 1  ;;  %v1329_v56 = vrot.slane %v3460_v52, 7  ;;  %v1322_v63 = vrot.slane %v3458_v19, 1 }
 0x446   : > { %v1328_v49 = vrot.slane %v3458_v19, 7 }
 0x447   : > { %2139 = vrot.lane.b32.xlu1 %v2138_v13, %s2437_s5  ;;  %2134 = vrot.lane.b32.xlu0 %v2138_v13, %s2436_s20  ;;  %v3472_v22 = vsel %vm302_vm2, %v1322_v63, %v1323_v2  ;;  %v1325_v50 = vsel %vm302_vm2, %v1323_v2, %v1322_v63  ;;  %v1301_v63 = vmin.f32 %v1297_v27, %v3406_v6 }
 0x448   : > { %v1331_v26 = vsel %vm313_vm4, %v1329_v56, %v1328_v49  ;;  %v1327_v36 = vsel %vm295_vm3, 0.0, %v1325_v50  ;;  %v1334_v59 = vmax.f32 %v3472_v22, %v3458_v19  ;;  %v1330_v61 = vsel %vm313_vm4, %v1328_v49, %v1329_v56 }
 0x449   : > { %v1332_v53 = vsel %vm296_vm5, 0.0, %v1331_v26  ;;  %v1335_v38 = vmax.f32 %v1327_v36, %v3460_v52  ;;  %v1300_v49 = vmin.f32 %v3420_v7, %v3404_v1 }
 0x44a   : > { %v3487_v39 = vmax.f32 %v1334_v59, %v1332_v53  ;;  %v1298_v53 = vsel %vm296_vm5, 1.0, %v1231_v51 }
 0x44b   : > { %v3489_v35 = vmax.f32 %v1335_v38, %v1330_v61 }
 0x45a   : > { %v1305_v18 = vpop.permute.xlu1 %1304 }
 0x45b   : > { %v1307_v20 = vpop.permute.xlu0 %1306  ;;  %v1308_v13 = vsel %vm298_vm6, 1.0, %v1305_v18  ;;  %v1303_v18 = vmin.f32 %v1301_v63, %v1230_v16 }
 0x45c   : > { %v1309_v2 = vsel %vm298_vm6, 1.0, %v1307_v20  ;;  %v1316_v37 = vmin.f32 %v1308_v13, %v3404_v1  ;;  %v1302_v20 = vmin.f32 %v1300_v49, %v1298_v53 }
 0x45d   : > { %v1317_v56 = vmin.f32 %v1309_v2, %v3406_v6 }
 0x45e   : > { %v1313_v36 = vpop.permute.xlu1 %1312 }
 0x45f   : > { %v1315_v59 = vsel %vm299_vm7, 1.0, %v1313_v36  ;;  %v1311_v38 = vpop.permute.xlu0 %1310 }
 0x460   : > { %v1319_v29 = vmin.f32 %v1317_v56, %v1315_v59  ;;  %v1314_v27 = vsel %vm299_vm7, 1.0, %v1311_v38 }
 0x461   : > { %v1318_v11 = vmin.f32 %v1316_v37, %v1314_v27  ;;  %v3540_v37 = vpack.i.bf16 %v2749_v46, %v2746_v45 }
 0x462   : > { %v3508_v7 = vmin.f32 %v1303_v18, %v1319_v29 }
 0x463   : > { %v3510_v2 = vmin.f32 %v1302_v20, %v1318_v11  ;;  %v1407_v20 = vsel %vm295_vm3, 1.0, %v1325_v50 }
 0x464   : > { %4557 = vst [vmem:[#allocation53_spill] sm:$0xff] %v3508_v7  ;;  %1442 = vrot.lane.b32.xlu0 %v3508_v7, %s2436_s20  ;;  %v1359_v51 = vrot.slane %v3508_v7, 1  ;;  %v1365_v13 = vrot.slane %v3508_v7, 7 }
 0x465   : > { %4558 = vst [vmem:[#allocation54_spill] sm:$0xff] %v3510_v2  ;;  %1440 = vrot.lane.b32.xlu1 %v3510_v2, %s2436_s20  ;;  %v1358_v16 = vrot.slane %v3510_v2, 1  ;;  %v1364_v63 = vrot.slane %v3510_v2, 7 }
 0x467   : > { %v1361_v29 = vsel %vm302_vm2, %v1359_v51, %v1358_v16  ;;  %v3524_v11 = vsel %vm302_vm2, %v1358_v16, %v1359_v51  ;;  %v1367_v49 = vsel %vm313_vm4, %v1365_v13, %v1364_v63  ;;  %v1366_v38 = vsel %vm313_vm4, %v1364_v63, %v1365_v13 }
 0x468   : > { %1446 = vrot.lane.b32.xlu0 %v3510_v2, %s2437_s5  ;;  %v1368_v56 = vsel %vm296_vm5, 0.0, %v1367_v49  ;;  %v1370_v36 = vmax.f32 %v3524_v11, %v3510_v2  ;;  %v1363_v53 = vsel %vm295_vm3, 0.0, %v1361_v29  ;;  %v1410_v13 = vmin.f32 %v3472_v22, %v3458_v19 }
 0x469   : > { %1448 = vrot.lane.b32.xlu1 %v3508_v7, %s2437_s5  ;;  %v1371_v59 = vmax.f32 %v1363_v53, %v3508_v7  ;;  %v1411_v63 = vmin.f32 %v1407_v20, %v3460_v52 }
 0x46a   : > { %v3545_v18 = vmax.f32 %v1370_v36, %v1368_v56  ;;  %v1408_v36 = vsel %vm296_vm5, 1.0, %v1331_v26 }
 0x46b   : > { %v3549_v27 = vmax.f32 %v1371_v59, %v1366_v38 }
 0x46c   : > { %4559 = vst [vmem:[#allocation55_spill] sm:$0xff] %v3545_v18  ;;  %2144 = vrot.lane.b32.xlu0 %v3540_v37, %s2436_s20  ;;  %v1413_v18 = vmin.f32 %v1411_v63, %v1330_v61 }
 0x46d   : > { %4560 = vst [vmem:[#allocation56_spill] sm:$0xff] %v3549_v27  ;;  %434 = vrot.lane.b32.xlu1 %v2812_v42, %s2436_s20  ;;  %v1412_v27 = vmin.f32 %v1410_v13, %v1408_v36 }
 0x4b9   : > { %v2140_v51 = vpop.permute.xlu1 %2139  ;;  %v2135_v16 = vpop.permute.xlu0 %2134 }
 0x4ba   : > { %v2142_v1 = vunpack.i.h.bf16 %v2140_v51  ;;  %v2141_v53 = vunpack.i.l.bf16 %v2140_v51  ;;  %v2137_v6 = vunpack.i.h.bf16 %v2135_v16  ;;  %v2136_v23 = vunpack.i.l.bf16 %v2135_v16 }
 0x4bc   : > { %v1419_v56 = vsel %vm298_vm6, 1.0, %v2137_v6  ;;  %v1418_v50 = vsel %vm298_vm6, 1.0, %v2136_v23  ;;  %v1425_v16 = vsel %vm299_vm7, 1.0, %v2142_v1  ;;  %v1424_v22 = vsel %vm299_vm7, 1.0, %v2141_v53 }
 0x4bd   : > { %v1427_v59 = vmin.f32 %v1419_v56, %v3460_v52  ;;  %v1426_v51 = vmin.f32 %v1418_v50, %v3458_v19 }
 0x4bf   : > { %v1429_v20 = vmin.f32 %v1427_v59, %v1425_v16  ;;  %v1428_v6 = vmin.f32 %v1426_v51, %v1424_v22 }
 0x4c1   : > { %v3570_v55 = vmin.f32 %v1412_v27, %v1428_v6  ;;  %v3572_v26 = vmin.f32 %v1413_v18, %v1429_v20  ;;  %v1433_v20 = vsel %vm295_vm3, 1.0, %v1361_v29 }
 0x4c3   : > { %4561 = vst [vmem:[#allocation57_spill] sm:$0xff] %v3570_v55  ;;  %4562 = vst [vmem:[#allocation58_spill] sm:$0xff] %v3572_v26  ;;  %v2153_v23 = vpack.i.bf16 %v3572_v26, %v3570_v55  ;;  %v1458_v56 = vrot.slane %v3570_v55, 1  ;;  %v1459_v50 = vrot.slane %v3572_v26, 1  ;;  %v1464_v1 = vrot.slane %v3570_v55, 7 }
 0x4c4   : > { %v1465_v52 = vrot.slane %v3572_v26, 7 }
 0x4c5   : > { %2154 = vrot.lane.b32.xlu1 %v2153_v23, %s2437_s5  ;;  %2149 = vrot.lane.b32.xlu0 %v2153_v23, %s2436_s20  ;;  %v3584_v61 = vsel %vm302_vm2, %v1458_v56, %v1459_v50  ;;  %v3588_v18 = vsel %vm302_vm2, %v1459_v50, %v1458_v56  ;;  %v1437_v50 = vmin.f32 %v1433_v20, %v3508_v7 }
 0x4c6   : > { %v3592_v27 = vsel %vm313_vm4, %v1465_v52, %v1464_v1  ;;  %v1463_v53 = vsel %vm295_vm3, 0.0, %v3588_v18  ;;  %v1470_v63 = vmax.f32 %v3584_v61, %v3570_v55  ;;  %v3605_v59 = vsel %vm313_vm4, %v1464_v1, %v1465_v52 }
 0x4c7   : > { %v1468_v13 = vsel %vm296_vm5, 0.0, %v3592_v27  ;;  %v1471_v36 = vmax.f32 %v1463_v53, %v3572_v26  ;;  %v1436_v52 = vmin.f32 %v3524_v11, %v3510_v2  ;;  %v1434_v1 = vsel %vm296_vm5, 1.0, %v1367_v49 }
 0x4c8   : > { %v3607_v51 = vmax.f32 %v1470_v63, %v1468_v13  ;;  %v1439_v11 = vmin.f32 %v1437_v50, %v1366_v38  ;;  %v2158_v49 = vpack.i.bf16 %v2865_v34, %v2863_v33  ;;  %v2193_v38 = vpack.i.bf16 %v3177_v3, %v3175_v44 }
 0x4c9   : > { %v3610_v16 = vmax.f32 %v1471_v36, %v3605_v59 }
 0x4ca   : > { %4563 = vst [vmem:[#allocation59_spill] sm:$0xff] %v3607_v51 }
 0x4cb   : > { %4564 = vst [vmem:[#allocation60_spill] sm:$0xff] %v3610_v16 }
 0x4d6   : > { %v1443_v22 = vpop.permute.xlu0 %1442 }
 0x4d7   : > { %v1441_v6 = vpop.permute.xlu1 %1440  ;;  %v1445_v56 = vsel %vm298_vm6, 1.0, %v1443_v22 }
 0x4d8   : > { %v1444_v23 = vsel %vm298_vm6, 1.0, %v1441_v6  ;;  %v1453_v29 = vmin.f32 %v1445_v56, %v3508_v7  ;;  %v1438_v6 = vmin.f32 %v1436_v52, %v1434_v1  ;;  %v1543_v56 = vsel %vm295_vm3, 1.0, %v3588_v18 }
 0x4d9   : > { %v1452_v53 = vmin.f32 %v1444_v23, %v3510_v2 }
 0x4da   : > { %v1447_v13 = vpop.permute.xlu0 %1446 }
 0x4db   : > { %v1449_v63 = vpop.permute.xlu1 %1448  ;;  %v1450_v36 = vsel %vm299_vm7, 1.0, %v1447_v13 }
 0x4dc   : > { %v1451_v22 = vsel %vm299_vm7, 1.0, %v1449_v63  ;;  %v1454_v19 = vmin.f32 %v1452_v53, %v1450_v36  ;;  %v1546_v63 = vmin.f32 %v3584_v61, %v3570_v55  ;;  %v1547_v36 = vmin.f32 %v1543_v56, %v3572_v26 }
 0x4dd   : > { %v1455_v16 = vmin.f32 %v1453_v29, %v1451_v22  ;;  %v1544_v22 = vsel %vm296_vm5, 1.0, %v3592_v27 }
 0x4de   : > { %v3629_v20 = vmin.f32 %v1438_v6, %v1454_v19  ;;  %v2173_v19 = vpack.i.bf16 %v2969_v48, %v2967_v47  ;;  %v3695_v23 = vpop.permute.xlu0 %2144 }
 0x4df   : > { %v3631_v51 = vmin.f32 %v1439_v11, %v1455_v16  ;;  %v3693_v16 = vpop.permute.xlu1 %434 }
 0x4e0   : > { %4565 = vst [vmem:[#allocation61_spill] sm:$0xff] %v3629_v20  ;;  %1576 = vrot.lane.b32.xlu1 %v3629_v20, %s2436_s20 }
 0x4e1   : > { %4566 = vst [vmem:[#allocation62_spill] sm:$0xff] %v3631_v51  ;;  %1578 = vrot.lane.b32.xlu0 %v3631_v51, %s2436_s20 }
 0x4e4   : > { %1584 = vrot.lane.b32.xlu1 %v3631_v51, %s2437_s5 }
 0x4e5   : > { %1582 = vrot.lane.b32.xlu0 %v3629_v20, %s2437_s5 }
 0x4e8   : > { %2159 = vrot.lane.b32.xlu1 %v2158_v49, %s2436_s20 }
 0x4e9   : > { %436 = vrot.lane.b32.xlu0 %v2814_v43, %s2436_s20 }
 0x4ec   : > { %560 = vrot.lane.b32.xlu1 %v2917_v24, %s2436_s20 }
 0x4ed   : > { %558 = vrot.lane.b32.xlu0 %v2919_v25, %s2436_s20 }
 0x4f0   : > { %440 = vrot.lane.b32.xlu1 %v2812_v42, %s2437_s5 }
 0x4f1   : > { %2164 = vrot.lane.b32.xlu0 %v3540_v37, %s2437_s5  ;;  %v2183_v37 = vpack.i.bf16 %v3073_v10, %v3071_v9 }
 0x4f4   : > { %2169 = vrot.lane.b32.xlu1 %v2158_v49, %s2437_s5 }
 0x4f5   : > { %442 = vrot.lane.b32.xlu0 %v2814_v43, %s2437_s5 }
 0x4f8   : > { %566 = vrot.lane.b32.xlu1 %v2917_v24, %s2437_s5 }
 0x4f9   : > { %564 = vrot.lane.b32.xlu0 %v2919_v25, %s2437_s5 }
 0x4fc   : > { %694 = vrot.lane.b32.xlu1 %v3021_v17, %s2436_s20 }
 0x4fd   : > { %2174 = vrot.lane.b32.xlu0 %v2173_v19, %s2436_s20 }
 0x500   : > { %2179 = vrot.lane.b32.xlu1 %v2173_v19, %s2437_s5 }
 0x501   : > { %696 = vrot.lane.b32.xlu0 %v3023_v28, %s2436_s20 }
 0x504   : > { %702 = vrot.lane.b32.xlu1 %v3023_v28, %s2437_s5 }
 0x505   : > { %700 = vrot.lane.b32.xlu0 %v3021_v17, %s2437_s5 }
 0x508   : > { %830 = vrot.lane.b32.xlu1 %v3125_v32, %s2436_s20 }
 0x509   : > { %2184 = vrot.lane.b32.xlu0 %v2183_v37, %s2436_s20 }
 0x50c   : > { %2189 = vrot.lane.b32.xlu1 %v2183_v37, %s2437_s5  ;;  %v1548_v37 = vmin.f32 %v1546_v63, %v1544_v22  ;;  %v1501_v63 = vrot.slane %v3631_v51, 7 }
 0x50d   : > { %832 = vrot.lane.b32.xlu0 %v3127_v5, %s2436_s20 }
 0x510   : > { %838 = vrot.lane.b32.xlu1 %v3127_v5, %s2437_s5 }
 0x511   : > { %836 = vrot.lane.b32.xlu0 %v3125_v32, %s2437_s5 }
 0x514   : > { %966 = vrot.lane.b32.xlu1 %v3229_v40, %s2436_s20 }
 0x515   : > { %2194 = vrot.lane.b32.xlu0 %v2193_v38, %s2436_s20 }
 0x518   : > { %2199 = vrot.lane.b32.xlu1 %v2193_v38, %s2437_s5  ;;  %v1549_v38 = vmin.f32 %v1547_v36, %v3605_v59 }
 0x519   : > { %968 = vrot.lane.b32.xlu0 %v3231_v4, %s2436_s20 }
 0x537   : > { %v2155_v52 = vpop.permute.xlu1 %2154  ;;  %v2150_v50 = vpop.permute.xlu0 %2149 }
 0x538   : > { %v2157_v1 = vunpack.i.h.bf16 %v2155_v52  ;;  %v2156_v53 = vunpack.i.l.bf16 %v2155_v52  ;;  %v2152_v13 = vunpack.i.h.bf16 %v2150_v50  ;;  %v2151_v29 = vunpack.i.l.bf16 %v2150_v50 }
 0x53a   : > { %v1555_v6 = vsel %vm298_vm6, 1.0, %v2152_v13  ;;  %v1554_v18 = vsel %vm298_vm6, 1.0, %v2151_v29  ;;  %v1561_v19 = vsel %vm299_vm7, 1.0, %v2157_v1  ;;  %v1560_v61 = vsel %vm299_vm7, 1.0, %v2156_v53 }
 0x53b   : > { %v1563_v11 = vmin.f32 %v1555_v6, %v3572_v26  ;;  %v1562_v49 = vmin.f32 %v1554_v18, %v3570_v55  ;;  %v1494_v1 = vrot.slane %v3629_v20, 1  ;;  %v1495_v53 = vrot.slane %v3631_v51, 1 }
 0x53c   : > { %v1500_v29 = vrot.slane %v3629_v20, 7 }
 0x53d   : > { %v1565_v27 = vmin.f32 %v1563_v11, %v1561_v19  ;;  %v1564_v56 = vmin.f32 %v1562_v49, %v1560_v61  ;;  %v3729_v59 = vsel %vm302_vm2, %v1495_v53, %v1494_v1  ;;  %v3738_v6 = vsel %vm302_vm2, %v1494_v1, %v1495_v53 }
 0x53e   : > { %v1569_v36 = vsel %vm295_vm3, 1.0, %v3729_v59  ;;  %v3742_v11 = vsel %vm313_vm4, %v1501_v63, %v1500_v29  ;;  %v3758_v1 = vsel %vm313_vm4, %v1500_v29, %v1501_v63  ;;  %v2147_v29 = vunpack.i.h.bf16 %v3695_v23 }
 0x53f   : > { %v3717_v52 = vmin.f32 %v1549_v38, %v1565_v27  ;;  %v3719_v50 = vmin.f32 %v1548_v37, %v1564_v56  ;;  %v1573_v61 = vmin.f32 %v1569_v36, %v3631_v51  ;;  %v1572_v37 = vmin.f32 %v3738_v6, %v3629_v20 }
 0x540   : > { %v1570_v56 = vsel %vm296_vm5, 1.0, %v3742_v11  ;;  %v2146_v63 = vunpack.i.l.bf16 %v3695_v23 }
 0x541   : > { %v2208_v13 = vpack.i.bf16 %v3717_v52, %v3719_v50  ;;  %v1574_v2 = vmin.f32 %v1572_v37, %v1570_v56 }
 0x542   : > { %v402_v23 = vsel %vm298_vm6, 0.0, %v2146_v63 }
 0x543   : > { %2209 = vrot.lane.b32.xlu1 %v2208_v13, %s2437_s5  ;;  %2204 = vrot.lane.b32.xlu0 %v2208_v13, %s2436_s20 }
 0x552   : > { %v1577_v22 = vpop.permute.xlu1 %1576 }
 0x553   : > { %v1579_v18 = vpop.permute.xlu0 %1578  ;;  %v1580_v49 = vsel %vm298_vm6, 1.0, %v1577_v22  ;;  %v1575_v22 = vmin.f32 %v1573_v61, %v3758_v1 }
 0x554   : > { %v1581_v19 = vsel %vm298_vm6, 1.0, %v1579_v18  ;;  %v1588_v13 = vmin.f32 %v1580_v49, %v3629_v20 }
 0x555   : > { %v1589_v38 = vmin.f32 %v1581_v19, %v3631_v51 }
 0x556   : > { %v1585_v27 = vpop.permute.xlu1 %1584 }
 0x557   : > { %v1587_v53 = vsel %vm299_vm7, 1.0, %v1585_v27  ;;  %v1583_v36 = vpop.permute.xlu0 %1582 }
 0x558   : > { %v1591_v18 = vmin.f32 %v1589_v38, %v1587_v53  ;;  %v1586_v19 = vsel %vm299_vm7, 1.0, %v1583_v36 }
 0x559   : > { %v1590_v7 = vmin.f32 %v1588_v13, %v1586_v19 }
 0x55a   : > { %v3765_v55 = vmin.f32 %v1575_v22, %v1591_v18  ;;  %v2160_v26 = vpop.permute.xlu1 %2159 }
 0x55b   : > { %v3767_v49 = vmin.f32 %v1574_v2, %v1590_v7  ;;  %v437_v44 = vpop.permute.xlu0 %436  ;;  %v438_v7 = vsel %vm298_vm6, 0.0, %v3693_v16  ;;  %v403_v2 = vsel %vm298_vm6, 0.0, %v2147_v29  ;;  %v2162_v37 = vunpack.i.h.bf16 %v2160_v26 }
 0x55c   : > { %4567 = vst [vmem:[#allocation63_spill] sm:$0xff] %v3765_v55  ;;  %1714 = vrot.lane.b32.xlu0 %v3765_v55, %s2436_s20  ;;  %v2161_v27 = vunpack.i.l.bf16 %v2160_v26  ;;  %v439_v13 = vsel %vm298_vm6, 0.0, %v437_v44  ;;  %v2213_v16 = vpack.i.bf16 %v3281_v14, %v3279_v8  ;;  %v446_v22 = vmax.f32 %v438_v7, %v2812_v42 }
 0x55d   : > { %4568 = vst [vmem:[#allocation64_spill] sm:$0xff] %v3767_v49  ;;  %1712 = vrot.lane.b32.xlu1 %v3767_v49, %s2436_s20  ;;  %v411_v26 = vmax.f32 %v403_v2, %v2749_v46  ;;  %v410_v29 = vmax.f32 %v402_v23, %v2746_v45  ;;  %v527_v44 = vsel %vm298_vm6, 0.0, %v2162_v37  ;;  %v447_v46 = vmax.f32 %v439_v13, %v2814_v43 }
 0x55e   : > { %v561_v61 = vpop.permute.xlu1 %560  ;;  %v526_v63 = vsel %vm298_vm6, 0.0, %v2161_v27 }
 0x55f   : > { %v559_v38 = vpop.permute.xlu0 %558  ;;  %v534_v14 = vmax.f32 %v526_v63, %v2863_v33 }
 0x560   : > { %1718 = vrot.lane.b32.xlu0 %v3767_v49, %s2437_s5  ;;  %v562_v13 = vsel %vm298_vm6, 0.0, %v559_v38 }
 0x561   : > { %1720 = vrot.lane.b32.xlu1 %v3765_v55, %s2437_s5 }
 0x562   : > { %v441_v56 = vpop.permute.xlu1 %440 }
 0x563   : > { %v444_v53 = vsel %vm299_vm7, 0.0, %v441_v56  ;;  %v2165_v36 = vpop.permute.xlu0 %2164  ;;  %v563_v56 = vsel %vm298_vm6, 0.0, %v561_v61  ;;  %v535_v61 = vmax.f32 %v527_v44, %v2865_v34 }
 0x564   : > { %v2167_v18 = vunpack.i.h.bf16 %v2165_v36  ;;  %v2166_v19 = vunpack.i.l.bf16 %v2165_v36  ;;  %972 = vrot.lane.b32.xlu0 %v3229_v40, %s2437_s5  ;;  %v448_v42 = vmax.f32 %v446_v22, %v444_v53 }
 0x565   : > { %974 = vrot.lane.b32.xlu1 %v3231_v4, %s2437_s5  ;;  %v571_v4 = vmax.f32 %v563_v56, %v2917_v24 }
 0x566   : > { %v409_v7 = vsel %vm299_vm7, 0.0, %v2167_v18  ;;  %v408_v45 = vsel %vm299_vm7, 0.0, %v2166_v19  ;;  %v2170_v2 = vpop.permute.xlu1 %2169  ;;  %v450_v19 = vsub.f32 %v2662_v54, %v448_v42  ;;  %v570_v54 = vmax.f32 %v562_v13, %v2919_v25 }
 0x567   : > { %v412_v37 = vmax.f32 %v410_v29, %v408_v45  ;;  %v413_v23 = vmax.f32 %v411_v26, %v409_v7  ;;  %v2172_v36 = vunpack.i.h.bf16 %v2170_v2  ;;  %v2171_v27 = vunpack.i.l.bf16 %v2170_v2  ;;  %v443_v8 = vpop.permute.xlu0 %442  ;;  %v4570_v45 = vld [vmem:[#allocation20_spill] sm:$0xff] }
 0x568   : > { %v445_v43 = vsel %vm299_vm7, 0.0, %v443_v8  ;;  %2214 = vrot.lane.b32.xlu0 %v2213_v16, %s2436_s20  ;;  %v3831_v29 = vpack.i.bf16 %v3385_v21, %v3383_v41 }
 0x569   : > { %v414_v53 = vsub.f32 %v2632_v12, %v412_v37  ;;  %v533_v22 = vsel %vm299_vm7, 0.0, %v2172_v36  ;;  %v532_v34 = vsel %vm299_vm7, 0.0, %v2171_v27  ;;  %1102 = vrot.lane.b32.xlu1 %v3333_v62, %s2436_s20  ;;  %v415_v33 = vsub.f32 %v2636_v15, %v413_v23 }
 0x56a   : > { %v536_v24 = vmax.f32 %v534_v14, %v532_v34  ;;  %v537_v8 = vmax.f32 %v535_v61, %v533_v22  ;;  %v449_v26 = vmax.f32 %v447_v46, %v445_v43  ;;  %v567_v18 = vpop.permute.xlu1 %566  ;;  %v3839_v15 = vpack.i.bf16 %v3489_v35, %v3487_v39  ;;  %v4569_v46 = vld [vmem:[#allocation17_spill] sm:$0xff] }
 0x56b   : > { %v569_v12 = vsel %vm299_vm7, 0.0, %v567_v18  ;;  %v565_v38 = vpop.permute.xlu0 %564  ;;  %v416_v14 = vmax.f32 %v414_v53, 0.0  ;;  %v452_v23 = vmax.f32 %v450_v19, 0.0  ;;  %v3852_v61 = vsel %vm295_vm3, 0.0, %v3729_v59 }
 0x56c   : > { %v538_v44 = vsub.f32 %v2715_v30, %v536_v24  ;;  %v539_v63 = vsub.f32 %v2717_v31, %v537_v8  ;;  %v573_v56 = vmax.f32 %v571_v4, %v569_v12  ;;  %1104 = vrot.lane.b32.xlu0 %v3335_v60, %s2436_s20  ;;  %v451_v42 = vsub.f32 %v4569_v46, %v449_v26 }
 0x56d   : > { %v568_v7 = vsel %vm299_vm7, 0.0, %v565_v38  ;;  %2219 = vrot.lane.b32.xlu1 %v2213_v16, %s2437_s5  ;;  %v417_v30 = vmax.f32 %v415_v33, 0.0  ;;  %v4571_v33 = vld [vmem:[#allocation19_spill] sm:$0xff] }
 0x56e   : > { %v540_v31 = vmax.f32 %v538_v44, 0.0  ;;  %v541_v4 = vmax.f32 %v539_v63, 0.0  ;;  %v575_v2 = vsub.f32 %v4570_v45, %v573_v56  ;;  %v695_v37 = vpop.permute.xlu1 %694  ;;  %v572_v36 = vmax.f32 %v570_v54, %v568_v7  ;;  %v4572_v45 = vld [vmem:[#allocation49_spill] sm:$0xff] }
 0x56f   : > { %v698_v27 = vsel %vm298_vm6, 0.0, %v695_v37  ;;  %v2175_v25 = vpop.permute.xlu0 %2174  ;;  %v453_v22 = vmax.f32 %v451_v42, 0.0 }
 0x570   : > { %v578_v43 = vadd.f32 %v540_v31, %v416_v14  ;;  %v579_v13 = vadd.f32 %v541_v4, %v417_v30  ;;  %v580_v16 = vmul.f32 %v540_v31, %v416_v14  ;;  %v581_v53 = vmul.f32 %v541_v4, %v417_v30  ;;  %1108 = vrot.lane.b32.xlu0 %v3333_v62, %s2437_s5 }
 0x571   : > { %v577_v34 = vmax.f32 %v575_v2, 0.0  ;;  %v574_v24 = vsub.f32 %v4571_v33, %v572_v36  ;;  %v2177_v8 = vunpack.i.h.bf16 %v2175_v25  ;;  %1110 = vrot.lane.b32.xlu1 %v3335_v60, %s2437_s5  ;;  %v706_v26 = vmax.f32 %v698_v27, %v3021_v17  ;;  %v4575_v33 = vld [vmem:[#allocation60_spill] sm:$0xff] }
 0x572   : > { %v2176_v18 = vunpack.i.l.bf16 %v2175_v25  ;;  %v2180_v59 = vpop.permute.xlu1 %2179  ;;  %v582_v19 = vsub.f32 %v578_v43, %v580_v16  ;;  %v583_v12 = vsub.f32 %v579_v13, %v581_v53 }
 0x573   : > { %v585_v38 = vadd.f32 %v577_v34, %v453_v22  ;;  %v587_v44 = vmul.f32 %v577_v34, %v453_v22  ;;  %v576_v63 = vmax.f32 %v574_v24, 0.0  ;;  %v663_v56 = vsel %vm298_vm6, 0.0, %v2177_v8  ;;  %v697_v54 = vpop.permute.xlu0 %696  ;;  %v4573_v22 = vld [vmem:[#allocation50_spill] sm:$0xff]  ;;  %v4574_v34 = vld [vmem:[#allocation59_spill] sm:$0xff] }
 0x574   : > { %v671_v14 = vmax.f32 %v663_v56, %v2969_v48  ;;  %v662_v46 = vsel %vm298_vm6, 0.0, %v2176_v18  ;;  %v2182_v42 = vunpack.i.h.bf16 %v2180_v59  ;;  %v2181_v7 = vunpack.i.l.bf16 %v2180_v59  ;;  %2224 = vrot.lane.b32.xlu0 %v3831_v29, %s2436_s20  ;;  %v4577_v18 = vld [vmem:[#allocation22_spill] sm:$0xff] }
 0x575   : > { %v584_v17 = vadd.f32 %v576_v63, %v452_v23  ;;  %v586_v30 = vmul.f32 %v576_v63, %v452_v23  ;;  %v670_v31 = vmax.f32 %v662_v46, %v2967_v47  ;;  %v699_v4 = vsel %vm298_vm6, 0.0, %v697_v54  ;;  %1238 = vrot.lane.b32.xlu1 %v4572_v45, %s2436_s20  ;;  %v4578_v63 = vld [vmem:[#allocation23_spill] sm:$0xff] }
 0x576   : > { %v669_v48 = vsel %vm299_vm7, 0.0, %v2182_v42  ;;  %v668_v2 = vsel %vm299_vm7, 0.0, %v2181_v7  ;;  %v707_v37 = vmax.f32 %v699_v4, %v3023_v28  ;;  %v703_v36 = vpop.permute.xlu1 %702  ;;  %v589_v27 = vsub.f32 %v585_v38, %v587_v44  ;;  %v4576_v28 = vld [vmem:[#allocation21_spill] sm:$0xff] }
 0x577   : > { %v672_v25 = vmax.f32 %v670_v31, %v668_v2  ;;  %v673_v23 = vmax.f32 %v671_v14, %v669_v48  ;;  %v705_v47 = vsel %vm299_vm7, 0.0, %v703_v36  ;;  %v588_v43 = vsub.f32 %v584_v17, %v586_v30  ;;  %v701_v13 = vpop.permute.xlu0 %700  ;;  %v4579_v17 = vld [vmem:[#allocation24_spill] sm:$0xff] }
 0x578   : > { %v709_v16 = vmax.f32 %v707_v37, %v705_v47  ;;  %v704_v53 = vsel %vm299_vm7, 0.0, %v701_v13  ;;  %1240 = vrot.lane.b32.xlu0 %v4573_v22, %s2436_s20  ;;  %v3885_v24 = vpack.i.bf16 %v4575_v33, %v4574_v34  ;;  %v3894_v44 = vsel %vm296_vm5, 0.0, %v3742_v11 }
 0x579   : > { %v674_v8 = vsub.f32 %v4576_v28, %v672_v25  ;;  %v675_v59 = vsub.f32 %v4577_v18, %v673_v23  ;;  %v708_v38 = vmax.f32 %v706_v26, %v704_v53  ;;  %2229 = vrot.lane.b32.xlu1 %v3831_v29, %s2437_s5  ;;  %v1506_v14 = vmax.f32 %v3738_v6, %v3629_v20 }
 0x57a   : > { %v711_v56 = vsub.f32 %v4578_v63, %v709_v16  ;;  %v831_v54 = vpop.permute.xlu1 %830  ;;  %v1507_v46 = vmax.f32 %v3852_v61, %v3631_v51  ;;  %v1594_v42 = vrot.slane %v3719_v50, 1  ;;  %v1595_v31 = vrot.slane %v3717_v52, 1  ;;  %v4608_v51 = vld [vmem:[#allocation45_spill] sm:$0xff] }
 0x57b   : > { %v676_v26 = vmax.f32 %v674_v8, 0.0  ;;  %v677_v7 = vmax.f32 %v675_v59, 0.0  ;;  %v710_v29 = vsub.f32 %v4579_v17, %v708_v38  ;;  %v2185_v30 = vpop.permute.xlu0 %2184  ;;  %v834_v4 = vsel %vm298_vm6, 0.0, %v831_v54 }
 0x57c   : > { %v713_v11 = vmax.f32 %v711_v56, 0.0  ;;  %v2187_v48 = vunpack.i.h.bf16 %v2185_v30  ;;  %v2186_v2 = vunpack.i.l.bf16 %v2185_v30  ;;  %1244 = vrot.lane.b32.xlu0 %v4572_v45, %s2437_s5 }
 0x57d   : > { %v714_v6 = vadd.f32 %v676_v26, %v582_v19  ;;  %v715_v37 = vadd.f32 %v677_v7, %v583_v12  ;;  %v716_v36 = vmul.f32 %v676_v26, %v582_v19  ;;  %v717_v25 = vmul.f32 %v677_v7, %v583_v12  ;;  %1246 = vrot.lane.b32.xlu1 %v4573_v22, %s2437_s5  ;;  %v4580_v7 = vld [vmem:[#allocation55_spill] sm:$0xff] }
 0x57e   : > { %v721_v23 = vadd.f32 %v713_v11, %v589_v27  ;;  %v723_v47 = vmul.f32 %v713_v11, %v589_v27  ;;  %v712_v13 = vmax.f32 %v710_v29, 0.0  ;;  %v799_v16 = vsel %vm298_vm6, 0.0, %v2187_v48  ;;  %v2190_v53 = vpop.permute.xlu1 %2189 }
 0x57f   : > { %v807_v28 = vmax.f32 %v799_v16, %v3073_v10  ;;  %v798_v8 = vsel %vm298_vm6, 0.0, %v2186_v2  ;;  %v2192_v18 = vunpack.i.h.bf16 %v2190_v53  ;;  %v2191_v59 = vunpack.i.l.bf16 %v2190_v53  ;;  %v833_v38 = vpop.permute.xlu0 %832 }
 0x580   : > { %v720_v19 = vadd.f32 %v712_v13, %v588_v43  ;;  %v722_v12 = vmul.f32 %v712_v13, %v588_v43  ;;  %v806_v63 = vmax.f32 %v798_v8, %v3071_v9  ;;  %v718_v56 = vsub.f32 %v714_v6, %v716_v36  ;;  %2234 = vrot.lane.b32.xlu0 %v3839_v15, %s2436_s20  ;;  %v4581_v36 = vld [vmem:[#allocation25_spill] sm:$0xff]  ;;  %v4582_v13 = vld [vmem:[#allocation26_spill] sm:$0xff] }
 0x581   : > { %v805_v27 = vsel %vm299_vm7, 0.0, %v2192_v18  ;;  %v719_v54 = vsub.f32 %v715_v37, %v717_v25  ;;  %v804_v10 = vsel %vm299_vm7, 0.0, %v2191_v59  ;;  %v835_v26 = vsel %vm298_vm6, 0.0, %v833_v38  ;;  %1374 = vrot.lane.b32.xlu1 %v4580_v7, %s2436_s20  ;;  %v4584_v18 = vld [vmem:[#allocation28_spill] sm:$0xff] }
 0x582   : > { %v808_v43 = vmax.f32 %v806_v63, %v804_v10  ;;  %v809_v17 = vmax.f32 %v807_v28, %v805_v27  ;;  %v843_v9 = vmax.f32 %v835_v26, %v3127_v5  ;;  %v839_v29 = vpop.permute.xlu1 %838  ;;  %v725_v30 = vsub.f32 %v721_v23, %v723_v47 }
 0x583   : > { %v842_v11 = vmax.f32 %v834_v4, %v3125_v32  ;;  %v841_v48 = vsel %vm299_vm7, 0.0, %v839_v29  ;;  %v724_v2 = vsub.f32 %v720_v19, %v722_v12  ;;  %v837_v6 = vpop.permute.xlu0 %836  ;;  %v3934_v37 = vsel %vm302_vm2, %v1595_v31, %v1594_v42  ;;  %v4583_v32 = vld [vmem:[#allocation56_spill] sm:$0xff]  ;;  %v4585_v12 = vld [vmem:[#allocation27_spill] sm:$0xff] }
 0x584   : > { %v810_v25 = vsub.f32 %v4581_v36, %v808_v43  ;;  %v811_v16 = vsub.f32 %v4582_v13, %v809_v17  ;;  %v845_v5 = vmax.f32 %v843_v9, %v841_v48  ;;  %v840_v23 = vsel %vm299_vm7, 0.0, %v837_v6  ;;  %1376 = vrot.lane.b32.xlu0 %v4583_v32, %s2436_s20 }
 0x585   : > { %v844_v4 = vmax.f32 %v842_v11, %v840_v23  ;;  %2239 = vrot.lane.b32.xlu1 %v3839_v15, %s2437_s5  ;;  %v1600_v47 = vrot.slane %v3719_v50, 7  ;;  %v1601_v53 = vrot.slane %v3717_v52, 7  ;;  %v3950_v19 = vmax.f32 %v1506_v14, %v3894_v44 }
 0x586   : > { %v812_v28 = vmax.f32 %v810_v25, 0.0  ;;  %v813_v8 = vmax.f32 %v811_v16, 0.0  ;;  %v847_v59 = vsub.f32 %v4584_v18, %v845_v5  ;;  %v3947_v38 = vpop.permute.xlu1 %966  ;;  %v3957_v15 = vmax.f32 %v1507_v46, %v3758_v1 }
 0x587   : > { %v846_v63 = vsub.f32 %v4585_v12, %v844_v4  ;;  %v2195_v27 = vpop.permute.xlu0 %2194  ;;  %v3963_v10 = vsel %vm302_vm2, %v1594_v42, %v1595_v31  ;;  %v1599_v44 = vsel %vm295_vm3, 0.0, %v3934_v37  ;;  %v3974_v42 = vsel %vm313_vm4, %v1601_v53, %v1600_v47  ;;  %v4586_v4 = vld [vmem:[#allocation35_spill] sm:$0xff] }
 0x588   : > { %v850_v14 = vadd.f32 %v812_v28, %v718_v56  ;;  %v851_v26 = vadd.f32 %v813_v8, %v719_v54  ;;  %v852_v43 = vmul.f32 %v812_v28, %v718_v56  ;;  %v853_v17 = vmul.f32 %v813_v8, %v719_v54  ;;  %1380 = vrot.lane.b32.xlu0 %v4580_v7, %s2437_s5 }
 0x589   : > { %v849_v61 = vmax.f32 %v847_v59, 0.0  ;;  %v848_v1 = vmax.f32 %v846_v63, 0.0  ;;  %v2197_v46 = vunpack.i.h.bf16 %v2195_v27  ;;  %1382 = vrot.lane.b32.xlu1 %v4583_v32, %s2437_s5  ;;  %v2196_v31 = vunpack.i.l.bf16 %v2195_v27 }
 0x58a   : > { %v2200_v9 = vpop.permute.xlu1 %2199  ;;  %v854_v29 = vsub.f32 %v850_v14, %v852_v43  ;;  %v855_v11 = vsub.f32 %v851_v26, %v853_v17  ;;  %v1606_v56 = vmax.f32 %v3963_v10, %v3719_v50  ;;  %v1607_v59 = vmax.f32 %v1599_v44, %v3717_v52  ;;  %v4587_v17 = vld [vmem:[#allocation29_spill] sm:$0xff] }
 0x58b   : > { %v857_v54 = vadd.f32 %v849_v61, %v725_v30  ;;  %v859_v48 = vmul.f32 %v849_v61, %v725_v30  ;;  %v856_v6 = vadd.f32 %v848_v1, %v724_v2  ;;  %v858_v36 = vmul.f32 %v848_v1, %v724_v2  ;;  %v4588_v1 = vld [vmem:[#allocation30_spill] sm:$0xff] }
 0x58c   : > { %v935_v25 = vsel %vm298_vm6, 0.0, %v2197_v46  ;;  %v934_v13 = vsel %vm298_vm6, 0.0, %v2196_v31  ;;  %v2202_v16 = vunpack.i.h.bf16 %v2200_v9  ;;  %v2201_v5 = vunpack.i.l.bf16 %v2200_v9  ;;  %2244 = vrot.lane.b32.xlu0 %v3885_v24, %s2436_s20 }
 0x58d   : > { %v943_v23 = vmax.f32 %v935_v25, %v3177_v3  ;;  %v942_v28 = vmax.f32 %v934_v13, %v4586_v4  ;;  %1510 = vrot.lane.b32.xlu1 %v3950_v19, %s2436_s20  ;;  %v1604_v30 = vsel %vm296_vm5, 0.0, %v3974_v42  ;;  %v3991_v2 = vsub.f32 %v857_v54, %v859_v48 }
 0x58e   : > { %v941_v8 = vsel %vm299_vm7, 0.0, %v2202_v16  ;;  %v940_v18 = vsel %vm299_vm7, 0.0, %v2201_v5  ;;  %v3998_v3 = vsub.f32 %v856_v6, %v858_v36  ;;  %v1630_v27 = vrot.slane %v3767_v49, 1 }
 0x58f   : > { %v944_v12 = vmax.f32 %v942_v28, %v940_v18  ;;  %v945_v63 = vmax.f32 %v943_v23, %v941_v8  ;;  %v1631_v14 = vrot.slane %v3765_v55, 1  ;;  %v1636_v26 = vrot.slane %v3767_v49, 7  ;;  %v969_v18 = vpop.permute.xlu0 %968 }
 0x590   : > { %1512 = vrot.lane.b32.xlu0 %v3957_v15, %s2436_s20  ;;  %v1637_v43 = vrot.slane %v3765_v55, 7  ;;  %v1602_v44 = vsel %vm313_vm4, %v1600_v47, %v1601_v53  ;;  %v4012_v31 = vmax.f32 %v1606_v56, %v1604_v30 }
 0x591   : > { %v946_v61 = vsub.f32 %v4587_v17, %v944_v12  ;;  %v947_v46 = vsub.f32 %v4588_v1, %v945_v63  ;;  %2249 = vrot.lane.b32.xlu1 %v3885_v24, %s2437_s5  ;;  %v4014_v9 = vmax.f32 %v1607_v59, %v1602_v44  ;;  %v4018_v6 = vsel %vm302_vm2, %v1630_v27, %v1631_v14 }
 0x592   : > { %v4024_v36 = vsel %vm313_vm4, %v1637_v43, %v1636_v26  ;;  %v4028_v24 = vsel %vm302_vm2, %v1631_v14, %v1630_v27  ;;  %v1642_v16 = vmax.f32 %v4018_v6, %v3767_v49  ;;  %v1638_v30 = vsel %vm313_vm4, %v1636_v26, %v1637_v43 }
 0x593   : > { %v948_v54 = vmax.f32 %v946_v61, 0.0  ;;  %v949_v48 = vmax.f32 %v947_v46, 0.0  ;;  %v2258_v13 = vpack.i.bf16 %v4014_v9, %v4012_v31  ;;  %v1640_v5 = vsel %vm296_vm5, 0.0, %v4024_v36 }
 0x594   : > { %1516 = vrot.lane.b32.xlu0 %v3950_v19, %s2437_s5  ;;  %v1635_v23 = vsel %vm295_vm3, 0.0, %v4028_v24  ;;  %v1679_v59 = vsel %vm295_vm3, 1.0, %v3934_v37  ;;  %v1682_v26 = vmin.f32 %v3963_v10, %v3719_v50  ;;  %v1680_v46 = vsel %vm296_vm5, 1.0, %v3974_v42 }
 0x595   : > { %v986_v47 = vadd.f32 %v948_v54, %v854_v29  ;;  %v987_v53 = vadd.f32 %v949_v48, %v855_v11  ;;  %v988_v56 = vmul.f32 %v948_v54, %v854_v29  ;;  %v989_v25 = vmul.f32 %v949_v48, %v855_v11  ;;  %1518 = vrot.lane.b32.xlu1 %v3957_v15, %s2437_s5 }
 0x596   : > { %v4048_v11 = vmax.f32 %v1642_v16, %v1640_v5  ;;  %v1643_v28 = vmax.f32 %v1635_v23, %v3765_v55  ;;  %v1683_v43 = vmin.f32 %v1679_v59, %v3717_v52 }
 0x597   : > { %v4042_v4 = vsub.f32 %v986_v47, %v988_v56  ;;  %v4044_v29 = vsub.f32 %v987_v53, %v989_v25  ;;  %v1684_v56 = vmin.f32 %v1682_v26, %v1680_v46 }
 0x598   : > { %2254 = vrot.lane.b32.xlu0 %v2258_v13, %s2436_s20  ;;  %v4057_v8 = vmax.f32 %v1643_v28, %v1638_v30  ;;  %v1685_v25 = vmin.f32 %v1683_v43, %v1602_v44 }
 0x599   : > { %2259 = vrot.lane.b32.xlu1 %v2258_v13, %s2437_s5 }
 0x59c   : > { %1652 = vrot.lane.b32.xlu0 %v4048_v11, %s2437_s5 }
 0x59d   : > { %1646 = vrot.lane.b32.xlu1 %v4048_v11, %s2436_s20 }
 0x5a0   : > { %1648 = vrot.lane.b32.xlu0 %v4057_v8, %s2436_s20 }
 0x5a1   : > { %1654 = vrot.lane.b32.xlu1 %v4057_v8, %s2437_s5 }
 0x5b5   : > { %v2210_v12 = vpop.permute.xlu1 %2209  ;;  %v2205_v63 = vpop.permute.xlu0 %2204 }
 0x5b6   : > { %v2212_v27 = vunpack.i.h.bf16 %v2210_v12  ;;  %v2211_v14 = vunpack.i.l.bf16 %v2210_v12  ;;  %v2207_v17 = vunpack.i.h.bf16 %v2205_v63  ;;  %v2206_v61 = vunpack.i.l.bf16 %v2205_v63 }
 0x5b8   : > { %v1691_v1 = vsel %vm298_vm6, 1.0, %v2207_v17  ;;  %v1690_v37 = vsel %vm298_vm6, 1.0, %v2206_v61  ;;  %v1697_v47 = vsel %vm299_vm7, 1.0, %v2212_v27  ;;  %v1696_v10 = vsel %vm299_vm7, 1.0, %v2211_v14 }
 0x5b9   : > { %v1699_v54 = vmin.f32 %v1691_v1, %v3717_v52  ;;  %v1698_v48 = vmin.f32 %v1690_v37, %v3719_v50 }
 0x5bb   : > { %v1701_v53 = vmin.f32 %v1699_v54, %v1697_v47  ;;  %v1700_v13 = vmin.f32 %v1698_v48, %v1696_v10  ;;  %v1705_v54 = vsel %vm295_vm3, 1.0, %v4028_v24  ;;  %v970_v24 = vsel %vm298_vm6, 0.0, %v3947_v38 }
 0x5bd   : > { %v1702_v16 = vmin.f32 %v1684_v56, %v1700_v13  ;;  %v1703_v5 = vmin.f32 %v1685_v25, %v1701_v53  ;;  %v1708_v53 = vmin.f32 %v4018_v6, %v3767_v49  ;;  %v1709_v56 = vmin.f32 %v1705_v54, %v3765_v55 }
 0x5be   : > { %v1706_v25 = vsel %vm296_vm5, 1.0, %v4024_v36  ;;  %v971_v6 = vsel %vm298_vm6, 0.0, %v969_v18 }
 0x5bf   : > { %v1730_v42 = vrot.slane %v1702_v16, 1  ;;  %v1731_v23 = vrot.slane %v1703_v5, 1  ;;  %v1736_v28 = vrot.slane %v1702_v16, 7  ;;  %v1737_v59 = vrot.slane %v1703_v5, 7 }
 0x5c0   : > { %v1710_v36 = vmin.f32 %v1708_v53, %v1706_v25  ;;  %v4590_v53 = vld [vmem:[#allocation32_spill] sm:$0xff] }
 0x5c1   : > { %v1732_v12 = vsel %vm302_vm2, %v1730_v42, %v1731_v23  ;;  %v1733_v63 = vsel %vm302_vm2, %v1731_v23, %v1730_v42  ;;  %v1739_v27 = vsel %vm313_vm4, %v1737_v59, %v1736_v28  ;;  %v1738_v26 = vsel %vm313_vm4, %v1736_v28, %v1737_v59 }
 0x5c2   : > { %v1735_v14 = vsel %vm295_vm3, 0.0, %v1733_v63  ;;  %v1742_v44 = vmax.f32 %v1732_v12, %v1702_v16  ;;  %v1740_v17 = vsel %vm296_vm5, 0.0, %v1739_v27  ;;  %v1711_v12 = vmin.f32 %v1709_v56, %v1638_v30 }
 0x5c3   : > { %v1743_v61 = vmax.f32 %v1735_v14, %v1703_v5  ;;  %v978_v27 = vmax.f32 %v970_v24, %v3229_v40 }
 0x5c4   : > { %v4094_v43 = vmax.f32 %v1742_v44, %v1740_v17  ;;  %v4589_v44 = vld [vmem:[#allocation38_spill] sm:$0xff] }
 0x5c5   : > { %v4096_v1 = vmax.f32 %v1743_v61, %v1738_v26  ;;  %v979_v17 = vmax.f32 %v971_v6, %v4589_v44 }
 0x5c7   : > { %v2268_v46 = vpack.i.bf16 %v4096_v1, %v4094_v43 }
 0x5c9   : > { %2269 = vrot.lane.b32.xlu1 %v2268_v46, %s2437_s5  ;;  %2264 = vrot.lane.b32.xlu0 %v2268_v46, %s2436_s20 }
 0x5ce   : > { %v1715_v37 = vpop.permute.xlu0 %1714 }
 0x5cf   : > { %v1713_v48 = vpop.permute.xlu1 %1712  ;;  %v1717_v10 = vsel %vm298_vm6, 1.0, %v1715_v37 }
 0x5d0   : > { %v1716_v47 = vsel %vm298_vm6, 1.0, %v1713_v48  ;;  %v1725_v5 = vmin.f32 %v1717_v10, %v3765_v55 }
 0x5d1   : > { %v1724_v13 = vmin.f32 %v1716_v47, %v3767_v49 }
 0x5d2   : > { %v1719_v16 = vpop.permute.xlu0 %1718 }
 0x5d3   : > { %v1721_v42 = vpop.permute.xlu1 %1720  ;;  %v1722_v23 = vsel %vm299_vm7, 1.0, %v1719_v16 }
 0x5d4   : > { %v1723_v28 = vsel %vm299_vm7, 1.0, %v1721_v42  ;;  %v1726_v59 = vmin.f32 %v1724_v13, %v1722_v23  ;;  %v4591_v13 = vld [vmem:[#allocation31_spill] sm:$0xff] }
 0x5d5   : > { %v1727_v63 = vmin.f32 %v1725_v5, %v1723_v28 }
 0x5d6   : > { %v1728_v14 = vmin.f32 %v1710_v36, %v1726_v59  ;;  %v973_v38 = vpop.permute.xlu0 %972 }
 0x5d7   : > { %v1729_v61 = vmin.f32 %v1711_v12, %v1727_v63  ;;  %v975_v26 = vpop.permute.xlu1 %974  ;;  %v976_v46 = vsel %vm299_vm7, 0.0, %v973_v38 }
 0x5d8   : > { %v1766_v37 = vrot.slane %v1728_v14, 1  ;;  %v1772_v18 = vrot.slane %v1728_v14, 7  ;;  %v977_v54 = vsel %vm299_vm7, 0.0, %v975_v26  ;;  %v980_v48 = vmax.f32 %v978_v27, %v976_v46 }
 0x5d9   : > { %v1767_v47 = vrot.slane %v1729_v61, 1  ;;  %v1773_v30 = vrot.slane %v1729_v61, 7  ;;  %v981_v10 = vmax.f32 %v979_v17, %v977_v54 }
 0x5da   : > { %v982_v40 = vsub.f32 %v4590_v53, %v980_v48  ;;  %v4133_v56 = vpop.permute.xlu0 %2214 }
 0x5db   : > { %v1768_v25 = vsel %vm302_vm2, %v1766_v37, %v1767_v47  ;;  %v983_v16 = vsub.f32 %v4591_v13, %v981_v10  ;;  %v1103_v24 = vpop.permute.xlu1 %1102  ;;  %v1775_v23 = vsel %vm313_vm4, %v1773_v30, %v1772_v18 }
 0x5dc   : > { %v1778_v5 = vmax.f32 %v1768_v25, %v1728_v14  ;;  %v984_v42 = vmax.f32 %v982_v40, 0.0  ;;  %v1106_v27 = vsel %vm298_vm6, 0.0, %v1103_v24  ;;  %v1776_v14 = vsel %vm296_vm5, 0.0, %v1775_v23  ;;  %v4596_v23 = vld [vmem:[#allocation15_spill] sm:$0xff] }
 0x5dd   : > { %v985_v6 = vmax.f32 %v983_v16, 0.0  ;;  %2293 = vlog2.f32 %v4596_v23 }
 0x5de   : > { %v992_v28 = vadd.f32 %v984_v42, %v3998_v3  ;;  %v994_v36 = vmul.f32 %v984_v42, %v3998_v3  ;;  %v1105_v59 = vpop.permute.xlu0 %1104  ;;  %v4152_v17 = vmax.f32 %v1778_v5, %v1776_v14  ;;  %v1769_v3 = vsel %vm302_vm2, %v1767_v47, %v1766_v37  ;;  %v2298_v14 = vld [vmem:[%s2616_s27 + $0x8] sm:$0xff] }
 0x5df   : > { %v993_v12 = vadd.f32 %v985_v6, %v3991_v2  ;;  %v995_v63 = vmul.f32 %v985_v6, %v3991_v2  ;;  %v4146_v38 = vpop.permute.xlu1 %2219  ;;  %v1107_v44 = vsel %vm298_vm6, 0.0, %v1105_v59  ;;  %v1114_v2 = vmax.f32 %v1106_v27, %v3333_v62  ;;  %v2297_v27 = vld [vmem:[%s2616_s27] sm:$0xff] }
 0x5e0   : > { %4592 = vst [vmem:[#allocation17_spill] sm:$0xff] %v4152_v17  ;;  %v996_v46 = vsub.f32 %v992_v28, %v994_v36  ;;  %1782 = vrot.lane.b32.xlu1 %v4152_v17, %s2436_s20  ;;  %v1771_v54 = vsel %vm295_vm3, 0.0, %v1769_v3  ;;  %v1115_v10 = vmax.f32 %v1107_v44, %v3335_v60  ;;  %v1774_v37 = vsel %vm313_vm4, %v1772_v18, %v1773_v30  ;;  %v4595_v60 = vld [vmem:[#allocation37_spill] sm:$0xff]  ;;  %v4597_v36 = vld [vmem:[#allocation16_spill] sm:$0xff] }
 0x5e1   : > { %v997_v26 = vsub.f32 %v993_v12, %v995_v63  ;;  %v1779_v53 = vmax.f32 %v1771_v54, %v1729_v61  ;;  %2295 = vlog2.f32 %v4597_v36  ;;  %vm206_vm8 = vcmp.eq.s32.totalorder %v2297_v27, 0  ;;  %v2299_v44 = vld [vmem:[%s2608_s19] sm:$0xff] }
 0x5e2   : > { %v1109_v48 = vpop.permute.xlu0 %1108  ;;  %vm207_vm9 = vcmp.eq.s32.totalorder %v2298_v14, 0  ;;  %v208_v3 = vsel %vm206_vm8, %v2299_v44, 0.0  ;;  %vm226_vm10 = vcmp.eq.s32.totalorder %v2297_v27, 2  ;;  %vm227_vm11 = vcmp.eq.s32.totalorder %v2298_v14, 2 }
 0x5e3   : > { %v1111_v40 = vpop.permute.xlu1 %1110  ;;  %v1112_v25 = vsel %vm299_vm7, 0.0, %v1109_v48  ;;  %v4168_v13 = vmax.f32 %v1779_v53, %v1774_v37  ;;  %vm237_vm12 = vcmp.eq.s32.totalorder %v2297_v27, 3  ;;  %vm238_vm13 = vcmp.eq.s32.totalorder %v2298_v14, 3 }
 0x5e4   : > { %v1113_v62 = vsel %vm299_vm7, 0.0, %v1111_v40  ;;  %v1116_v47 = vmax.f32 %v1114_v2, %v1112_v25  ;;  %v4599_v40 = vld [vmem:[#allocation11_spill] sm:$0xff] }
 0x5e5   : > { %4593 = vst [vmem:[#allocation20_spill] sm:$0xff] %v4168_v13  ;;  %v1117_v16 = vmax.f32 %v1115_v10, %v1113_v62  ;;  %1784 = vrot.lane.b32.xlu0 %v4168_v13, %s2436_s20  ;;  %1790 = vrot.lane.b32.xlu1 %v4168_v13, %s2437_s5  ;;  %v4598_v10 = vld [vmem:[#allocation12_spill] sm:$0xff]  ;;  %v2301_v62 = vld [vmem:[%s2608_s19 + $0x20] sm:$0xff] }
 0x5e6   : > { %v1118_v24 = vsub.f32 %v4594_v58, %v1116_v47  ;;  %v4184_v63 = vpop.permute.xlu0 %2224  ;;  %v219_v53 = vadd.f32 %v4598_v10, %v208_v3  ;;  %v228_v47 = vsel %vm226_vm10, %v2301_v62, 0.0  ;;  %v4600_v3 = vld [vmem:[#allocation13_spill] sm:$0xff] }
 0x5e7   : > { %v1119_v61 = vsub.f32 %v4595_v60, %v1117_v16  ;;  %v4190_v54 = vpop.permute.xlu1 %1238  ;;  %v2302_v16 = vld [vmem:[%s2608_s19 + $0x28] sm:$0xff] }
 0x5e8   : > { %v1120_v18 = vmax.f32 %v1118_v24, 0.0  ;;  %v229_v58 = vsel %vm227_vm11, %v2302_v16, 0.0  ;;  %v2217_v16 = vunpack.i.h.bf16 %v4133_v56 }
 0x5e9   : > { %v1121_v30 = vmax.f32 %v1119_v61, 0.0  ;;  %1788 = vrot.lane.b32.xlu0 %v4152_v17, %s2437_s5  ;;  %v230_v61 = vadd.f32 %v228_v47, %v219_v53 }
 0x5ea   : > { %v1128_v5 = vadd.f32 %v1120_v18, %v996_v46  ;;  %v1130_v42 = vmul.f32 %v1120_v18, %v996_v46  ;;  %v2300_v46 = vld [vmem:[%s2608_s19 + $0x8] sm:$0xff]  ;;  %v2294_v48 = vpop.eup %2293 }
 0x5eb   : > { %v1129_v6 = vadd.f32 %v1121_v30, %v997_v26  ;;  %v1131_v28 = vmul.f32 %v1121_v30, %v997_v26  ;;  %v209_v2 = vsel %vm207_vm9, %v2300_v46, 0.0  ;;  %v4192_v26 = vpop.permute.xlu0 %1240  ;;  %v2230_v24 = vpop.permute.xlu1 %2229  ;;  %v274_v30 = vmul.f32 0.6931472, %v2294_v48 }
 0x5ec   : > { %v4180_v59 = vsub.f32 %v1128_v5, %v1130_v42  ;;  %v220_v25 = vadd.f32 %v4599_v40, %v209_v2  ;;  %v2303_v42 = vld [vmem:[%s2608_s19 + $0x30] sm:$0xff]  ;;  %v4601_v2 = vld [vmem:[#allocation14_spill] sm:$0xff] }
 0x5ed   : > { %v4182_v12 = vsub.f32 %v1129_v6, %v1131_v28  ;;  %v239_v23 = vsel %vm237_vm12, %v2303_v42, 0.0  ;;  %v2304_v6 = vld [vmem:[%s2608_s19 + $0x38] sm:$0xff]  ;;  %v277_v46 = vadd.f32 %v274_v30, %v4600_v3  ;;  %v1071_v42 = vsel %vm298_vm6, 0.0, %v2217_v16  ;;  %s2365_s19 = sshll.u32 %s2438_s4, 4  ;;  %s2366_s19 = int_to_ptr.vmem [resolvable:$false] %s2365_s19 }
 0x5ee   : > { %v2296_v37 = vpop.eup %2295  ;;  %v231_v18 = vadd.f32 %v229_v58, %v220_v25  ;;  %v240_v28 = vsel %vm238_vm13, %v2304_v6, 0.0  ;;  %v241_v36 = vadd.f32 %v239_v23, %v230_v61  ;;  %v2216_v58 = vunpack.i.l.bf16 %v4133_v56  ;;  %v4602_v56 = vld [vmem:[#allocation42_spill] sm:$0xff]  ;;  %s2367_s3 = scalar_lea.vmem %s2366_s19, 256  ;;  %p2368_p10 = scmp.lt.s32.totalorder %s1872_s23, %s2366_s19 }
 0x5ef   : > { %v4198_v60 = vpop.permute.xlu0 %1244  ;;  %v276_v5 = vmul.f32 0.6931472, %v2296_v37  ;;  %v4204_v40 = vpop.permute.xlu1 %1246  ;;  %v2222_v61 = vunpack.i.h.bf16 %v4146_v38  ;;  %v2231_v16 = vunpack.i.l.bf16 %v2230_v24  ;;  %p2369_p0 = scmp.lt.s32.totalorder %s2367_s3, %s2361_s30 }
 0x5f0   : > { %v242_v44 = vadd.f32 %v240_v28, %v231_v18  ;;  %v4206_v14 = vsub.f32 %v277_v46, %v241_v36  ;;  %v2221_v18 = vunpack.i.l.bf16 %v4146_v38  ;;  %v1070_v23 = vsel %vm298_vm6, 0.0, %v2216_v58 }
 0x5f1   : > { %v278_v10 = vadd.f32 %v276_v5, %v4601_v2  ;;  %v1077_v6 = vsel %vm299_vm7, 0.0, %v2222_v61  ;;  %v1079_v36 = vmax.f32 %v1071_v42, %v4602_v56  ;;  %v2227_v38 = vunpack.i.h.bf16 %v4184_v63  ;;  %v4604_v42 = vld [vmem:[#allocation33_spill] sm:$0xff]  ;;  %v4605_v56 = vld [vmem:[#allocation34_spill] sm:$0xff]  ;;  %p2370_p2 = por %p2369_p0, %p2368_p10 }
 0x5f2   : > { %v1076_v28 = vsel %vm299_vm7, 0.0, %v2221_v18  ;;  %v2226_v46 = vunpack.i.l.bf16 %v4184_v63 }
 0x5f3   : > { %v2235_v27 = vpop.permute.xlu0 %2234  ;;  %v4208_v62 = vsub.f32 %v278_v10, %v242_v44  ;;  %v4212_v53 = vpop.permute.xlu1 %1374  ;;  %v4603_v44 = vld [vmem:[#allocation41_spill] sm:$0xff]  ;;  %v1081_v10 = vmax.f32 %v1079_v36, %v1077_v6  ;;  %v1207_v61 = vsel %vm298_vm6, 0.0, %v2227_v38  ;;  %p2371_p4 = pnand %p2370_p2, %p2364_p7 }
 0x5f4   : > { %v1078_v3 = vmax.f32 %v1070_v23, %v4603_v44  ;;  %v1206_v18 = vsel %vm298_vm6, 0.0, %v2226_v46  ;;  %v1215_v6 = vmax.f32 %v1207_v61, %v3385_v21  ;;  %v2237_v36 = vunpack.i.h.bf16 %v2235_v27  ;;  %v4606_v21 = vld [vmem:[#allocation39_spill] sm:$0xff] }
 0x5f5   : > { %v1814_v48 = vadd.f32 %v4208_v62, %v4206_v14  ;;  %v1083_v44 = vsub.f32 %v4605_v56, %v1081_v10 }
 0x5f6   : > { %v1080_v2 = vmax.f32 %v1078_v3, %v1076_v28  ;;  %v1214_v28 = vmax.f32 %v1206_v18, %v3383_v41  ;;  %v2236_v3 = vunpack.i.l.bf16 %v2235_v27  ;;  %v4607_v41 = vld [vmem:[#allocation40_spill] sm:$0xff] }
 0x5f7   : > { %v4214_v25 = vpop.permute.xlu0 %1376  ;;  %v2240_v37 = vpop.permute.xlu1 %2239  ;;  %v1085_v56 = vmax.f32 %v1083_v44, 0.0 }
 0x5f8   : > { %v1082_v23 = vsub.f32 %v4604_v42, %v1080_v2  ;;  %v2242_v2 = vunpack.i.h.bf16 %v2240_v37  ;;  %v2241_v42 = vunpack.i.l.bf16 %v2240_v37 }
 0x5fa   : > { %v1084_v10 = vmax.f32 %v1082_v23, 0.0  ;;  %v1349_v27 = vsel %vm299_vm7, 0.0, %v2242_v2 }
 0x5fb   : > { %v4216_v47 = vpop.permute.xlu0 %1380  ;;  %v4222_v30 = vpop.permute.xlu1 %1382 }
 0x5ff   : > { %v2245_v5 = vpop.permute.xlu0 %2244  ;;  %v4236_v57 = vpop.permute.xlu1 %1510 }
 0x600   : > { %v2247_v44 = vunpack.i.h.bf16 %v2245_v5 }
 0x603   : > { %v4238_v58 = vpop.permute.xlu0 %1512  ;;  %v2250_v38 = vpop.permute.xlu1 %2249 }
 0x607   : > { %v4252_v49 = vpop.permute.xlu0 %1516 }
 0x608   : > { %1815 = vadd.xlane.f32.xlu0 %v1814_v48  ;;  %v2232_v48 = vunpack.i.h.bf16 %v2230_v24  ;;  %v1212_v24 = vsel %vm299_vm7, 0.0, %v2231_v16  ;;  %v1342_v16 = vsel %vm298_vm6, 0.0, %v2236_v3  ;;  %v1123_v3 = vadd.f32 %v1085_v56, %v4044_v29 }
 0x609   : > { %v1216_v46 = vmax.f32 %v1214_v28, %v1212_v24  ;;  %v1350_v23 = vmax.f32 %v1342_v16, %v3487_v39  ;;  %v2246_v24 = vunpack.i.l.bf16 %v2245_v5  ;;  %v1479_v5 = vsel %vm298_vm6, 0.0, %v2247_v44 }
 0x60a   : > { %v1213_v63 = vsel %vm299_vm7, 0.0, %v2232_v48  ;;  %v1343_v48 = vsel %vm298_vm6, 0.0, %v2237_v36  ;;  %v1122_v36 = vadd.f32 %v1084_v10, %v4042_v4 }
 0x60b   : > { %v1217_v55 = vmax.f32 %v1215_v6, %v1213_v63  ;;  %v1218_v61 = vsub.f32 %v4606_v21, %v1216_v46  ;;  %v1348_v63 = vsel %vm299_vm7, 0.0, %v2241_v42  ;;  %v1351_v37 = vmax.f32 %v1343_v48, %v3489_v35  ;;  %v4266_v6 = vpop.permute.xlu1 %1518  ;;  %v2255_v28 = vpop.permute.xlu0 %2254 }
 0x60c   : > { %v1125_v46 = vmul.f32 %v1085_v56, %v4044_v29  ;;  %v1352_v2 = vmax.f32 %v1350_v23, %v1348_v63  ;;  %v2252_v42 = vunpack.i.h.bf16 %v2250_v38  ;;  %v2257_v35 = vunpack.i.h.bf16 %v2255_v28 }
 0x60d   : > { %v1219_v18 = vsub.f32 %v4607_v41, %v1217_v55  ;;  %v1124_v55 = vmul.f32 %v1084_v10, %v4042_v4  ;;  %v1353_v21 = vmax.f32 %v1351_v37, %v1349_v27  ;;  %v2251_v41 = vunpack.i.l.bf16 %v2250_v38  ;;  %v4609_v10 = vld [vmem:[#allocation46_spill] sm:$0xff] }
 0x60e   : > { %v2256_v48 = vunpack.i.l.bf16 %v2255_v28  ;;  %v1220_v39 = vmax.f32 %v1218_v61, 0.0  ;;  %v1478_v17 = vsel %vm298_vm6, 0.0, %v2246_v24  ;;  %v1127_v20 = vsub.f32 %v1123_v3, %v1125_v46 }
 0x60f   : > { %v1221_v16 = vmax.f32 %v1219_v18, 0.0  ;;  %v1126_v13 = vsub.f32 %v1122_v36, %v1124_v55  ;;  %v1354_v4 = vsub.f32 %v4608_v51, %v1352_v2  ;;  %v1355_v29 = vsub.f32 %v4609_v10, %v1353_v21  ;;  %v2260_v61 = vpop.permute.xlu1 %2259 }
 0x610   : > { %v1485_v56 = vsel %vm299_vm7, 0.0, %v2252_v42  ;;  %v1484_v38 = vsel %vm299_vm7, 0.0, %v2251_v41  ;;  %v1487_v18 = vmax.f32 %v1479_v5, %v4575_v33  ;;  %v1486_v27 = vmax.f32 %v1478_v17, %v4574_v34  ;;  %v4292_v41 = vpop.permute.xlu0 %1652 }
 0x611   : > { %v1615_v63 = vsel %vm298_vm6, 0.0, %v2257_v35  ;;  %v1614_v37 = vsel %vm298_vm6, 0.0, %v2256_v48  ;;  %v1258_v51 = vadd.f32 %v1220_v39, %v1126_v13  ;;  %v1259_v23 = vadd.f32 %v1221_v16, %v1127_v20  ;;  %v4610_v35 = vld [vmem:[#allocation51_spill] sm:$0xff] }
 0x612   : > { %v1260_v44 = vmul.f32 %v1220_v39, %v1126_v13  ;;  %v1261_v24 = vmul.f32 %v1221_v16, %v1127_v20  ;;  %v1488_v28 = vmax.f32 %v1486_v27, %v1484_v38  ;;  %v1489_v36 = vmax.f32 %v1487_v18, %v1485_v56  ;;  %v4611_v13 = vld [vmem:[#allocation52_spill] sm:$0xff] }
 0x613   : > { %v2262_v3 = vunpack.i.h.bf16 %v2260_v61  ;;  %v2261_v55 = vunpack.i.l.bf16 %v2260_v61  ;;  %v1623_v46 = vmax.f32 %v1615_v63, %v4014_v9  ;;  %v1622_v33 = vmax.f32 %v1614_v37, %v4012_v31  ;;  %v4290_v42 = vpop.permute.xlu1 %1646  ;;  %v4612_v63 = vld [vmem:[#allocation58_spill] sm:$0xff] }
 0x614   : > { %v1356_v2 = vmax.f32 %v1354_v4, 0.0  ;;  %v1357_v34 = vmax.f32 %v1355_v29, 0.0  ;;  %v1262_v17 = vsub.f32 %v1258_v51, %v1260_v44  ;;  %v1263_v21 = vsub.f32 %v1259_v23, %v1261_v24  ;;  %v4613_v51 = vld [vmem:[#allocation57_spill] sm:$0xff] }
 0x615   : > { %v1490_v48 = vsub.f32 %v4610_v35, %v1488_v28  ;;  %v1491_v20 = vsub.f32 %v4611_v13, %v1489_v36  ;;  %v1621_v39 = vsel %vm299_vm7, 0.0, %v2262_v3  ;;  %v1620_v9 = vsel %vm299_vm7, 0.0, %v2261_v55 }
 0x616   : > { %v1243_v31 = vsel %vm298_vm6, 0.0, %v4192_v26  ;;  %v1625_v16 = vmax.f32 %v1623_v46, %v1621_v39  ;;  %v1624_v5 = vmax.f32 %v1622_v33, %v1620_v9  ;;  %v1394_v4 = vadd.f32 %v1356_v2, %v1262_v17  ;;  %v4311_v26 = vpop.permute.xlu0 %1648  ;;  %v4614_v39 = vld [vmem:[#allocation43_spill] sm:$0xff] }
 0x617   : > { %v1395_v10 = vadd.f32 %v1357_v34, %v1263_v21  ;;  %v1396_v29 = vmul.f32 %v1356_v2, %v1262_v17  ;;  %v1397_v56 = vmul.f32 %v1357_v34, %v1263_v21  ;;  %v1249_v38 = vsel %vm299_vm7, 0.0, %v4204_v40  ;;  %v4309_v44 = vpop.permute.xlu1 %1654 }
 0x618   : > { %v1492_v61 = vmax.f32 %v1490_v48, 0.0  ;;  %v1493_v18 = vmax.f32 %v1491_v20, 0.0  ;;  %v1251_v27 = vmax.f32 %v1243_v31, %v4573_v22  ;;  %v1627_v37 = vsub.f32 %v4612_v63, %v1625_v16 }
 0x619   : > { %v1626_v23 = vsub.f32 %v4613_v51, %v1624_v5  ;;  %v1242_v24 = vsel %vm298_vm6, 0.0, %v4190_v54  ;;  %v1398_v28 = vsub.f32 %v1394_v4, %v1396_v29  ;;  %v1399_v36 = vsub.f32 %v1395_v10, %v1397_v56 }
 0x61a   : > { %v1253_v3 = vmax.f32 %v1251_v27, %v1249_v38  ;;  %v1248_v40 = vsel %vm299_vm7, 0.0, %v4198_v60  ;;  %v1250_v2 = vmax.f32 %v1242_v24, %v4572_v45  ;;  %v1629_v34 = vmax.f32 %v1627_v37, 0.0  ;;  %v4615_v24 = vld [vmem:[#allocation44_spill] sm:$0xff] }
 0x61b   : > { %v1530_v22 = vadd.f32 %v1492_v61, %v1398_v28  ;;  %v1531_v55 = vadd.f32 %v1493_v18, %v1399_v36  ;;  %v1532_v46 = vmul.f32 %v1492_v61, %v1398_v28  ;;  %v1533_v33 = vmul.f32 %v1493_v18, %v1399_v36 }
 0x61c   : > { %v1628_v17 = vmax.f32 %v1626_v23, 0.0  ;;  %v1255_v9 = vsub.f32 %v4614_v39, %v1253_v3  ;;  %v1252_v31 = vmax.f32 %v1250_v2, %v1248_v40  ;;  %v1378_v60 = vsel %vm298_vm6, 0.0, %v4212_v53 }
 0x61d   : > { %v1379_v16 = vsel %vm298_vm6, 0.0, %v4214_v25  ;;  %v1534_v45 = vsub.f32 %v1530_v22, %v1532_v46  ;;  %v1535_v5 = vsub.f32 %v1531_v55, %v1533_v33  ;;  %v1385_v29 = vsel %vm299_vm7, 0.0, %v4222_v30 }
 0x61e   : > { %v1384_v53 = vsel %vm299_vm7, 0.0, %v4216_v47  ;;  %v1257_v23 = vmax.f32 %v1255_v9, 0.0  ;;  %v1254_v28 = vsub.f32 %v4615_v24, %v1252_v31  ;;  %v1386_v47 = vmax.f32 %v1378_v60, %v4580_v7 }
 0x61f   : > { %v1666_v38 = vadd.f32 %v1628_v17, %v1534_v45  ;;  %v1667_v61 = vadd.f32 %v1629_v34, %v1535_v5  ;;  %v1668_v63 = vmul.f32 %v1628_v17, %v1534_v45  ;;  %v1669_v37 = vmul.f32 %v1629_v34, %v1535_v5 }
 0x620   : > { %v1388_v40 = vmax.f32 %v1386_v47, %v1384_v53  ;;  %v1515_v22 = vsel %vm298_vm6, 0.0, %v4238_v58  ;;  %v1265_v34 = vadd.f32 %v1257_v23, %v4182_v12  ;;  %v1256_v17 = vmax.f32 %v1254_v28, 0.0  ;;  %v4616_v58 = vld [vmem:[#allocation48_spill] sm:$0xff] }
 0x621   : > { %v1670_v33 = vsub.f32 %v1666_v38, %v1668_v63  ;;  %v1671_v2 = vsub.f32 %v1667_v61, %v1669_v37  ;;  %v1514_v7 = vsel %vm298_vm6, 0.0, %v4236_v57  ;;  %v1520_v39 = vsel %vm299_vm7, 0.0, %v4252_v49  ;;  %v4619_v61 = vld [vmem:[#allocation54_spill] sm:$0xff] }
 0x622   : > { %v1522_v57 = vmax.f32 %v1514_v7, %v3950_v19  ;;  %v1267_v60 = vmul.f32 %v1257_v23, %v4182_v12  ;;  %v1266_v45 = vmul.f32 %v1256_v17, %v4180_v59  ;;  %v1650_v49 = vsel %vm298_vm6, 0.0, %v4290_v42 }
 0x623   : > { %v1657_v42 = vsel %vm299_vm7, 0.0, %v4309_v44 }
 0x624   : > { %v1269_v12 = vsub.f32 %v1265_v34, %v1267_v60 }
 0x63b   : > { %v2270_v21 = vpop.permute.xlu1 %2269  ;;  %v2265_v35 = vpop.permute.xlu0 %2264 }
 0x63c   : > { %v2272_v48 = vunpack.i.h.bf16 %v2270_v21  ;;  %v2271_v13 = vunpack.i.l.bf16 %v2270_v21  ;;  %v2267_v54 = vunpack.i.h.bf16 %v2265_v35  ;;  %v2266_v20 = vunpack.i.l.bf16 %v2265_v35 }
 0x63e   : > { %v1751_v4 = vsel %vm298_vm6, 0.0, %v2267_v54  ;;  %v1750_v10 = vsel %vm298_vm6, 0.0, %v2266_v20  ;;  %v1757_v18 = vsel %vm299_vm7, 0.0, %v2272_v48  ;;  %v1756_v27 = vsel %vm299_vm7, 0.0, %v2271_v13  ;;  %v4617_v13 = vld [vmem:[#allocation47_spill] sm:$0xff] }
 0x63f   : > { %v1759_v56 = vmax.f32 %v1751_v4, %v4096_v1  ;;  %v1758_v25 = vmax.f32 %v1750_v10, %v4094_v43  ;;  %v1387_v1 = vmax.f32 %v1379_v16, %v4583_v32  ;;  %v1390_v54 = vsub.f32 %v4617_v13, %v1388_v40  ;;  %v4621_v40 = vld [vmem:[#allocation61_spill] sm:$0xff] }
 0x640   : > { %v1523_v20 = vmax.f32 %v1515_v22, %v3957_v15  ;;  %v1264_v16 = vadd.f32 %v1256_v17, %v4180_v59  ;;  %v1524_v15 = vmax.f32 %v1522_v57, %v1520_v39  ;;  %v1658_v59 = vmax.f32 %v1650_v49, %v4048_v11  ;;  %v4623_v13 = vld [vmem:[#allocation17_spill] sm:$0xff] }
 0x641   : > { %v1761_v51 = vmax.f32 %v1759_v56, %v1757_v18  ;;  %v1760_v30 = vmax.f32 %v1758_v25, %v1756_v27  ;;  %v1389_v3 = vmax.f32 %v1387_v1, %v1385_v29  ;;  %v1392_v29 = vmax.f32 %v1390_v54, 0.0  ;;  %v4618_v56 = vld [vmem:[#allocation53_spill] sm:$0xff]  ;;  %v4620_v1 = vld [vmem:[#allocation62_spill] sm:$0xff] }
 0x642   : > { %v1268_v38 = vsub.f32 %v1264_v16, %v1266_v45  ;;  %v1526_v18 = vsub.f32 %v4619_v61, %v1524_v15  ;;  %v4625_v15 = vld [vmem:[#allocation64_spill] sm:$0xff] }
 0x643   : > { %v1763_v43 = vsub.f32 %v3717_v52, %v1761_v51  ;;  %v1762_v36 = vsub.f32 %v3719_v50, %v1760_v30  ;;  %v1521_v52 = vsel %vm299_vm7, 0.0, %v4266_v6  ;;  %v1391_v48 = vsub.f32 %v4616_v58, %v1389_v3 }
 0x644   : > { %v1651_v6 = vsel %vm298_vm6, 0.0, %v4311_v26  ;;  %v1525_v5 = vmax.f32 %v1523_v20, %v1521_v52  ;;  %v1400_v51 = vadd.f32 %v1392_v29, %v1268_v38  ;;  %v1656_v30 = vsel %vm299_vm7, 0.0, %v4292_v41 }
 0x645   : > { %v1765_v55 = vmax.f32 %v1763_v43, 0.0  ;;  %v1764_v46 = vmax.f32 %v1762_v36, 0.0  ;;  %v1393_v10 = vmax.f32 %v1391_v48, 0.0  ;;  %v1659_v26 = vmax.f32 %v1651_v6, %v4057_v8 }
 0x646   : > { %v1527_v25 = vsub.f32 %v4618_v56, %v1525_v5  ;;  %v1402_v8 = vmul.f32 %v1392_v29, %v1268_v38  ;;  %v1660_v24 = vmax.f32 %v1658_v59, %v1656_v30  ;;  %v1528_v11 = vmax.f32 %v1526_v18, 0.0 }
 0x647   : > { %v1802_v50 = vadd.f32 %v1764_v46, %v1670_v33  ;;  %v1803_v32 = vadd.f32 %v1765_v55, %v1671_v2  ;;  %v1804_v21 = vmul.f32 %v1764_v46, %v1670_v33  ;;  %v1805_v35 = vmul.f32 %v1765_v55, %v1671_v2 }
 0x648   : > { %v1401_v27 = vadd.f32 %v1393_v10, %v1269_v12  ;;  %v1403_v63 = vmul.f32 %v1393_v10, %v1269_v12  ;;  %v1661_v37 = vmax.f32 %v1659_v26, %v1657_v42  ;;  %v1529_v23 = vmax.f32 %v1527_v25, 0.0 }
 0x649   : > { %v1806_v9 = vsub.f32 %v1802_v50, %v1804_v21  ;;  %v1807_v31 = vsub.f32 %v1803_v32, %v1805_v35  ;;  %v1404_v36 = vsub.f32 %v1400_v51, %v1402_v8  ;;  %v1662_v22 = vsub.f32 %v4621_v40, %v1660_v24  ;;  %v4622_v32 = vld [vmem:[#allocation20_spill] sm:$0xff] }
 0x64a   : > { %v1405_v47 = vsub.f32 %v1401_v27, %v1403_v63  ;;  %v1663_v43 = vsub.f32 %v4620_v1, %v1661_v37 }
 0x64b   : > { %v1824_v19 = vmul.f32 %v1806_v9, %v4206_v14  ;;  %v1825_v4 = vmul.f32 %v1807_v31, %v4208_v62  ;;  %v1536_v55 = vadd.f32 %v1528_v11, %v1404_v36  ;;  %v1538_v46 = vmul.f32 %v1528_v11, %v1404_v36  ;;  %v4624_v31 = vld [vmem:[#allocation63_spill] sm:$0xff] }
 0x64c   : > { %v1537_v3 = vadd.f32 %v1529_v23, %v1405_v47  ;;  %v1539_v44 = vmul.f32 %v1529_v23, %v1405_v47  ;;  %v1665_v33 = vmax.f32 %v1663_v43, 0.0  ;;  %v1664_v50 = vmax.f32 %v1662_v22, 0.0 }
 0x64d   : > { %v1826_v53 = vadd.f32 %v1825_v4, %v1824_v19  ;;  %v1540_v35 = vsub.f32 %v1536_v55, %v1538_v46 }
 0x64e   : > { %v1541_v52 = vsub.f32 %v1537_v3, %v1539_v44  ;;  %v4626_v44 = vld [vmem:[#allocation18_spill] sm:$0xff] }
 0x64f   : > { %1827 = vadd.xlane.f32.xlu1 %v1826_v53  ;;  %v1672_v6 = vadd.f32 %v1664_v50, %v1540_v35  ;;  %v1674_v9 = vmul.f32 %v1664_v50, %v1540_v35  ;;  %vm1849_vm14 = vcmp.eq.s32.totalorder %v4626_v44, 2  ;;  %vm1848_vm15 = vcmp.eq.s32.totalorder %v4626_v44, 1 }
 0x650   : > { %v1673_v58 = vadd.f32 %v1665_v33, %v1541_v52  ;;  %v1675_v48 = vmul.f32 %v1665_v33, %v1541_v52 }
 0x651   : > { %v1676_v10 = vsub.f32 %v1672_v6, %v1674_v9 }
 0x652   : > { %v1783_v28 = vpop.permute.xlu1 %1782  ;;  %v1677_v45 = vsub.f32 %v1673_v58, %v1675_v48 }
 0x653   : > { %v1786_v41 = vsel %vm298_vm6, 0.0, %v1783_v28 }
 0x654   : > { %v1794_v54 = vmax.f32 %v1786_v41, %v4623_v13 }
 0x657   : > { %v1785_v2 = vpop.permute.xlu0 %1784  ;;  %v1791_v34 = vpop.permute.xlu1 %1790 }
 0x658   : > { %v1787_v17 = vsel %vm298_vm6, 0.0, %v1785_v2  ;;  %v1793_v7 = vsel %vm299_vm7, 0.0, %v1791_v34 }
 0x659   : > { %v1795_v21 = vmax.f32 %v1787_v17, %v4622_v32 }
 0x65b   : > { %v1797_v20 = vmax.f32 %v1795_v21, %v1793_v7  ;;  %v1789_v39 = vpop.permute.xlu0 %1788 }
 0x65c   : > { %v1792_v57 = vsel %vm299_vm7, 0.0, %v1789_v39 }
 0x65d   : > { %v1799_v60 = vsub.f32 %v4624_v31, %v1797_v20  ;;  %v1796_v16 = vmax.f32 %v1794_v54, %v1792_v57 }
 0x65f   : > { %v1801_v5 = vmax.f32 %v1799_v60, 0.0  ;;  %v1798_v49 = vsub.f32 %v4625_v15, %v1796_v16 }
 0x661   : > { %v1809_v19 = vadd.f32 %v1801_v5, %v1677_v45  ;;  %v1811_v4 = vmul.f32 %v1801_v5, %v1677_v45  ;;  %v1800_v26 = vmax.f32 %v1798_v49, 0.0 }
 0x663   : > { %v1808_v29 = vadd.f32 %v1800_v26, %v1676_v10  ;;  %v1810_v53 = vmul.f32 %v1800_v26, %v1676_v10  ;;  %v1813_v12 = vsub.f32 %v1809_v19, %v1811_v4 }
 0x665   : > { %v1812_v56 = vsub.f32 %v1808_v29, %v1810_v53  ;;  %v1837_v0 = vmul.f32 %v1813_v12, %v4208_v62 }
 0x667   : > { %v1836_v25 = vmul.f32 %v1812_v56, %v4206_v14 }
 0x669   : > { %v1838_v59 = vadd.f32 %v1837_v0, %v1836_v25 }
 0x66b   : > { %1839 = vadd.xlane.f32.xlu0 %v1838_v59 }
 0x691   : > { %v1816_v38 = vpop.xlane.xlu0 %1815 }
 0x692   : > { %v1817_v61 = vrot.slane %v1816_v38, 4 }
 0x694   : > { %v1818_v18 = vadd.f32 %v1817_v61, %v1816_v38 }
 0x696   : > { %v1819_v42 = vrot.slane %v1818_v18, 2 }
 0x698   : > { %v1820_v27 = vadd.f32 %v1819_v42, %v1818_v18 }
 0x69a   : > { %v1821_v63 = vrot.slane %v1820_v27, 1 }
 0x69c   : > { %v1822_v37 = vadd.f32 %v1821_v63, %v1820_v27 }
 0x69e   : > { %1991 = vpush %v1822_v37 }
 0x6cf   : > { %s1992_s17 = spop %1991 }
 0x6d0   : > { %v1854_v46 = vstv %s1992_s17 }
 0x6d8   : > { %v1828_v51 = vpop.xlane.xlu1 %1827 }
 0x6d9   : > { %v1829_v8 = vrot.slane %v1828_v51, 4 }
 0x6db   : > { %v1830_v30 = vadd.f32 %v1829_v8, %v1828_v51 }
 0x6dd   : > { %v1831_v23 = vrot.slane %v1830_v30, 2 }
 0x6df   : > { %v1832_v24 = vadd.f32 %v1831_v23, %v1830_v30 }
 0x6e1   : > { %v1833_v62 = vrot.slane %v1832_v24, 1 }
 0x6e3   : > { %v1834_v11 = vadd.f32 %v1833_v62, %v1832_v24 }
 0x6e5   : > { %1993 = vpush %v1834_v11 }
 0x6f4   : > { %v1840_v14 = vpop.xlane.xlu0 %1839 }
 0x6f5   : > { %v1841_v28 = vrot.slane %v1840_v14, 4 }
 0x6f7   : > { %v1842_v47 = vadd.f32 %v1841_v28, %v1840_v14 }
 0x6f9   : > { %v1843_v1 = vrot.slane %v1842_v47, 2 }
 0x6fb   : > { %v1844_v43 = vadd.f32 %v1843_v1, %v1842_v47 }
 0x6fd   : > { %v1845_v36 = vrot.slane %v1844_v43, 1 }
 0x6ff   : > { %v1846_v3 = vadd.f32 %v1845_v36, %v1844_v43 }
 0x701   : > { %1995 = vpush %v1846_v3 }
 0x716   : > { %s1994_s28 = spop %1993 }
 0x717   : > { %v1852_v22 = vstv %s1994_s28 }
 0x732   : > { %s1996_s25 = spop %1995 }
 0x733   : > { %v1850_v40 = vstv %s1996_s25 }
 0x734   : > { %v1851_v55 = vsel %vm1849_vm14, %v1850_v40, 0.0 }
 0x735   : > { %v1853_v33 = vsel %vm1848_vm15, %v1852_v22, %v1851_v55 }
 0x736   : > { %v1855_v2 = vsel %vm296_vm5, %v1854_v46, %v1853_v33 }
 0x737   : > { %1856 = vst [vmem:[%s201_s29] sm:$0xff] %v1855_v2 }
 0x738   : > { %2374 = shalt.err (!%p2371_p4)
}
 0x739   : > { %s2375_s26 = scalar_lea.hbm %s4409_s14, 128  ;;  %s2379_s20 = scalar_lea.hbm %s4450_s2, 256 }
 0x73a   : > { %p2376_p9 = scmp.ne.s32.totalorder %s4409_s14, %s2375_s26  ;;  %p2380_p5 = scmp.lt.s32.totalorder %s4409_s14, %s4450_s2 }
 0x73b   : > { %p2381_p8 = scmp.lt.s32.totalorder %s2379_s20, %s2375_s26 }
 0x73c   : > { %p2377_p11 = pnand %p2376_p9, %p4627_p1 }
 0x73d   : > { %p2382_p6 = por %p2381_p8, %p2380_p5 }
 0x73e   : > { %p2378_p3 = pneg %p2377_p11 }
 0x740   : > { %p2383_p13 = pnand %p2382_p6, %p2378_p3 }
 0x742   : > { %2386 = shalt.err (!%p2383_p13)
}
 0x743   : > { %2001 = dma.vmem_to_hbm [thread:$0]  (%p4627_p1), %s1872_s23, 128, %s4409_s14, %s1858_s13  }
 0x744 PF: > { %s1883_s17 = sand.u32 1, %s2417_s9   ;;  %p4628_p12 = scmp.ne.s32.totalorder %s4511_s22, 0 }
 0x745   : > { %p4629_p7 = scmp.ge.s32.totalorder %s2429_s12, 2  ;;  %s1884_s28 = scalar_lea.sflag [#allocation4], %s1883_s17 }
 0x747   : > { %p2011_p10 = pnand %p4629_p7, %p4628_p12 }
 0x749   : > { %p2012_p0 = pneg %p2011_p10 }
 0x74b   : > { %2412 = dma.done.wait (%p2012_p0), %s1884_s28, 128  }
 0x74c   : > { %2414 = vsyncadd (%p2012_p0), %s1884_s28, 4294967168  ;;  %p18_p2 = scmp.ge.s32.totalorder %s2479_s15, 4   ;;  %s4630_s9 = smov %s2421_s10 }
 0x74d   : > { %s4631_s10 = smov %s2425_s11  ;;  %s4632_s11 = smov %s2491_s18 }
 0x74e   : > { %s4633_s12 = smov %s2479_s15  ;;  %20 = sbr.rel (!%p18_p2) target bundleno = 7 (0x7), region = 89 }
 0x753   :  { %1889 = vsyncpa [#allocation3], 1 }
 0x754   :  { %1891 = vsyncpa [#allocation3 + $0x1], 1 }
 0x755   :  { %1892 = vsyncpa [#allocation6], 1 }
 0x756   :  { %1894 = vsyncpa [#allocation6 + $0x1], 1 }
 0x757   :  { %1895 = vsyncpa [#allocation4], 1 }
 0x758   :  { %1897 = vsyncpa [#allocation4 + $0x1], 1 }

</bundles_post_ra>
